<compile_context>
chip_gen: v6e
topology: v6e:2x2x1
jax: 0.10.0
libtpu: 0.0.40
codegen_flags: <defaults>
</compile_context>

<pallas_src>
import jax
import jax.numpy as jnp
from jax.experimental import pallas as pl
from jax.experimental.pallas import tpu as pltpu

H = W = 7
HW = H * W           # 49
C_IN = 3
C1 = 16
C2 = 20
FLAT = C2 * HW       # 980
HID = 124            # Linear(980, 124)
HID_PAD = 128        # lane-dense output width


def _round_up(n, m):
    return ((n + m - 1) // m) * m


# ---------------- Pallas kernel: fully fused forward ----------------

def fused_agent_kernel(x_ref, w1_ref, b1_ref, w2_ref, b2_ref, w3_ref, b3_ref,
                       o_ref):
    # x_ref: (TB, 147) channel-major flattened NCHW pixels (c*49 + hw).
    h = jnp.dot(x_ref[...], w1_ref[...],
                preferred_element_type=jnp.float32) + b1_ref[...]
    h = jnp.maximum(h, 0.0)                                    # ReLU
    h = jnp.dot(h, w2_ref[...],
                preferred_element_type=jnp.float32) + b2_ref[...]
    h = jnp.maximum(h, 0.0)                                    # ReLU
    y = jnp.dot(h, w3_ref[...],
                preferred_element_type=jnp.float32) + b3_ref[...]
    o_ref[...] = jnp.maximum(y, 0.0)                           # ReLU


# ---------------- parameter preparation (one-time, trace-time) ----------------

def prepare_kernel_params(params):
    """Convert simple-layout params into fused-kernel layouts."""
    w1, b1, w2, b2, w3, b3 = params
    eye = jnp.eye(HW, dtype=jnp.float32)
    # Block-diagonal conv weights; Scale(1/5) folded into w1.
    w1k = jnp.kron(w1 * (1.0 / 5.0), eye)                  # (147, 784)
    b1k = jnp.repeat(b1.reshape(-1), HW).reshape(1, C1 * HW)   # (1, 784)
    w2k = jnp.kron(w2, eye)                                # (784, 980)
    b2k = jnp.repeat(b2.reshape(-1), HW).reshape(1, C2 * HW)   # (1, 980)
    # Zero-pad the Linear head to 128 output columns (lane-dense store).
    w3k = jnp.pad(w3, ((0, 0), (0, HID_PAD - HID)))        # (980, 128)
    b3k = jnp.pad(b3, ((0, 0), (0, HID_PAD - HID)))        # (1, 128)
    return (w1k, b1k, w2k, b2k, w3k, b3k)


# ---------------- wrapper ----------------

def agent_forward(x_nchw, kernel_params):
    """Pallas forward pass. x_nchw: (B, 3, 7, 7) float32 -> (B, 124) float32."""
    w1k, b1k, w2k, b2k, w3k, b3k = kernel_params
    B = x_nchw.shape[0]
    # NCHW flatten is contiguous -> free reshape, already channel-major.
    x2d = x_nchw.reshape(B, C_IN * HW)                     # (B, 147)

    tb = min(128, _round_up(B, 8))                         # batch tile (M-tile)
    b_pad = _round_up(B, tb)
    if b_pad != B:
        x2d = jnp.pad(x2d, ((0, b_pad - B), (0, 0)))

    out = pl.pallas_call(
        fused_agent_kernel,
        out_shape=jax.ShapeDtypeStruct((b_pad, HID_PAD), jnp.float32),
        grid=(b_pad // tb,),
        in_specs=[
            pl.BlockSpec((tb, C_IN * HW), lambda i: (i, 0)),
            pl.BlockSpec(w1k.shape, lambda i: (0, 0)),
            pl.BlockSpec(b1k.shape, lambda i: (0, 0)),
            pl.BlockSpec(w2k.shape, lambda i: (0, 0)),
            pl.BlockSpec(b2k.shape, lambda i: (0, 0)),
            pl.BlockSpec(w3k.shape, lambda i: (0, 0)),
            pl.BlockSpec(b3k.shape, lambda i: (0, 0)),
        ],
        out_specs=pl.BlockSpec((tb, HID_PAD), lambda i: (i, 0)),
        compiler_params=pltpu.CompilerParams(
            dimension_semantics=("parallel",)),
    )(x2d, w1k, b1k, w2k, b2k, w3k, b3k)
    return out[:B, :HID]


# ---------------- deterministic parameter init ----------------

def init_params(key):
    ks = jax.random.split(key, 3)
    # torch-convention weight shapes, converted to kernel-friendly layouts.
    # TODO(synk): PyTorch layer_init uses orthogonal init; deterministic scaled
    # normals are used here (biases are 0, matching bias_const=0.0).
    w1_t = jax.random.normal(ks[0], (C1, C_IN, 1, 1), jnp.float32) * 0.5   # Conv2d(3,16,1)
    w2_t = jax.random.normal(ks[1], (C2, C1, 1, 1), jnp.float32) * 0.2     # Conv2d(16,20,1)
    w3_t = jax.random.normal(ks[2], (HID, FLAT), jnp.float32) * 0.05       # Linear(980,124)
    b1 = jnp.zeros((1, C1), jnp.float32)
    b2 = jnp.zeros((1, C2), jnp.float32)
    b3 = jnp.zeros((1, HID), jnp.float32)
    w1 = w1_t[:, :, 0, 0].T   # (3, 16)
    w2 = w2_t[:, :, 0, 0].T   # (16, 20)
    w3 = w3_t.T               # (980, 124)
    return (w1, b1, w2, b2, w3, b3)


# ---------------- pure-JAX reference ----------------

def reference_forward(x_nchw, params):
    w1, b1, w2, b2, w3, b3 = params
    x = x_nchw * (1.0 / 5.0)
    h = jnp.einsum('bchw,ck->bkhw', x, w1) + b1.reshape(1, C1, 1, 1)
    h = jnp.maximum(h, 0.0)
    h = jnp.einsum('bchw,ck->bkhw', h, w2) + b2.reshape(1, C2, 1, 1)
    h = jnp.maximum(h, 0.0)
    hf = h.reshape(x.shape[0], FLAT)   # NCHW flatten, same as torch
    return jnp.maximum(hf @ w3 + b3, 0.0)


if __name__ == "__main__":
    key = jax.random.PRNGKey(0)
    k_param, k_x = jax.random.split(key)

    params = init_params(k_param)
    kernel_params = prepare_kernel_params(params)

    B = 2
    # MiniGrid-like observation: small non-negative integers in (B, 3, 7, 7)
    x = jax.random.randint(k_x, (B, C_IN, H, W), 0, 10).astype(jnp.float32)

    fwd = jax.jit(agent_forward)
    out = fwd(x, kernel_params)
    out = jax.block_until_ready(out)

    ref = reference_forward(x, params)
    assert out.shape == (B, HID), out.shape
    assert jnp.allclose(out, ref, rtol=1e-4, atol=1e-4), "mismatch vs reference"

    print("KERNEL_OK")
</pallas_src>

<mosaic_0001>
module attributes {stable_mosaic.version = 11 : i64} {
  func.func @fused_agent_kernel(%arg0: i32, %arg1: memref<8x147xf32, #tpu.memory_space<vmem>>, %arg2: memref<147x784xf32, #tpu.memory_space<vmem>>, %arg3: memref<1x784xf32, #tpu.memory_space<vmem>>, %arg4: memref<784x980xf32, #tpu.memory_space<vmem>>, %arg5: memref<1x980xf32, #tpu.memory_space<vmem>>, %arg6: memref<980x128xf32, #tpu.memory_space<vmem>>, %arg7: memref<1x128xf32, #tpu.memory_space<vmem>>, %arg8: memref<8x128xf32, #tpu.memory_space<vmem>>) attributes {dimension_semantics = [#tpu.dimension_semantics<parallel>], iteration_bounds = array<i64: 1>, scalar_prefetch = 0 : i64, scratch_operands = 0 : i64, tpu.core_type = #tpu.core_type<tc>, window_params = [{transform_indices = @transform_0, window_bounds = array<i64: 8, 147>}, {pipeline_mode = #tpu.pipeline_mode<synchronous>, transform_indices = @transform_1, window_bounds = array<i64: 147, 784>}, {pipeline_mode = #tpu.pipeline_mode<synchronous>, transform_indices = @transform_2, window_bounds = array<i64: 1, 784>}, {pipeline_mode = #tpu.pipeline_mode<synchronous>, transform_indices = @transform_3, window_bounds = array<i64: 784, 980>}, {pipeline_mode = #tpu.pipeline_mode<synchronous>, transform_indices = @transform_4, window_bounds = array<i64: 1, 980>}, {pipeline_mode = #tpu.pipeline_mode<synchronous>, transform_indices = @transform_5, window_bounds = array<i64: 980, 128>}, {pipeline_mode = #tpu.pipeline_mode<synchronous>, transform_indices = @transform_6, window_bounds = array<i64: 1, 128>}, {transform_indices = @transform_7, window_bounds = array<i64: 8, 128>}]} {
    %c0 = arith.constant 0 : index
    %c0_0 = arith.constant 0 : index
    %0 = vector.load %arg1[%c0, %c0_0] : memref<8x147xf32, #tpu.memory_space<vmem>>, vector<8x147xf32>
    %c0_1 = arith.constant 0 : index
    %c0_2 = arith.constant 0 : index
    %1 = vector.load %arg2[%c0_1, %c0_2] : memref<147x784xf32, #tpu.memory_space<vmem>>, vector<147x784xf32>
    %cst = arith.constant dense<0.000000e+00> : vector<8x784xf32>
    %2 = tpu.matmul %0, %1, %cst {dimension_numbers = #tpu.dot_dimension_numbers<[1], [0], [0], [1], [0, 0, 1, 1], [], []>} : vector<8x147xf32>, vector<147x784xf32>, vector<8x784xf32> -> vector<8x784xf32>
    %c0_3 = arith.constant 0 : index
    %c0_4 = arith.constant 0 : index
    %3 = vector.load %arg3[%c0_3, %c0_4] : memref<1x784xf32, #tpu.memory_space<vmem>>, vector<1x784xf32>
    %4 = vector.broadcast %3 : vector<1x784xf32> to vector<8x784xf32>
    %5 = arith.addf %2, %4 : vector<8x784xf32>
    %cst_5 = arith.constant 0.000000e+00 : f32
    %6 = vector.broadcast %cst_5 : f32 to vector<8x784xf32>
    %7 = arith.maximumf %5, %6 : vector<8x784xf32>
    %c0_6 = arith.constant 0 : index
    %c0_7 = arith.constant 0 : index
    %8 = vector.load %arg4[%c0_6, %c0_7] : memref<784x980xf32, #tpu.memory_space<vmem>>, vector<784x980xf32>
    %cst_8 = arith.constant dense<0.000000e+00> : vector<8x980xf32>
    %9 = tpu.matmul %7, %8, %cst_8 {dimension_numbers = #tpu.dot_dimension_numbers<[1], [0], [0], [1], [0, 0, 1, 1], [], []>} : vector<8x784xf32>, vector<784x980xf32>, vector<8x980xf32> -> vector<8x980xf32>
    %c0_9 = arith.constant 0 : index
    %c0_10 = arith.constant 0 : index
    %10 = vector.load %arg5[%c0_9, %c0_10] : memref<1x980xf32, #tpu.memory_space<vmem>>, vector<1x980xf32>
    %11 = vector.broadcast %10 : vector<1x980xf32> to vector<8x980xf32>
    %12 = arith.addf %9, %11 : vector<8x980xf32>
    %cst_11 = arith.constant 0.000000e+00 : f32
    %13 = vector.broadcast %cst_11 : f32 to vector<8x980xf32>
    %14 = arith.maximumf %12, %13 : vector<8x980xf32>
    %c0_12 = arith.constant 0 : index
    %c0_13 = arith.constant 0 : index
    %15 = vector.load %arg6[%c0_12, %c0_13] : memref<980x128xf32, #tpu.memory_space<vmem>>, vector<980x128xf32>
    %cst_14 = arith.constant dense<0.000000e+00> : vector<8x128xf32>
    %16 = tpu.matmul %14, %15, %cst_14 {dimension_numbers = #tpu.dot_dimension_numbers<[1], [0], [0], [1], [0, 0, 1, 1], [], []>} : vector<8x980xf32>, vector<980x128xf32>, vector<8x128xf32> -> vector<8x128xf32>
    %c0_15 = arith.constant 0 : index
    %c0_16 = arith.constant 0 : index
    %17 = vector.load %arg7[%c0_15, %c0_16] : memref<1x128xf32, #tpu.memory_space<vmem>>, vector<1x128xf32>
    %18 = vector.broadcast %17 : vector<1x128xf32> to vector<8x128xf32>
    %19 = arith.addf %16, %18 : vector<8x128xf32>
    %cst_17 = arith.constant 0.000000e+00 : f32
    %20 = vector.broadcast %cst_17 : f32 to vector<8x128xf32>
    %21 = arith.maximumf %19, %20 : vector<8x128xf32>
    %c0_18 = arith.constant 0 : index
    %c0_19 = arith.constant 0 : index
    %22 = vector.load %arg8[%c0_18, %c0_19] : memref<8x128xf32, #tpu.memory_space<vmem>>, vector<8x128xf32>
    tpu.vector_store %arg8[%c0_18, %c0_19], %21 {strides = array<i32>} : memref<8x128xf32, #tpu.memory_space<vmem>>, vector<8x128xf32>,
    return
  }
  func.func @transform_0(%arg0: i32) -> (i32, i32) {
    %c0_i32 = arith.constant 0 : i32
    %c0_i32_0 = arith.constant 0 : i32
    return %arg0, %c0_i32 : i32, i32
  }
  func.func @transform_1(%arg0: i32) -> (i32, i32) {
    %c0_i32 = arith.constant 0 : i32
    %c0_i32_0 = arith.constant 0 : i32
    %c0_i32_1 = arith.constant 0 : i32
    return %c0_i32, %c0_i32_0 : i32, i32
  }
  func.func @transform_2(%arg0: i32) -> (i32, i32) {
    %c0_i32 = arith.constant 0 : i32
    %c0_i32_0 = arith.constant 0 : i32
    %c0_i32_1 = arith.constant 0 : i32
    return %c0_i32, %c0_i32_0 : i32, i32
  }
  func.func @transform_3(%arg0: i32) -> (i32, i32) {
    %c0_i32 = arith.constant 0 : i32
    %c0_i32_0 = arith.constant 0 : i32
    %c0_i32_1 = arith.constant 0 : i32
    return %c0_i32, %c0_i32_0 : i32, i32
  }
  func.func @transform_4(%arg0: i32) -> (i32, i32) {
    %c0_i32 = arith.constant 0 : i32
    %c0_i32_0 = arith.constant 0 : i32
    %c0_i32_1 = arith.constant 0 : i32
    return %c0_i32, %c0_i32_0 : i32, i32
  }
  func.func @transform_5(%arg0: i32) -> (i32, i32) {
    %c0_i32 = arith.constant 0 : i32
    %c0_i32_0 = arith.constant 0 : i32
    %c0_i32_1 = arith.constant 0 : i32
    return %c0_i32, %c0_i32_0 : i32, i32
  }
  func.func @transform_6(%arg0: i32) -> (i32, i32) {
    %c0_i32 = arith.constant 0 : i32
    %c0_i32_0 = arith.constant 0 : i32
    %c0_i32_1 = arith.constant 0 : i32
    return %c0_i32, %c0_i32_0 : i32, i32
  }
  func.func @transform_7(%arg0: i32) -> (i32, i32) {
    %c0_i32 = arith.constant 0 : i32
    %c0_i32_0 = arith.constant 0 : i32
    return %arg0, %c0_i32 : i32, i32
  }
}

</mosaic_0001>

<bundles_post_ra>
// kernel: agent_forward.1
= control target key start
LH: loop header
LB: loop body
LE: loop exit
PB: predicated region body
PF: predicated region fallthrough
CT: control target
= control target key end

     0   :  { %12 = vsyncpa [#allocation3], 0  ;;  %s3551_s0 = inlined_call_operand.vmem [shape: f32[8,147], index: 0, kind: input, shape index: {}]   ;;  %s3552_s1 = inlined_call_operand.hbm [shape: f32[147,784], index: 1, kind: input, shape index: {}]   ;;  %s3553_s2 = inlined_call_operand.hbm [shape: f32[1,784], index: 2, kind: input, shape index: {}]   ;;  %s3554_s3 = inlined_call_operand.hbm [shape: f32[784,980], index: 3, kind: input, shape index: {}]   ;;  %s3555_s4 = inlined_call_operand.hbm [shape: f32[1,980], index: 4, kind: input, shape index: {}]   ;;  %s3556_s5 = inlined_call_operand.hbm [shape: f32[980,128], index: 5, kind: input, shape index: {}]   ;;  %s3557_s6 = inlined_call_operand.hbm [shape: f32[1,128], index: 6, kind: input, shape index: {}]   ;;  %s3558_s7 = inlined_call_operand.vmem [shape: f32[8,128], index: 7, kind: output, shape index: {}]  }
   0x1   :  { %13 = vsyncpa [#allocation5], 0 }
   0x2   :  { %14 = vsyncpa [#allocation8], 0 }
   0x3   :  { %15 = vsyncpa [#allocation11], 0  ;;  %s3256_s24 = smov [#allocation4]   ;;  %s3257_s26 = smov [#allocation7]  }
   0x4   :  { %s36_s25 = sshll.u32 %s3256_s24, 4  ;;  %s58_s27 = sshll.u32 %s3257_s26, 4  ;;  %s37_s25 = int_to_ptr.vmem [resolvable:$true] %s36_s25  ;;  %s59_s27 = int_to_ptr.vmem [resolvable:$true] %s58_s27 }
   0x5   :  { %s3136_s28 = scalar_lea.vmem %s37_s25, 112  ;;  %s3140_s29 = scalar_lea.vmem %s37_s25, 128 }
   0x6   :  { %p3137_p0 = scmp.ne.s32.totalorder %s37_s25, %s3136_s28  ;;  %p3141_p1 = scmp.lt.s32.totalorder %s37_s25, %s37_s25 }
   0x7   :  { %p3142_p2 = scmp.lt.s32.totalorder %s3140_s29, %s3136_s28 }
   0x9   :  { %p3143_p3 = por %p3142_p2, %p3141_p1 }
   0xb   :  { %p3144_p4 = pnand %p3143_p3, %p3137_p0 }
   0xd   :  { %3147 = shalt.err (!%p3144_p4)
}
   0xe   :  { %39 = dma.hbm_to_vmem [thread:$0]  %s3553_s2, 112, %s37_s25, [#allocation5]  }
   0xf   :  { %s3156_s9 = scalar_lea.vmem %s59_s27, 128  ;;  %p3161_p6 = scmp.lt.s32.totalorder %s59_s27, %s59_s27 }
  0x10   :  { %p3157_p5 = scmp.ne.s32.totalorder %s59_s27, %s3156_s9  ;;  %p3162_p7 = scmp.lt.s32.totalorder %s3156_s9, %s3156_s9 }
  0x12   :  { %p3163_p8 = por %p3162_p7, %p3161_p6 }
  0x14   :  { %p3164_p9 = pnand %p3163_p8, %p3157_p5 }
  0x16   :  { %3167 = shalt.err (!%p3164_p9)
}
  0x17   :  { %61 = dma.hbm_to_vmem [thread:$0]  %s3555_s4, 128, %s59_s27, [#allocation8]  }
  0x18   :  { %s3258_s12 = smov [#allocation2]  }
  0x19   :  { %s23_s13 = sshll.u32 %s3258_s12, 4  ;;  %s24_s13 = int_to_ptr.vmem [resolvable:$true] %s23_s13 }
  0x1a   :  { %s3176_s14 = scalar_lea.vmem %s24_s13, 17024  ;;  %p3181_p11 = scmp.lt.s32.totalorder %s24_s13, %s24_s13 }
  0x1b   :  { %p3177_p10 = scmp.ne.s32.totalorder %s24_s13, %s3176_s14  ;;  %p3182_p12 = scmp.lt.s32.totalorder %s3176_s14, %s3176_s14 }
  0x1d   :  { %p3183_p13 = por %p3182_p12, %p3181_p11 }
  0x1f   :  { %p3184_p0 = pnand %p3183_p13, %p3177_p10 }
  0x21   :  { %3187 = shalt.err (!%p3184_p0)
}
  0x22   :  { %s3259_s2 = smov 896   ;;  %s3260_s15 = smov 56  }
  0x23   :  { %29 = dma.hbm_to_vmem [thread:$0]  %s3552_s1, 17024, %s24_s13, [#allocation3], %s3259_s2, %s3259_s2, %s3260_s15  }
  0x24   :  { %s3261_s18 = smov [#allocation6]  }
  0x25   :  { %s45_s19 = sshll.u32 %s3261_s18, 4  ;;  %s46_s19 = int_to_ptr.vmem [resolvable:$true] %s45_s19 }
  0x26   :  { %s3196_s4 = scalar_lea.vmem %s46_s19, 100352  ;;  %p3201_p2 = scmp.lt.s32.totalorder %s46_s19, %s46_s19 }
  0x27   :  { %p3197_p1 = scmp.ne.s32.totalorder %s46_s19, %s3196_s4  ;;  %p3202_p3 = scmp.lt.s32.totalorder %s3196_s4, %s3196_s4 }
  0x29   :  { %p3203_p4 = por %p3202_p3, %p3201_p2 }
  0x2b   :  { %p3204_p5 = pnand %p3203_p4, %p3197_p1 }
  0x2d   :  { %3207 = shalt.err (!%p3204_p5)
}
  0x2e   :  { %s3262_s20 = smov 1024   ;;  %s3263_s21 = smov 64  }
  0x2f   :  { %51 = dma.hbm_to_vmem [thread:$0]  %s3554_s3, 100352, %s46_s19, [#allocation5], %s3262_s20, %s3262_s20, %s3263_s21  }
  0x30   :  { %s3264_s24 = smov [#allocation9]  }
  0x31   :  { %s67_s25 = sshll.u32 %s3264_s24, 4  ;;  %s68_s25 = int_to_ptr.vmem [resolvable:$true] %s67_s25 }
  0x32   :  { %s3216_s1 = scalar_lea.vmem %s68_s25, 15744  ;;  %p3221_p7 = scmp.lt.s32.totalorder %s68_s25, %s68_s25 }
  0x33   :  { %p3217_p6 = scmp.ne.s32.totalorder %s68_s25, %s3216_s1  ;;  %p3222_p8 = scmp.lt.s32.totalorder %s3216_s1, %s3216_s1 }
  0x35   :  { %p3223_p9 = por %p3222_p8, %p3221_p7 }
  0x37   :  { %p3224_p10 = pnand %p3223_p9, %p3217_p6 }
  0x39   :  { %3227 = shalt.err (!%p3224_p10)
}
  0x3a   :  { %s3265_s26 = smov 128   ;;  %s3266_s27 = smov 8  }
  0x3b   :  { %73 = dma.hbm_to_vmem [thread:$0]  %s3556_s5, 15744, %s68_s25, [#allocation8], %s3265_s26, %s3265_s26, %s3266_s27  }
  0x3c   :  { %s3267_s30 = smov [#allocation10]  }
  0x3d   :  { %s80_s8 = sshll.u32 %s3267_s30, 4  ;;  %s81_s8 = int_to_ptr.vmem [resolvable:$true] %s80_s8 }
  0x3e   :  { %s3236_s3 = scalar_lea.vmem %s81_s8, 16  ;;  %s3240_s9 = scalar_lea.vmem %s81_s8, 32 }
  0x3f   :  { %p3237_p11 = scmp.ne.s32.totalorder %s81_s8, %s3236_s3  ;;  %p3241_p12 = scmp.lt.s32.totalorder %s81_s8, %s81_s8 }
  0x40   :  { %p3242_p13 = scmp.lt.s32.totalorder %s3240_s9, %s3236_s3 }
  0x42   :  { %p3243_p0 = por %p3242_p13, %p3241_p12 }
  0x44   :  { %p3244_p1 = pnand %p3243_p0, %p3237_p11 }
  0x46   :  { %3247 = shalt.err (!%p3244_p1)
}
  0x47   :  { %83 = dma.hbm_to_vmem [thread:$0]  %s3557_s6, 16, %s81_s8, [#allocation11]  }
  0x48   :  { %3248 = dma.done.wait [#allocation3], 17024  }
  0x49   :  { %3249 = vsyncadd [#allocation3], 4294950272 }
  0x4a   :  { %3250 = dma.done.wait [#allocation5], 100464  }
  0x4b   :  { %3251 = vsyncadd [#allocation5], 4294866832 }
  0x4c   :  { %3252 = dma.done.wait [#allocation8], 15872  }
  0x4d   :  { %3253 = vsyncadd [#allocation8], 4294951424 }
  0x4e   :  { %3254 = dma.done.wait [#allocation11], 16  }
  0x4f   :  { %3255 = vsyncadd [#allocation11], 4294967280  ;;  %v210_v0 = vld [vmem:[#allocation2 + $0x350] sm:$0xff]  ;;  %v212_v1 = vld [vmem:[#allocation2 + $0x360] sm:$0xff]  ;;  %vm278_vm0 = vcmask 1042432   ;;  %vm274_vm1 = vcmask 154624  }
  0x50   :  { %v209_v2 = vld [vmem:[#allocation2 + $0x348] sm:$0xff]  ;;  %300 = vmatprep.subr.mxu0 %v210_v0  ;;  %371 = vmatprep.subr.mxu1 %v212_v1  ;;  %v211_v3 = vld [vmem:[#allocation2 + $0x358] sm:$0xff]  ;;  %v202_v6 = vld [vmem:[#allocation2 + $0x310] sm:$0xff]  ;;  %vm1416_vm2 = vcmask 130048   ;;  %vm2698_vm3 = vcmask 1043456   ;;  %vm2694_vm4 = vcmask 687104  }
  0x51   :  { %v203_v4 = vld [vmem:[#allocation2 + $0x318] sm:$0xff]  ;;  %v205_v5 = vld [vmem:[#allocation2 + $0x328] sm:$0xff]  ;;  %301 = vmatpush1.msra.mxu0 %v209_v2  ;;  %372 = vmatpush1.msra.mxu1 %v211_v3  ;;  %v204_v7 = vld [vmem:[#allocation2 + $0x320] sm:$0xff] }
  0x52   :  { %v196_v8 = vld [vmem:[#allocation2 + $0x2e0] sm:$0xff]  ;;  %302 = vmatprep.subr.mxu0 %v203_v4  ;;  %373 = vmatprep.subr.mxu1 %v205_v5  ;;  %v198_v9 = vld [vmem:[#allocation2 + $0x2f0] sm:$0xff]  ;;  %v195_v10 = vld [vmem:[#allocation2 + $0x2d8] sm:$0xff] }
  0x53   :  { %v197_v11 = vld [vmem:[#allocation2 + $0x2e8] sm:$0xff]  ;;  %303 = vmatpush1.msra.mxu0 %v202_v6  ;;  %374 = vmatpush1.msra.mxu1 %v204_v7  ;;  %v191_v13 = vld [vmem:[#allocation2 + $0x2b8] sm:$0xff]  ;;  %v188_v14 = vld [vmem:[#allocation2 + $0x2a0] sm:$0xff] }
  0x54   :  { %v189_v12 = vld [vmem:[#allocation2 + $0x2a8] sm:$0xff]  ;;  %304 = vmatprep.subr.mxu0 %v196_v8  ;;  %375 = vmatprep.subr.mxu1 %v198_v9  ;;  %v190_v15 = vld [vmem:[#allocation2 + $0x2b0] sm:$0xff]  ;;  %v184_v17 = vld [vmem:[#allocation2 + $0x280] sm:$0xff] }
  0x55   :  { %305 = vmatpush1.msra.mxu0 %v195_v10  ;;  %376 = vmatpush1.msra.mxu1 %v197_v11  ;;  %v182_v16 = vld [vmem:[#allocation2 + $0x270] sm:$0xff]  ;;  %v181_v18 = vld [vmem:[#allocation2 + $0x268] sm:$0xff]  ;;  %v183_v19 = vld [vmem:[#allocation2 + $0x278] sm:$0xff] }
  0x56   :  { %306 = vmatprep.subr.mxu0 %v189_v12  ;;  %377 = vmatprep.subr.mxu1 %v191_v13  ;;  %v175_v20 = vld [vmem:[#allocation2 + $0x238] sm:$0xff]  ;;  %v177_v21 = vld [vmem:[#allocation2 + $0x248] sm:$0xff]  ;;  %v174_v22 = vld [vmem:[#allocation2 + $0x230] sm:$0xff] }
  0x57   :  { %307 = vmatpush1.msra.mxu0 %v188_v14  ;;  %378 = vmatpush1.msra.mxu1 %v190_v15  ;;  %v176_v23 = vld [vmem:[#allocation2 + $0x240] sm:$0xff]  ;;  %v170_v25 = vld [vmem:[#allocation2 + $0x210] sm:$0xff]  ;;  %v167_v26 = vld [vmem:[#allocation2 + $0x1f8] sm:$0xff] }
  0x58   :  { %308 = vmatprep.subr.mxu0 %v182_v16  ;;  %379 = vmatprep.subr.mxu1 %v184_v17  ;;  %v168_v24 = vld [vmem:[#allocation2 + $0x200] sm:$0xff]  ;;  %v169_v27 = vld [vmem:[#allocation2 + $0x208] sm:$0xff]  ;;  %v163_v29 = vld [vmem:[#allocation2 + $0x1d8] sm:$0xff] }
  0x59   :  { %309 = vmatpush1.msra.mxu0 %v181_v18  ;;  %380 = vmatpush1.msra.mxu1 %v183_v19  ;;  %v161_v28 = vld [vmem:[#allocation2 + $0x1c8] sm:$0xff]  ;;  %v160_v30 = vld [vmem:[#allocation2 + $0x1c0] sm:$0xff]  ;;  %v162_v31 = vld [vmem:[#allocation2 + $0x1d0] sm:$0xff]  ;;  %v3268_v19 = vmov 0.0  }
  0x5a   :  { %310 = vmatprep.subr.mxu0 %v175_v20  ;;  %381 = vmatprep.subr.mxu1 %v177_v21  ;;  %v154_v32 = vld [vmem:[#allocation2 + $0x190] sm:$0xff]  ;;  %v156_v33 = vld [vmem:[#allocation2 + $0x1a0] sm:$0xff]  ;;  %v153_v34 = vld [vmem:[#allocation2 + $0x188] sm:$0xff] }
  0x5b   :  { %311 = vmatpush1.msra.mxu0 %v174_v22  ;;  %382 = vmatpush1.msra.mxu1 %v176_v23  ;;  %v155_v35 = vld [vmem:[#allocation2 + $0x198] sm:$0xff]  ;;  %v149_v37 = vld [vmem:[#allocation2 + $0x168] sm:$0xff]  ;;  %v146_v38 = vld [vmem:[#allocation2 + $0x150] sm:$0xff] }
  0x5c   :  { %312 = vmatprep.subr.mxu0 %v168_v24  ;;  %383 = vmatprep.subr.mxu1 %v170_v25  ;;  %v147_v36 = vld [vmem:[#allocation2 + $0x158] sm:$0xff]  ;;  %v148_v39 = vld [vmem:[#allocation2 + $0x160] sm:$0xff]  ;;  %v142_v41 = vld [vmem:[#allocation2 + $0x130] sm:$0xff] }
  0x5d   :  { %313 = vmatpush1.msra.mxu0 %v167_v26  ;;  %384 = vmatpush1.msra.mxu1 %v169_v27  ;;  %v140_v40 = vld [vmem:[#allocation2 + $0x120] sm:$0xff]  ;;  %v139_v42 = vld [vmem:[#allocation2 + $0x118] sm:$0xff]  ;;  %v141_v43 = vld [vmem:[#allocation2 + $0x128] sm:$0xff] }
  0x5e   :  { %314 = vmatprep.subr.mxu0 %v161_v28  ;;  %385 = vmatprep.subr.mxu1 %v163_v29  ;;  %v133_v44 = vld [vmem:[#allocation2 + $0xe8] sm:$0xff]  ;;  %v135_v45 = vld [vmem:[#allocation2 + $0xf8] sm:$0xff]  ;;  %v132_v46 = vld [vmem:[#allocation2 + $0xe0] sm:$0xff] }
  0x5f   :  { %315 = vmatpush1.msra.mxu0 %v160_v30  ;;  %386 = vmatpush1.msra.mxu1 %v162_v31  ;;  %v134_v47 = vld [vmem:[#allocation2 + $0xf0] sm:$0xff]  ;;  %v128_v49 = vld [vmem:[#allocation2 + $0xc0] sm:$0xff]  ;;  %v125_v50 = vld [vmem:[#allocation2 + $0xa8] sm:$0xff] }
  0x60   :  { %316 = vmatprep.subr.mxu0 %v154_v32  ;;  %387 = vmatprep.subr.mxu1 %v156_v33  ;;  %v126_v48 = vld [vmem:[#allocation2 + $0xb0] sm:$0xff]  ;;  %v127_v51 = vld [vmem:[#allocation2 + $0xb8] sm:$0xff]  ;;  %v121_v53 = vld [vmem:[#allocation2 + $0x88] sm:$0xff] }
  0x61   :  { %317 = vmatpush1.msra.mxu0 %v153_v34  ;;  %388 = vmatpush1.msra.mxu1 %v155_v35  ;;  %v119_v52 = vld [vmem:[#allocation2 + $0x78] sm:$0xff]  ;;  %v118_v54 = vld [vmem:[#allocation2 + $0x70] sm:$0xff]  ;;  %v120_v55 = vld [vmem:[#allocation2 + $0x80] sm:$0xff] }
  0x62   :  { %318 = vmatprep.subr.mxu0 %v147_v36  ;;  %389 = vmatprep.subr.mxu1 %v149_v37  ;;  %v112_v56 = vld [vmem:[#allocation2 + $0x40] sm:$0xff]  ;;  %v114_v57 = vld [vmem:[#allocation2 + $0x50] sm:$0xff]  ;;  %v111_v58 = vld [vmem:[#allocation2 + $0x38] sm:$0xff] }
  0x63   :  { %319 = vmatpush1.msra.mxu0 %v146_v38  ;;  %390 = vmatpush1.msra.mxu1 %v148_v39  ;;  %v113_v59 = vld [vmem:[#allocation2 + $0x48] sm:$0xff]  ;;  %v107_v61 = vld [vmem:[#allocation2 + $0x18] sm:$0xff]  ;;  %v104_v62 = vld [vmem:[#allocation2] sm:$0xff] }
  0x64   :  { %320 = vmatprep.subr.mxu0 %v140_v40  ;;  %391 = vmatprep.subr.mxu1 %v142_v41  ;;  %v105_v60 = vld [vmem:[#allocation2 + $0x8] sm:$0xff]  ;;  %v106_v63 = vld [vmem:[#allocation2 + $0x10] sm:$0xff]  ;;  %v231_v0 = vld [vmem:[#allocation2 + $0x3f8] sm:$0x7] }
  0x65   :  { %321 = vmatpush1.msra.mxu0 %v139_v42  ;;  %392 = vmatpush1.msra.mxu1 %v141_v43  ;;  %v233_v1 = vld [vmem:[#allocation2 + $0x408] sm:$0x7]  ;;  %v230_v2 = vld [vmem:[#allocation2 + $0x3f0] sm:$0x7]  ;;  %v232_v3 = vld [vmem:[#allocation2 + $0x400] sm:$0x7] }
  0x66   :  { %322 = vmatprep.subr.mxu0 %v133_v44  ;;  %393 = vmatprep.subr.mxu1 %v135_v45  ;;  %v224_v4 = vld [vmem:[#allocation2 + $0x3c0] sm:$0xff]  ;;  %v226_v5 = vld [vmem:[#allocation2 + $0x3d0] sm:$0xff]  ;;  %v223_v6 = vld [vmem:[#allocation2 + $0x3b8] sm:$0xff] }
  0x67   :  { %323 = vmatpush1.msra.mxu0 %v132_v46  ;;  %394 = vmatpush1.msra.mxu1 %v134_v47  ;;  %v225_v7 = vld [vmem:[#allocation2 + $0x3c8] sm:$0xff]  ;;  %v219_v9 = vld [vmem:[#allocation2 + $0x398] sm:$0xff]  ;;  %v216_v10 = vld [vmem:[#allocation2 + $0x380] sm:$0xff] }
  0x68   :  { %324 = vmatprep.subr.mxu0 %v126_v48  ;;  %395 = vmatprep.subr.mxu1 %v128_v49  ;;  %v217_v8 = vld [vmem:[#allocation2 + $0x388] sm:$0xff]  ;;  %v218_v12 = vld [vmem:[#allocation2 + $0x390] sm:$0xff]  ;;  %v3339_v13 = vld [vmem:[%s3551_s0] sm:$0xff] }
  0x69   :  { %325 = vmatpush1.msra.mxu0 %v125_v50  ;;  %396 = vmatpush1.msra.mxu1 %v127_v51  ;;  %v3334_v11 = vld [vmem:[%s3551_s0 + $0x8] sm:$0xff]  ;;  %v214_v14 = vld [vmem:[#allocation2 + $0x370] sm:$0xff]  ;;  %v215_v16 = vld [vmem:[#allocation2 + $0x378] sm:$0xff] }
  0x6a   :  { %326 = vmatprep.subr.mxu0 %v119_v52  ;;  %397 = vmatprep.subr.mxu1 %v121_v53  ;;  %v213_v15 = vld [vmem:[#allocation2 + $0x368] sm:$0xff]  ;;  %v207_v17 = vld [vmem:[#allocation2 + $0x338] sm:$0xff]  ;;  %v206_v18 = vld [vmem:[#allocation2 + $0x330] sm:$0xff] }
  0x6b   :  { %327 = vmatpush1.msra.mxu0 %v118_v54  ;;  %398 = vmatpush1.msra.mxu1 %v120_v55  ;;  %v208_v20 = vld [vmem:[#allocation2 + $0x340] sm:$0xff]  ;;  %v199_v22 = vld [vmem:[#allocation2 + $0x2f8] sm:$0xff]  ;;  %v201_v23 = vld [vmem:[#allocation2 + $0x308] sm:$0xff] }
  0x6c   :  { %328 = vmatprep.subr.mxu0 %v112_v56  ;;  %399 = vmatprep.subr.mxu1 %v114_v57  ;;  %v200_v21 = vld [vmem:[#allocation2 + $0x300] sm:$0xff]  ;;  %v193_v24 = vld [vmem:[#allocation2 + $0x2c8] sm:$0xff]  ;;  %v194_v26 = vld [vmem:[#allocation2 + $0x2d0] sm:$0xff] }
  0x6d   :  { %329 = vmatpush1.msra.mxu0 %v111_v58  ;;  %400 = vmatpush1.msra.mxu1 %v113_v59  ;;  %v192_v25 = vld [vmem:[#allocation2 + $0x2c0] sm:$0xff]  ;;  %v186_v27 = vld [vmem:[#allocation2 + $0x290] sm:$0xff]  ;;  %v185_v28 = vld [vmem:[#allocation2 + $0x288] sm:$0xff] }
  0x6e   :  { %330 = vmatprep.subr.mxu0 %v105_v60  ;;  %401 = vmatprep.subr.mxu1 %v107_v61  ;;  %v187_v29 = vld [vmem:[#allocation2 + $0x298] sm:$0xff]  ;;  %v178_v31 = vld [vmem:[#allocation2 + $0x250] sm:$0xff]  ;;  %v180_v32 = vld [vmem:[#allocation2 + $0x260] sm:$0xff] }
  0x6f   :  { %331 = vmatpush1.msra.mxu0 %v104_v62  ;;  %402 = vmatpush1.msra.mxu1 %v106_v63  ;;  %v179_v30 = vld [vmem:[#allocation2 + $0x258] sm:$0xff]  ;;  %v172_v33 = vld [vmem:[#allocation2 + $0x220] sm:$0xff]  ;;  %v173_v35 = vld [vmem:[#allocation2 + $0x228] sm:$0xff] }
  0x70   :  { %2992 = vmatprep.subr.msk.mxu0 %vm278_vm0, %v231_v0  ;;  %2995 = vmatprep.subr.msk.mxu1 %vm278_vm0, %v233_v1  ;;  %v171_v34 = vld [vmem:[#allocation2 + $0x218] sm:$0xff]  ;;  %v165_v36 = vld [vmem:[#allocation2 + $0x1e8] sm:$0xff]  ;;  %v164_v37 = vld [vmem:[#allocation2 + $0x1e0] sm:$0xff] }
  0x71   :  { %2993 = vmatpush2.msk.msra.mxu0 %vm278_vm0, %v230_v2  ;;  %2996 = vmatpush2.msk.msra.mxu1 %vm278_vm0, %v232_v3  ;;  %v166_v38 = vld [vmem:[#allocation2 + $0x1f0] sm:$0xff]  ;;  %v157_v40 = vld [vmem:[#allocation2 + $0x1a8] sm:$0xff]  ;;  %v159_v41 = vld [vmem:[#allocation2 + $0x1b8] sm:$0xff] }
  0x72   :  { %360 = vmatprep.subr.mxu0 %v224_v4  ;;  %431 = vmatprep.subr.mxu1 %v226_v5  ;;  %v158_v39 = vld [vmem:[#allocation2 + $0x1b0] sm:$0xff]  ;;  %v151_v42 = vld [vmem:[#allocation2 + $0x178] sm:$0xff]  ;;  %v152_v44 = vld [vmem:[#allocation2 + $0x180] sm:$0xff] }
  0x73   :  { %361 = vmatpush2.msra.mxu0 %v223_v6  ;;  %432 = vmatpush2.msra.mxu1 %v225_v7  ;;  %v150_v43 = vld [vmem:[#allocation2 + $0x170] sm:$0xff]  ;;  %v144_v45 = vld [vmem:[#allocation2 + $0x140] sm:$0xff]  ;;  %v143_v46 = vld [vmem:[#allocation2 + $0x138] sm:$0xff] }
  0x74   :  { %362 = vmatprep.subr.mxu0 %v217_v8  ;;  %433 = vmatprep.subr.mxu1 %v219_v9  ;;  %v145_v47 = vld [vmem:[#allocation2 + $0x148] sm:$0xff]  ;;  %v136_v49 = vld [vmem:[#allocation2 + $0x100] sm:$0xff]  ;;  %v138_v50 = vld [vmem:[#allocation2 + $0x110] sm:$0xff] }
  0x75   :  { %363 = vmatpush2.msra.mxu0 %v216_v10  ;;  %2994 = vmatprep.mubr.msk.f32.mxu0 %vm274_vm1, %v3334_v11  ;;  %v137_v48 = vld [vmem:[#allocation2 + $0x108] sm:$0xff]  ;;  %v130_v51 = vld [vmem:[#allocation2 + $0xd0] sm:$0xff]  ;;  %v131_v53 = vld [vmem:[#allocation2 + $0xd8] sm:$0xff] }
  0x76   :  { %434 = vmatpush2.msra.mxu1 %v218_v12  ;;  %2997 = vmatprep.mubr.msk.f32.mxu1 %vm274_vm1, %v3334_v11  ;;  %v129_v52 = vld [vmem:[#allocation2 + $0xc8] sm:$0xff]  ;;  %v123_v54 = vld [vmem:[#allocation2 + $0x98] sm:$0xff]  ;;  %v122_v55 = vld [vmem:[#allocation2 + $0x90] sm:$0xff] }
  0x77   :  { %365 = vmatmul.mubr.f32.vlgmr.msra.gmra.mxu0 %v3339_v13  ;;  %436 = vmatmul.mubr.f32.vlgmr.msra.gmra.mxu1 %v3339_v13  ;;  %v124_v56 = vld [vmem:[#allocation2 + $0xa0] sm:$0xff]  ;;  %v115_v58 = vld [vmem:[#allocation2 + $0x58] sm:$0xff]  ;;  %v117_v59 = vld [vmem:[#allocation2 + $0x68] sm:$0xff] }
  0x78   :  { %442 = vmatprep.subr.mxu0 %v214_v14  ;;  %513 = vmatprep.subr.mxu1 %v3268_v19  ;;  %v116_v57 = vld [vmem:[#allocation2 + $0x60] sm:$0xff]  ;;  %v109_v60 = vld [vmem:[#allocation2 + $0x28] sm:$0xff]  ;;  %v235_v62 = vld [vmem:[#allocation2 + $0x418] sm:$0x7] }
  0x79   :  { %443 = vmatpush1.msra.mxu0 %v213_v15  ;;  %514 = vmatpush1.msra.mxu1 %v215_v16  ;;  %v108_v61 = vld [vmem:[#allocation2 + $0x20] sm:$0xff]  ;;  %v110_v63 = vld [vmem:[#allocation2 + $0x30] sm:$0xff]  ;;  %v227_v3 = vld [vmem:[#allocation2 + $0x3d8] sm:$0xff] }
  0x7a   :  { %444 = vmatprep.subr.mxu0 %v207_v17  ;;  %515 = vmatprep.subr.mxu1 %v3268_v19  ;;  %v234_v0 = vld [vmem:[#allocation2 + $0x410] sm:$0x7]  ;;  %v228_v1 = vld [vmem:[#allocation2 + $0x3e0] sm:$0xff]  ;;  %v221_v4 = vld [vmem:[#allocation2 + $0x3a8] sm:$0xff] }
  0x7b   :  { %445 = vmatpush1.msra.mxu0 %v206_v18  ;;  %516 = vmatpush1.msra.mxu1 %v208_v20  ;;  %v236_v2 = vld [vmem:[#allocation2 + $0x420] sm:$0x7]  ;;  %v229_v5 = vld [vmem:[#allocation2 + $0x3e8] sm:$0xff]  ;;  %v222_v7 = vld [vmem:[#allocation2 + $0x3b0] sm:$0xff] }
  0x7c   :  { %446 = vmatprep.subr.mxu0 %v200_v21  ;;  %517 = vmatprep.subr.mxu1 %v3268_v19  ;;  %v220_v6 = vld [vmem:[#allocation2 + $0x3a0] sm:$0xff]  ;;  %v711_v8 = vld [vmem:[#allocation6 + $0x3c8] sm:$0xff]  ;;  %v710_v10 = vld [vmem:[#allocation6 + $0x3c0] sm:$0xff] }
  0x7d   :  { %447 = vmatpush1.msra.mxu0 %v199_v22  ;;  %518 = vmatpush1.msra.mxu1 %v201_v23  ;;  %v967_v9 = vld [vmem:[#allocation6 + $0xbc8] sm:$0xff]  ;;  %v966_v12 = vld [vmem:[#allocation6 + $0xbc0] sm:$0xff] }
  0x7e   :  { %448 = vmatprep.subr.mxu0 %v193_v24  ;;  %519 = vmatprep.subr.mxu1 %v3268_v19  ;;  %v703_v14 = vld [vmem:[#allocation6 + $0x388] sm:$0xff]  ;;  %v702_v16 = vld [vmem:[#allocation6 + $0x380] sm:$0xff] }
  0x7f   :  { %449 = vmatpush1.msra.mxu0 %v192_v25  ;;  %520 = vmatpush1.msra.mxu1 %v194_v26  ;;  %v959_v15 = vld [vmem:[#allocation6 + $0xb88] sm:$0xff]  ;;  %v958_v17 = vld [vmem:[#allocation6 + $0xb80] sm:$0xff] }
  0x80   :  { %450 = vmatprep.subr.mxu0 %v186_v27  ;;  %521 = vmatprep.subr.mxu1 %v3268_v19  ;;  %v695_v18 = vld [vmem:[#allocation6 + $0x348] sm:$0xff]  ;;  %v694_v21 = vld [vmem:[#allocation6 + $0x340] sm:$0xff] }
  0x81   :  { %451 = vmatpush1.msra.mxu0 %v185_v28  ;;  %522 = vmatpush1.msra.mxu1 %v187_v29  ;;  %v951_v20 = vld [vmem:[#allocation6 + $0xb48] sm:$0xff]  ;;  %v950_v22 = vld [vmem:[#allocation6 + $0xb40] sm:$0xff] }
  0x82   :  { %452 = vmatprep.subr.mxu0 %v179_v30  ;;  %523 = vmatprep.subr.mxu1 %v3268_v19  ;;  %v687_v23 = vld [vmem:[#allocation6 + $0x308] sm:$0xff]  ;;  %v686_v24 = vld [vmem:[#allocation6 + $0x300] sm:$0xff] }
  0x83   :  { %453 = vmatpush1.msra.mxu0 %v178_v31  ;;  %524 = vmatpush1.msra.mxu1 %v180_v32  ;;  %v942_v25 = vld [vmem:[#allocation6 + $0xb00] sm:$0xff]  ;;  %v935_v26 = vld [vmem:[#allocation6 + $0xac8] sm:$0xff] }
  0x84   :  { %454 = vmatprep.subr.mxu0 %v172_v33  ;;  %525 = vmatprep.subr.mxu1 %v3268_v19  ;;  %v678_v27 = vld [vmem:[#allocation6 + $0x2c0] sm:$0xff]  ;;  %v671_v29 = vld [vmem:[#allocation6 + $0x288] sm:$0xff] }
  0x85   :  { %455 = vmatpush1.msra.mxu0 %v171_v34  ;;  %526 = vmatpush1.msra.mxu1 %v173_v35  ;;  %v934_v28 = vld [vmem:[#allocation6 + $0xac0] sm:$0xff]  ;;  %v927_v30 = vld [vmem:[#allocation6 + $0xa88] sm:$0xff] }
  0x86   :  { %456 = vmatprep.subr.mxu0 %v165_v36  ;;  %527 = vmatprep.subr.mxu1 %v3268_v19  ;;  %v670_v31 = vld [vmem:[#allocation6 + $0x280] sm:$0xff]  ;;  %v663_v33 = vld [vmem:[#allocation6 + $0x248] sm:$0xff] }
  0x87   :  { %457 = vmatpush1.msra.mxu0 %v164_v37  ;;  %528 = vmatpush1.msra.mxu1 %v166_v38  ;;  %v926_v32 = vld [vmem:[#allocation6 + $0xa80] sm:$0xff]  ;;  %v919_v34 = vld [vmem:[#allocation6 + $0xa48] sm:$0xff] }
  0x88   :  { %458 = vmatprep.subr.mxu0 %v158_v39  ;;  %529 = vmatprep.subr.mxu1 %v3268_v19  ;;  %v662_v35 = vld [vmem:[#allocation6 + $0x240] sm:$0xff]  ;;  %v655_v37 = vld [vmem:[#allocation6 + $0x208] sm:$0xff] }
  0x89   :  { %459 = vmatpush1.msra.mxu0 %v157_v40  ;;  %530 = vmatpush1.msra.mxu1 %v159_v41  ;;  %v918_v36 = vld [vmem:[#allocation6 + $0xa40] sm:$0xff]  ;;  %v911_v38 = vld [vmem:[#allocation6 + $0xa08] sm:$0xff] }
  0x8a   :  { %460 = vmatprep.subr.mxu0 %v151_v42  ;;  %531 = vmatprep.subr.mxu1 %v3268_v19  ;;  %v654_v39 = vld [vmem:[#allocation6 + $0x200] sm:$0xff]  ;;  %v647_v41 = vld [vmem:[#allocation6 + $0x1c8] sm:$0xff] }
  0x8b   :  { %461 = vmatpush1.msra.mxu0 %v150_v43  ;;  %532 = vmatpush1.msra.mxu1 %v152_v44  ;;  %v910_v40 = vld [vmem:[#allocation6 + $0xa00] sm:$0xff]  ;;  %v903_v42 = vld [vmem:[#allocation6 + $0x9c8] sm:$0xff] }
  0x8c   :  { %462 = vmatprep.subr.mxu0 %v144_v45  ;;  %533 = vmatprep.subr.mxu1 %v3268_v19  ;;  %v646_v43 = vld [vmem:[#allocation6 + $0x1c0] sm:$0xff]  ;;  %v639_v45 = vld [vmem:[#allocation6 + $0x188] sm:$0xff] }
  0x8d   :  { %463 = vmatpush1.msra.mxu0 %v143_v46  ;;  %534 = vmatpush1.msra.mxu1 %v145_v47  ;;  %v902_v44 = vld [vmem:[#allocation6 + $0x9c0] sm:$0xff]  ;;  %v895_v46 = vld [vmem:[#allocation6 + $0x988] sm:$0xff] }
  0x8e   :  { %464 = vmatprep.subr.mxu0 %v137_v48  ;;  %535 = vmatprep.subr.mxu1 %v3268_v19  ;;  %v638_v47 = vld [vmem:[#allocation6 + $0x180] sm:$0xff] }
  0x8f   :  { %465 = vmatpush1.msra.mxu0 %v136_v49  ;;  %536 = vmatpush1.msra.mxu1 %v138_v50  ;;  %v894_v48 = vld [vmem:[#allocation6 + $0x980] sm:$0xff]  ;;  %v631_v49 = vld [vmem:[#allocation6 + $0x148] sm:$0xff] }
  0x90   :  { %466 = vmatprep.subr.mxu0 %v130_v51  ;;  %537 = vmatprep.subr.mxu1 %v3268_v19  ;;  %v887_v50 = vld [vmem:[#allocation6 + $0x948] sm:$0xff]  ;;  %v630_v51 = vld [vmem:[#allocation6 + $0x140] sm:$0xff] }
  0x91   :  { %467 = vmatpush1.msra.mxu0 %v129_v52  ;;  %538 = vmatpush1.msra.mxu1 %v131_v53  ;;  %v886_v52 = vld [vmem:[#allocation6 + $0x940] sm:$0xff]  ;;  %v623_v53 = vld [vmem:[#allocation6 + $0x108] sm:$0xff] }
  0x92   :  { %468 = vmatprep.subr.mxu0 %v123_v54  ;;  %539 = vmatprep.subr.mxu1 %v3268_v19  ;;  %v879_v54 = vld [vmem:[#allocation6 + $0x908] sm:$0xff] }
  0x93   :  { %469 = vmatpush1.msra.mxu0 %v122_v55  ;;  %540 = vmatpush1.msra.mxu1 %v124_v56  ;;  %v622_v55 = vld [vmem:[#allocation6 + $0x100] sm:$0xff] }
  0x94   :  { %470 = vmatprep.subr.mxu0 %v116_v57  ;;  %541 = vmatprep.subr.mxu1 %v3268_v19  ;;  %v878_v56 = vld [vmem:[#allocation6 + $0x900] sm:$0xff]  ;;  %v615_v57 = vld [vmem:[#allocation6 + $0xc8] sm:$0xff] }
  0x95   :  { %471 = vmatpush1.msra.mxu0 %v115_v58  ;;  %542 = vmatpush1.msra.mxu1 %v117_v59  ;;  %v871_v58 = vld [vmem:[#allocation6 + $0x8c8] sm:$0xff]  ;;  %v614_v59 = vld [vmem:[#allocation6 + $0xc0] sm:$0xff] }
  0x96   :  { %472 = vmatprep.subr.mxu0 %v109_v60  ;;  %3000 = vmatprep.mubr.msk.f32.mxu0 %vm274_vm1, %v3334_v11  ;;  %v870_v60 = vld [vmem:[#allocation6 + $0x8c0] sm:$0xff] }
  0x97   :  { %473 = vmatpush1.msra.mxu0 %v108_v61  ;;  %543 = vmatprep.subr.mxu1 %v3268_v19  ;;  %v607_v61 = vld [vmem:[#allocation6 + $0x88] sm:$0xff] }
  0x98   :  { %2998 = vmatprep.subr.msk.mxu0 %vm278_vm0, %v235_v62  ;;  %544 = vmatpush1.msra.mxu1 %v110_v63  ;;  %v863_v62 = vld [vmem:[#allocation6 + $0x888] sm:$0xff]  ;;  %v606_v63 = vld [vmem:[#allocation6 + $0x80] sm:$0xff] }
  0x99   :  { %2999 = vmatpush2.msk.msra.mxu0 %vm278_vm0, %v234_v0  ;;  %571 = vmatprep.subr.mxu1 %v3268_v19  ;;  %v862_v0 = vld [vmem:[#allocation6 + $0x880] sm:$0xff] }
  0x9a   :  { %502 = vmatprep.subr.mxu0 %v228_v1  ;;  %3001 = vmatpush2.msk.msra.mxu1 %vm278_vm0, %v236_v2  ;;  %v599_v1 = vld [vmem:[#allocation6 + $0x48] sm:$0xff] }
  0x9b   :  { %503 = vmatpush2.msra.mxu0 %v227_v3  ;;  %573 = vmatprep.subr.mxu1 %v3268_v19  ;;  %v855_v2 = vld [vmem:[#allocation6 + $0x848] sm:$0xff]  ;;  %v598_v3 = vld [vmem:[#allocation6 + $0x40] sm:$0xff] }
  0x9c   :  { %504 = vmatprep.subr.mxu0 %v221_v4  ;;  %574 = vmatpush2.msra.mxu1 %v229_v5  ;;  %v854_v4 = vld [vmem:[#allocation6 + $0x840] sm:$0xff]  ;;  %v591_v5 = vld [vmem:[#allocation6 + $0x8] sm:$0xff] }
  0x9d   :  { %505 = vmatpush2.msra.mxu0 %v220_v6  ;;  %575 = vmatprep.subr.mxu1 %v3268_v19  ;;  %v847_v6 = vld [vmem:[#allocation6 + $0x808] sm:$0xff] }
  0x9e   :  { %507 = vmatmul.mubr.f32.vlgmr.msra.gmra.mxu0 %v3339_v13  ;;  %576 = vmatpush2.msra.mxu1 %v222_v7  ;;  %v590_v7 = vld [vmem:[#allocation6] sm:$0xff] }
  0x9f   :  { %3002 = vmatprep.mubr.msk.f32.mxu1 %vm274_vm1, %v3334_v11  ;;  %1420 = vmatprep.subr.mxu0 %v711_v8  ;;  %v943_v11 = vld [vmem:[#allocation6 + $0xb08] sm:$0xff]  ;;  %v846_v8 = vld [vmem:[#allocation6 + $0x800] sm:$0xff] }
  0xa0   :  { %578 = vmatmul.mubr.f32.vlgmr.msra.gmra.mxu1 %v3339_v13  ;;  %1491 = vmatprep.subr.mxu1 %v967_v9  ;;  %v679_v13 = vld [vmem:[#allocation6 + $0x2c8] sm:$0xff] }
  0xa1   :  { %1421 = vmatpush1.msra.mxu0 %v710_v10  ;;  %1492 = vmatpush1.msra.mxu1 %v966_v12  ;;  %v839_v9 = vld [vmem:[#allocation6 + $0x7c8] sm:$0xff]  ;;  %v838_v12 = vld [vmem:[#allocation6 + $0x7c0] sm:$0xff] }
  0xa2   :  { %1422 = vmatprep.subr.mxu0 %v703_v14  ;;  %1493 = vmatprep.subr.mxu1 %v959_v15  ;;  %v1095_v10 = vld [vmem:[#allocation6 + $0xfc8] sm:$0xff]  ;;  %v1094_v14 = vld [vmem:[#allocation6 + $0xfc0] sm:$0xff] }
  0xa3   :  { %1423 = vmatpush1.msra.mxu0 %v702_v16  ;;  %1494 = vmatpush1.msra.mxu1 %v958_v17  ;;  %v831_v15 = vld [vmem:[#allocation6 + $0x788] sm:$0xff]  ;;  %v830_v17 = vld [vmem:[#allocation6 + $0x780] sm:$0xff] }
  0xa4   :  { %1424 = vmatprep.subr.mxu0 %v695_v18  ;;  %1495 = vmatprep.subr.mxu1 %v951_v20  ;;  %v1087_v16 = vld [vmem:[#allocation6 + $0xf88] sm:$0xff]  ;;  %v1086_v18 = vld [vmem:[#allocation6 + $0xf80] sm:$0xff] }
  0xa5   :  { %1425 = vmatpush1.msra.mxu0 %v694_v21  ;;  %1496 = vmatpush1.msra.mxu1 %v950_v22  ;;  %v823_v20 = vld [vmem:[#allocation6 + $0x748] sm:$0xff]  ;;  %v822_v22 = vld [vmem:[#allocation6 + $0x740] sm:$0xff] }
  0xa6   :  { %1426 = vmatprep.subr.mxu0 %v687_v23  ;;  %1497 = vmatprep.subr.mxu1 %v943_v11  ;;  %v1079_v21 = vld [vmem:[#allocation6 + $0xf48] sm:$0xff]  ;;  %v1078_v23 = vld [vmem:[#allocation6 + $0xf40] sm:$0xff] }
  0xa7   :  { %1427 = vmatpush1.msra.mxu0 %v686_v24  ;;  %1498 = vmatpush1.msra.mxu1 %v942_v25  ;;  %v815_v11 = vld [vmem:[#allocation6 + $0x708] sm:$0xff]  ;;  %v814_v25 = vld [vmem:[#allocation6 + $0x700] sm:$0xff] }
  0xa8   :  { %1428 = vmatprep.subr.mxu0 %v679_v13  ;;  %1499 = vmatprep.subr.mxu1 %v935_v26  ;;  %v1071_v24 = vld [vmem:[#allocation6 + $0xf08] sm:$0xff]  ;;  %v1070_v13 = vld [vmem:[#allocation6 + $0xf00] sm:$0xff] }
  0xa9   :  { %1429 = vmatpush1.msra.mxu0 %v678_v27  ;;  %1500 = vmatpush1.msra.mxu1 %v934_v28  ;;  %v807_v26 = vld [vmem:[#allocation6 + $0x6c8] sm:$0xff]  ;;  %v806_v28 = vld [vmem:[#allocation6 + $0x6c0] sm:$0xff] }
  0xaa   :  { %1430 = vmatprep.subr.mxu0 %v671_v29  ;;  %1501 = vmatprep.subr.mxu1 %v927_v30  ;;  %v1063_v27 = vld [vmem:[#allocation6 + $0xec8] sm:$0xff]  ;;  %v1062_v29 = vld [vmem:[#allocation6 + $0xec0] sm:$0xff] }
  0xab   :  { %1431 = vmatpush1.msra.mxu0 %v670_v31  ;;  %1502 = vmatpush1.msra.mxu1 %v926_v32  ;;  %v799_v30 = vld [vmem:[#allocation6 + $0x688] sm:$0xff]  ;;  %v798_v32 = vld [vmem:[#allocation6 + $0x680] sm:$0xff] }
  0xac   :  { %1432 = vmatprep.subr.mxu0 %v663_v33  ;;  %1503 = vmatprep.subr.mxu1 %v919_v34  ;;  %v1055_v31 = vld [vmem:[#allocation6 + $0xe88] sm:$0xff]  ;;  %v1054_v33 = vld [vmem:[#allocation6 + $0xe80] sm:$0xff] }
  0xad   :  { %1433 = vmatpush1.msra.mxu0 %v662_v35  ;;  %1504 = vmatpush1.msra.mxu1 %v918_v36  ;;  %v791_v34 = vld [vmem:[#allocation6 + $0x648] sm:$0xff]  ;;  %v790_v36 = vld [vmem:[#allocation6 + $0x640] sm:$0xff] }
  0xae   :  { %1434 = vmatprep.subr.mxu0 %v655_v37  ;;  %1505 = vmatprep.subr.mxu1 %v911_v38  ;;  %v1047_v35 = vld [vmem:[#allocation6 + $0xe48] sm:$0xff]  ;;  %v1046_v37 = vld [vmem:[#allocation6 + $0xe40] sm:$0xff] }
  0xaf   :  { %1435 = vmatpush1.msra.mxu0 %v654_v39  ;;  %1506 = vmatpush1.msra.mxu1 %v910_v40  ;;  %v783_v38 = vld [vmem:[#allocation6 + $0x608] sm:$0xff]  ;;  %v782_v40 = vld [vmem:[#allocation6 + $0x600] sm:$0xff] }
  0xb0   :  { %1436 = vmatprep.subr.mxu0 %v647_v41  ;;  %1507 = vmatprep.subr.mxu1 %v903_v42  ;;  %v1039_v39 = vld [vmem:[#allocation6 + $0xe08] sm:$0xff]  ;;  %v1038_v41 = vld [vmem:[#allocation6 + $0xe00] sm:$0xff] }
  0xb1   :  { %1437 = vmatpush1.msra.mxu0 %v646_v43  ;;  %1508 = vmatpush1.msra.mxu1 %v902_v44  ;;  %v775_v42 = vld [vmem:[#allocation6 + $0x5c8] sm:$0xff]  ;;  %v774_v44 = vld [vmem:[#allocation6 + $0x5c0] sm:$0xff] }
  0xb2   :  { %1438 = vmatprep.subr.mxu0 %v639_v45  ;;  %1509 = vmatprep.subr.mxu1 %v895_v46  ;;  %v1031_v43 = vld [vmem:[#allocation6 + $0xdc8] sm:$0xff]  ;;  %v1030_v45 = vld [vmem:[#allocation6 + $0xdc0] sm:$0xff] }
  0xb3   :  { %1439 = vmatpush1.msra.mxu0 %v638_v47  ;;  %1510 = vmatpush1.msra.mxu1 %v894_v48  ;;  %v767_v46 = vld [vmem:[#allocation6 + $0x588] sm:$0xff]  ;;  %v766_v48 = vld [vmem:[#allocation6 + $0x580] sm:$0xff] }
  0xb4   :  { %1440 = vmatprep.subr.mxu0 %v631_v49  ;;  %1511 = vmatprep.subr.mxu1 %v887_v50  ;;  %v1023_v47 = vld [vmem:[#allocation6 + $0xd88] sm:$0xff]  ;;  %v1022_v49 = vld [vmem:[#allocation6 + $0xd80] sm:$0xff] }
  0xb5   :  { %1441 = vmatpush1.msra.mxu0 %v630_v51  ;;  %1512 = vmatpush1.msra.mxu1 %v886_v52  ;;  %v759_v50 = vld [vmem:[#allocation6 + $0x548] sm:$0xff]  ;;  %v758_v52 = vld [vmem:[#allocation6 + $0x540] sm:$0xff] }
  0xb6   :  { %1442 = vmatprep.subr.mxu0 %v623_v53  ;;  %1513 = vmatprep.subr.mxu1 %v879_v54  ;;  %v1015_v51 = vld [vmem:[#allocation6 + $0xd48] sm:$0xff]  ;;  %v1014_v53 = vld [vmem:[#allocation6 + $0xd40] sm:$0xff] }
  0xb7   :  { %1443 = vmatpush1.msra.mxu0 %v622_v55  ;;  %1514 = vmatpush1.msra.mxu1 %v878_v56  ;;  %v751_v54 = vld [vmem:[#allocation6 + $0x508] sm:$0xff]  ;;  %v750_v56 = vld [vmem:[#allocation6 + $0x500] sm:$0xff] }
  0xb8   :  { %1444 = vmatprep.subr.mxu0 %v615_v57  ;;  %1515 = vmatprep.subr.mxu1 %v871_v58  ;;  %v1007_v55 = vld [vmem:[#allocation6 + $0xd08] sm:$0xff]  ;;  %v1006_v57 = vld [vmem:[#allocation6 + $0xd00] sm:$0xff] }
  0xb9   :  { %1445 = vmatpush1.msra.mxu0 %v614_v59  ;;  %1516 = vmatpush1.msra.mxu1 %v870_v60  ;;  %v743_v58 = vld [vmem:[#allocation6 + $0x4c8] sm:$0xff]  ;;  %v742_v60 = vld [vmem:[#allocation6 + $0x4c0] sm:$0xff] }
  0xba   :  { %1446 = vmatprep.subr.mxu0 %v607_v61  ;;  %1517 = vmatprep.subr.mxu1 %v863_v62  ;;  %v999_v59 = vld [vmem:[#allocation6 + $0xcc8] sm:$0xff]  ;;  %v998_v61 = vld [vmem:[#allocation6 + $0xcc0] sm:$0xff] }
  0xbb   :  { %1447 = vmatpush1.msra.mxu0 %v606_v63  ;;  %1518 = vmatpush1.msra.mxu1 %v862_v0  ;;  %v735_v62 = vld [vmem:[#allocation6 + $0x488] sm:$0xff]  ;;  %v734_v0 = vld [vmem:[#allocation6 + $0x480] sm:$0xff] }
  0xbc   :  { %1448 = vmatprep.subr.mxu0 %v599_v1  ;;  %1519 = vmatprep.subr.mxu1 %v855_v2  ;;  %v991_v63 = vld [vmem:[#allocation6 + $0xc88] sm:$0xff]  ;;  %v990_v1 = vld [vmem:[#allocation6 + $0xc80] sm:$0xff] }
  0xbd   :  { %1449 = vmatpush1.msra.mxu0 %v598_v3  ;;  %1520 = vmatpush1.msra.mxu1 %v854_v4  ;;  %v727_v2 = vld [vmem:[#allocation6 + $0x448] sm:$0xff]  ;;  %v726_v4 = vld [vmem:[#allocation6 + $0x440] sm:$0xff] }
  0xbe   :  { %1450 = vmatprep.subr.mxu0 %v591_v5  ;;  %1521 = vmatprep.subr.mxu1 %v847_v6  ;;  %v983_v3 = vld [vmem:[#allocation6 + $0xc48] sm:$0xff]  ;;  %v982_v5 = vld [vmem:[#allocation6 + $0xc40] sm:$0xff] }
  0xbf   :  { %1451 = vmatpush1.msra.mxu0 %v590_v7  ;;  %1522 = vmatpush1.msra.mxu1 %v846_v8  ;;  %v719_v6 = vld [vmem:[#allocation6 + $0x408] sm:$0xff]  ;;  %v718_v8 = vld [vmem:[#allocation6 + $0x400] sm:$0xff] }
  0xc0   :  { %1452 = vmatprep.subr.mxu0 %v839_v9  ;;  %1523 = vmatprep.subr.mxu1 %v1095_v10  ;;  %v975_v7 = vld [vmem:[#allocation6 + $0xc08] sm:$0xff]  ;;  %v974_v9 = vld [vmem:[#allocation6 + $0xc00] sm:$0xff] }
  0xc1   :  { %1453 = vmatpush2.msra.mxu0 %v838_v12  ;;  %1524 = vmatpush2.msra.mxu1 %v1094_v14  ;;  %v1223_v10 = vld [vmem:[#allocation6 + $0x13c8] sm:$0xff]  ;;  %v713_v12 = vld [vmem:[#allocation6 + $0x3d8] sm:$0xff]  ;;  %v239_v14 = vlaneseq }
  0xc2   :  { %1454 = vmatprep.subr.mxu0 %v831_v15  ;;  %1525 = vmatprep.subr.mxu1 %v1087_v16 }
  0xc3   :  { %1455 = vmatpush2.msra.mxu0 %v830_v17  ;;  %1526 = vmatpush2.msra.mxu1 %v1086_v18  ;;  %v3375_v15 = vshrl.u32 %v239_v14, 7  ;;  %v3379_v18 = vld [vmem:[#allocation4] sm:$0x7f]  ;;  %v1142_v14 = vld [vmem:[#allocation6 + $0x1140] sm:$0xff] }
  0xc4   :  { %1456 = vmatprep.subr.mxu0 %v823_v20  ;;  %1527 = vmatprep.subr.mxu1 %v1079_v21 }
  0xc5   :  { %1457 = vmatpush2.msra.mxu0 %v822_v22  ;;  %1528 = vmatpush2.msra.mxu1 %v1078_v23  ;;  %v249_v16 = vsub.s32 2, %v3375_v15  ;;  %v241_v17 = vsub.s32 0, %v3375_v15  ;;  %v245_v20 = vsub.s32 1, %v3375_v15  ;;  %v253_v21 = vsub.s32 3, %v3375_v15 }
  0xc6   :  { %1458 = vmatprep.subr.mxu0 %v815_v11  ;;  %1529 = vmatprep.subr.mxu1 %v1071_v24 }
  0xc7   :  { %1459 = vmatpush2.msra.mxu0 %v814_v25  ;;  %1530 = vmatpush2.msra.mxu1 %v1070_v13  ;;  %v250_v22 = vrot.slane %v3379_v18, %v249_v16  ;;  %v242_v23 = vrot.slane %v3379_v18, %v241_v17  ;;  %v246_v11 = vrot.slane %v3379_v18, %v245_v20 }
  0xc8   :  { %1460 = vmatprep.subr.mxu0 %v807_v26  ;;  %1531 = vmatprep.subr.mxu1 %v1063_v27  ;;  %v254_v24 = vrot.slane %v3379_v18, %v253_v21 }
  0xc9   :  { %1461 = vmatpush2.msra.mxu0 %v806_v28  ;;  %1532 = vmatpush2.msra.mxu1 %v1062_v29 }
  0xca   :  { %1462 = vmatprep.subr.mxu0 %v799_v30  ;;  %1533 = vmatprep.subr.mxu1 %v1055_v31 }
  0xcb   :  { %1463 = vmatpush2.msra.mxu0 %v798_v32  ;;  %1534 = vmatpush2.msra.mxu1 %v1054_v33 }
  0xcc   :  { %1464 = vmatprep.subr.mxu0 %v791_v34  ;;  %1535 = vmatprep.subr.mxu1 %v1047_v35 }
  0xcd   :  { %1465 = vmatpush2.msra.mxu0 %v790_v36  ;;  %1536 = vmatpush2.msra.mxu1 %v1046_v37  ;;  %v1222_v36 = vld [vmem:[#allocation6 + $0x13c0] sm:$0xff]  ;;  %v712_v37 = vld [vmem:[#allocation6 + $0x3d0] sm:$0xff] }
  0xce   :  { %1466 = vmatprep.subr.mxu0 %v783_v38  ;;  %1537 = vmatprep.subr.mxu1 %v1039_v39  ;;  %v1215_v38 = vld [vmem:[#allocation6 + $0x1388] sm:$0xff]  ;;  %v705_v39 = vld [vmem:[#allocation6 + $0x398] sm:$0xff] }
  0xcf   :  { %1467 = vmatpush2.msra.mxu0 %v782_v40  ;;  %1538 = vmatpush2.msra.mxu1 %v1038_v41  ;;  %v1214_v40 = vld [vmem:[#allocation6 + $0x1380] sm:$0xff]  ;;  %v704_v41 = vld [vmem:[#allocation6 + $0x390] sm:$0xff] }
  0xd0   :  { %1468 = vmatprep.subr.mxu0 %v775_v42  ;;  %1539 = vmatprep.subr.mxu1 %v1031_v43  ;;  %v1207_v42 = vld [vmem:[#allocation6 + $0x1348] sm:$0xff]  ;;  %v697_v43 = vld [vmem:[#allocation6 + $0x358] sm:$0xff] }
  0xd1   :  { %1469 = vmatpush2.msra.mxu0 %v774_v44  ;;  %1540 = vmatpush2.msra.mxu1 %v1030_v45  ;;  %v1206_v44 = vld [vmem:[#allocation6 + $0x1340] sm:$0xff]  ;;  %v696_v45 = vld [vmem:[#allocation6 + $0x350] sm:$0xff] }
  0xd2   :  { %1470 = vmatprep.subr.mxu0 %v767_v46  ;;  %1541 = vmatprep.subr.mxu1 %v1023_v47  ;;  %v1199_v46 = vld [vmem:[#allocation6 + $0x1308] sm:$0xff]  ;;  %v689_v47 = vld [vmem:[#allocation6 + $0x318] sm:$0xff] }
  0xd3   :  { %1471 = vmatpush2.msra.mxu0 %v766_v48  ;;  %1542 = vmatpush2.msra.mxu1 %v1022_v49  ;;  %v1198_v48 = vld [vmem:[#allocation6 + $0x1300] sm:$0xff]  ;;  %v688_v49 = vld [vmem:[#allocation6 + $0x310] sm:$0xff] }
  0xd4   :  { %1472 = vmatprep.subr.mxu0 %v759_v50  ;;  %1543 = vmatprep.subr.mxu1 %v1015_v51  ;;  %v1191_v50 = vld [vmem:[#allocation6 + $0x12c8] sm:$0xff]  ;;  %v681_v51 = vld [vmem:[#allocation6 + $0x2d8] sm:$0xff] }
  0xd5   :  { %1473 = vmatpush2.msra.mxu0 %v758_v52  ;;  %1544 = vmatpush2.msra.mxu1 %v1014_v53  ;;  %v1190_v52 = vld [vmem:[#allocation6 + $0x12c0] sm:$0xff]  ;;  %v680_v53 = vld [vmem:[#allocation6 + $0x2d0] sm:$0xff] }
  0xd6   :  { %1474 = vmatprep.subr.mxu0 %v751_v54  ;;  %1545 = vmatprep.subr.mxu1 %v1007_v55  ;;  %v1183_v54 = vld [vmem:[#allocation6 + $0x1288] sm:$0xff]  ;;  %v673_v55 = vld [vmem:[#allocation6 + $0x298] sm:$0xff] }
  0xd7   :  { %1475 = vmatpush2.msra.mxu0 %v750_v56  ;;  %1546 = vmatpush2.msra.mxu1 %v1006_v57  ;;  %v1182_v56 = vld [vmem:[#allocation6 + $0x1280] sm:$0xff]  ;;  %v672_v57 = vld [vmem:[#allocation6 + $0x290] sm:$0xff] }
  0xd8   :  { %1476 = vmatprep.subr.mxu0 %v743_v58  ;;  %1547 = vmatprep.subr.mxu1 %v999_v59  ;;  %v1175_v58 = vld [vmem:[#allocation6 + $0x1248] sm:$0xff]  ;;  %v665_v59 = vld [vmem:[#allocation6 + $0x258] sm:$0xff] }
  0xd9   :  { %1477 = vmatpush2.msra.mxu0 %v742_v60  ;;  %1548 = vmatpush2.msra.mxu1 %v998_v61  ;;  %v1174_v60 = vld [vmem:[#allocation6 + $0x1240] sm:$0xff]  ;;  %v664_v61 = vld [vmem:[#allocation6 + $0x250] sm:$0xff] }
  0xda   :  { %1478 = vmatprep.subr.mxu0 %v735_v62  ;;  %1549 = vmatprep.subr.mxu1 %v991_v63  ;;  %v1167_v62 = vld [vmem:[#allocation6 + $0x1208] sm:$0xff]  ;;  %v657_v63 = vld [vmem:[#allocation6 + $0x218] sm:$0xff] }
  0xdb   :  { %1479 = vmatpush2.msra.mxu0 %v734_v0  ;;  %1550 = vmatpush2.msra.mxu1 %v990_v1  ;;  %v1166_v0 = vld [vmem:[#allocation6 + $0x1200] sm:$0xff]  ;;  %v656_v1 = vld [vmem:[#allocation6 + $0x210] sm:$0xff] }
  0xdc   :  { %1480 = vmatprep.subr.mxu0 %v727_v2  ;;  %1551 = vmatprep.subr.mxu1 %v983_v3  ;;  %v1159_v2 = vld [vmem:[#allocation6 + $0x11c8] sm:$0xff]  ;;  %v649_v3 = vld [vmem:[#allocation6 + $0x1d8] sm:$0xff] }
  0xdd   :  { %1481 = vmatpush2.msra.mxu0 %v726_v4  ;;  %1552 = vmatpush2.msra.mxu1 %v982_v5  ;;  %v1158_v4 = vld [vmem:[#allocation6 + $0x11c0] sm:$0xff]  ;;  %v648_v5 = vld [vmem:[#allocation6 + $0x1d0] sm:$0xff] }
  0xde   :  { %1482 = vmatprep.subr.mxu0 %v719_v6  ;;  %1553 = vmatprep.subr.mxu1 %v975_v7  ;;  %v1151_v6 = vld [vmem:[#allocation6 + $0x1188] sm:$0xff]  ;;  %v641_v7 = vld [vmem:[#allocation6 + $0x198] sm:$0xff] }
  0xdf   :  { %1483 = vmatpush2.msra.mxu0 %v718_v8  ;;  %1554 = vmatpush2.msra.mxu1 %v974_v9  ;;  %v1150_v8 = vld [vmem:[#allocation6 + $0x1180] sm:$0xff]  ;;  %v640_v9 = vld [vmem:[#allocation6 + $0x190] sm:$0xff] }
  0xe0   :  { %1562 = vmatprep.subr.mxu0 %v1223_v10  ;;  %1704 = vmatprep.subr.mxu1 %v713_v12  ;;  %v1143_v10 = vld [vmem:[#allocation6 + $0x1148] sm:$0xff]  ;;  %v633_v12 = vld [vmem:[#allocation6 + $0x158] sm:$0xff] }
 0x137   :  { %v366_v25 = vpop.f32.mrf.mxu0  ;;  %v437_v13 = vpop.f32.mrf.mxu1 }
 0x138   :  { %v438_v26 = vadd.f32 %v437_v13, %v250_v22  ;;  %v367_v27 = vadd.f32 %v366_v25, %v242_v23  ;;  %v632_v22 = vld [vmem:[#allocation6 + $0x150] sm:$0xff]  ;;  %v1135_v23 = vld [vmem:[#allocation6 + $0x1108] sm:$0xff] }
 0x139   :  { %v368_v28 = vpop.f32.mrf.mxu0  ;;  %v439_v29 = vpop.f32.mrf.mxu1  ;;  %v624_v25 = vld [vmem:[#allocation6 + $0x110] sm:$0xff]  ;;  %v1127_v13 = vld [vmem:[#allocation6 + $0x10c8] sm:$0xff] }
 0x13a   :  { %v369_v30 = vadd.f32 %v368_v28, %v246_v11  ;;  %v440_v31 = vadd.f32 %v439_v29, %v254_v24  ;;  %v3395_v32 = vmax.f32 %v438_v26, 0.0  ;;  %v3401_v35 = vmax.f32 %v367_v27, 0.0  ;;  %v625_v11 = vld [vmem:[#allocation6 + $0x118] sm:$0xff]  ;;  %v1134_v24 = vld [vmem:[#allocation6 + $0x1100] sm:$0xff]  ;;  %v616_v28 = vld [vmem:[#allocation6 + $0xd0] sm:$0xff] }
 0x13b   :  { %v617_v26 = vld [vmem:[#allocation6 + $0xd8] sm:$0xff]  ;;  %v1126_v27 = vld [vmem:[#allocation6 + $0x10c0] sm:$0xff]  ;;  %v1119_v29 = vld [vmem:[#allocation6 + $0x1088] sm:$0xff] }
 0x13c   :  { %v3397_v33 = vmax.f32 %v369_v30, 0.0  ;;  %v3399_v34 = vmax.f32 %v440_v31, 0.0  ;;  %v609_v30 = vld [vmem:[#allocation6 + $0x98] sm:$0xff]  ;;  %v1118_v31 = vld [vmem:[#allocation6 + $0x1080] sm:$0xff] }
 0x13e   :  { %1484 = vmatprep.mubr.f32.mxu0 %v3397_v33  ;;  %1555 = vmatprep.mubr.f32.mxu1 %v3399_v34 }
 0x13f   :  { %1485 = vmatmul.mubr.f32.vlgmr.msra.gmra.mxu0 %v3401_v35  ;;  %1556 = vmatmul.mubr.f32.vlgmr.msra.gmra.mxu1 %v3395_v32 }
 0x140   :  { %1563 = vmatpush1.msra.mxu0 %v1222_v36  ;;  %1705 = vmatpush1.msra.mxu1 %v712_v37  ;;  %v608_v36 = vld [vmem:[#allocation6 + $0x90] sm:$0xff]  ;;  %v1111_v37 = vld [vmem:[#allocation6 + $0x1048] sm:$0xff] }
 0x141   :  { %1564 = vmatprep.subr.mxu0 %v1215_v38  ;;  %1706 = vmatprep.subr.mxu1 %v705_v39  ;;  %v601_v38 = vld [vmem:[#allocation6 + $0x58] sm:$0xff]  ;;  %v1110_v39 = vld [vmem:[#allocation6 + $0x1040] sm:$0xff] }
 0x142   :  { %1768 = vmatprep.mubr.f32.mxu1 %v3397_v33  ;;  %1565 = vmatpush1.msra.mxu0 %v1214_v40  ;;  %v600_v40 = vld [vmem:[#allocation6 + $0x50] sm:$0xff] }
 0x143   :  { %1707 = vmatpush1.msra.mxu1 %v704_v41  ;;  %1566 = vmatprep.subr.mxu0 %v1207_v42  ;;  %v1103_v41 = vld [vmem:[#allocation6 + $0x1008] sm:$0xff]  ;;  %v593_v42 = vld [vmem:[#allocation6 + $0x18] sm:$0xff] }
 0x144   :  { %1708 = vmatprep.subr.mxu1 %v697_v43  ;;  %1567 = vmatpush1.msra.mxu0 %v1206_v44  ;;  %v1102_v43 = vld [vmem:[#allocation6 + $0x1000] sm:$0xff]  ;;  %v592_v44 = vld [vmem:[#allocation6 + $0x10] sm:$0xff] }
 0x145   :  { %1709 = vmatpush1.msra.mxu1 %v696_v45  ;;  %1568 = vmatprep.subr.mxu0 %v1199_v46  ;;  %v1351_v45 = vld [vmem:[#allocation6 + $0x17c8] sm:$0xff]  ;;  %v841_v46 = vld [vmem:[#allocation6 + $0x7d8] sm:$0xff] }
 0x146   :  { %1710 = vmatprep.subr.mxu1 %v689_v47  ;;  %1569 = vmatpush1.msra.mxu0 %v1198_v48  ;;  %v1350_v47 = vld [vmem:[#allocation6 + $0x17c0] sm:$0xff]  ;;  %v840_v48 = vld [vmem:[#allocation6 + $0x7d0] sm:$0xff] }
 0x147   :  { %1711 = vmatpush1.msra.mxu1 %v688_v49  ;;  %1570 = vmatprep.subr.mxu0 %v1191_v50  ;;  %v1343_v49 = vld [vmem:[#allocation6 + $0x1788] sm:$0xff]  ;;  %v833_v50 = vld [vmem:[#allocation6 + $0x798] sm:$0xff] }
 0x148   :  { %1712 = vmatprep.subr.mxu1 %v681_v51  ;;  %1571 = vmatpush1.msra.mxu0 %v1190_v52  ;;  %v1342_v51 = vld [vmem:[#allocation6 + $0x1780] sm:$0xff]  ;;  %v832_v52 = vld [vmem:[#allocation6 + $0x790] sm:$0xff] }
 0x149   :  { %1713 = vmatpush1.msra.mxu1 %v680_v53  ;;  %1572 = vmatprep.subr.mxu0 %v1183_v54  ;;  %v1335_v53 = vld [vmem:[#allocation6 + $0x1748] sm:$0xff] }
 0x14a   :  { %1714 = vmatprep.subr.mxu1 %v673_v55  ;;  %1573 = vmatpush1.msra.mxu0 %v1182_v56  ;;  %v825_v55 = vld [vmem:[#allocation6 + $0x758] sm:$0xff]  ;;  %v1334_v56 = vld [vmem:[#allocation6 + $0x1740] sm:$0xff] }
 0x14b   :  { %1715 = vmatpush1.msra.mxu1 %v672_v57  ;;  %1574 = vmatprep.subr.mxu0 %v1175_v58  ;;  %v824_v57 = vld [vmem:[#allocation6 + $0x750] sm:$0xff]  ;;  %v1327_v58 = vld [vmem:[#allocation6 + $0x1708] sm:$0xff] }
 0x14c   :  { %1716 = vmatprep.subr.mxu1 %v665_v59  ;;  %1575 = vmatpush1.msra.mxu0 %v1174_v60  ;;  %v817_v60 = vld [vmem:[#allocation6 + $0x718] sm:$0xff] }
 0x14d   :  { %1717 = vmatpush1.msra.mxu1 %v664_v61  ;;  %1576 = vmatprep.subr.mxu0 %v1167_v62  ;;  %v1326_v61 = vld [vmem:[#allocation6 + $0x1700] sm:$0xff]  ;;  %v816_v62 = vld [vmem:[#allocation6 + $0x710] sm:$0xff] }
 0x14e   :  { %1718 = vmatprep.subr.mxu1 %v657_v63  ;;  %1577 = vmatpush1.msra.mxu0 %v1166_v0  ;;  %v1319_v63 = vld [vmem:[#allocation6 + $0x16c8] sm:$0xff]  ;;  %v809_v0 = vld [vmem:[#allocation6 + $0x6d8] sm:$0xff] }
 0x14f   :  { %1719 = vmatpush1.msra.mxu1 %v656_v1  ;;  %1578 = vmatprep.subr.mxu0 %v1159_v2  ;;  %v1318_v1 = vld [vmem:[#allocation6 + $0x16c0] sm:$0xff]  ;;  %v808_v2 = vld [vmem:[#allocation6 + $0x6d0] sm:$0xff] }
 0x150   :  { %1720 = vmatprep.subr.mxu1 %v649_v3  ;;  %1579 = vmatpush1.msra.mxu0 %v1158_v4  ;;  %v1311_v3 = vld [vmem:[#allocation6 + $0x1688] sm:$0xff]  ;;  %v801_v4 = vld [vmem:[#allocation6 + $0x698] sm:$0xff] }
 0x151   :  { %1721 = vmatpush1.msra.mxu1 %v648_v5  ;;  %1580 = vmatprep.subr.mxu0 %v1151_v6  ;;  %v1310_v5 = vld [vmem:[#allocation6 + $0x1680] sm:$0xff]  ;;  %v800_v6 = vld [vmem:[#allocation6 + $0x690] sm:$0xff] }
 0x152   :  { %1722 = vmatprep.subr.mxu1 %v641_v7  ;;  %1581 = vmatpush1.msra.mxu0 %v1150_v8  ;;  %v1303_v7 = vld [vmem:[#allocation6 + $0x1648] sm:$0xff]  ;;  %v793_v8 = vld [vmem:[#allocation6 + $0x658] sm:$0xff] }
 0x153   :  { %1723 = vmatpush1.msra.mxu1 %v640_v9  ;;  %1582 = vmatprep.subr.mxu0 %v1143_v10  ;;  %v1302_v9 = vld [vmem:[#allocation6 + $0x1640] sm:$0xff]  ;;  %v792_v10 = vld [vmem:[#allocation6 + $0x650] sm:$0xff] }
 0x154   :  { %1724 = vmatprep.subr.mxu1 %v633_v12  ;;  %1583 = vmatpush1.msra.mxu0 %v1142_v14  ;;  %v1295_v12 = vld [vmem:[#allocation6 + $0x1608] sm:$0xff]  ;;  %v785_v14 = vld [vmem:[#allocation6 + $0x618] sm:$0xff] }
 0x155   :  { %1725 = vmatpush1.msra.mxu1 %v632_v22  ;;  %1584 = vmatprep.subr.mxu0 %v1135_v23  ;;  %v1294_v22 = vld [vmem:[#allocation6 + $0x1600] sm:$0xff]  ;;  %v784_v23 = vld [vmem:[#allocation6 + $0x610] sm:$0xff] }
 0x156   :  { %1726 = vmatprep.subr.mxu1 %v625_v11  ;;  %1585 = vmatpush1.msra.mxu0 %v1134_v24  ;;  %v1287_v11 = vld [vmem:[#allocation6 + $0x15c8] sm:$0xff]  ;;  %v777_v24 = vld [vmem:[#allocation6 + $0x5d8] sm:$0xff] }
 0x157   :  { %1727 = vmatpush1.msra.mxu1 %v624_v25  ;;  %1586 = vmatprep.subr.mxu0 %v1127_v13  ;;  %v1286_v25 = vld [vmem:[#allocation6 + $0x15c0] sm:$0xff]  ;;  %v776_v13 = vld [vmem:[#allocation6 + $0x5d0] sm:$0xff] }
 0x158   :  { %1728 = vmatprep.subr.mxu1 %v617_v26  ;;  %1587 = vmatpush1.msra.mxu0 %v1126_v27  ;;  %v1279_v26 = vld [vmem:[#allocation6 + $0x1588] sm:$0xff]  ;;  %v261_v27 = vsub.s32 5, %v3375_v15 }
 0x159   :  { %1729 = vmatpush1.msra.mxu1 %v616_v28  ;;  %1588 = vmatprep.subr.mxu0 %v1119_v29  ;;  %v769_v28 = vld [vmem:[#allocation6 + $0x598] sm:$0xff]  ;;  %v1278_v29 = vld [vmem:[#allocation6 + $0x1580] sm:$0xff] }
 0x15a   :  { %1730 = vmatprep.subr.mxu1 %v609_v30  ;;  %1589 = vmatpush1.msra.mxu0 %v1118_v31  ;;  %v768_v31 = vld [vmem:[#allocation6 + $0x590] sm:$0xff] }
 0x15b   :  { %1731 = vmatpush1.msra.mxu1 %v608_v36  ;;  %1590 = vmatprep.subr.mxu0 %v1111_v37  ;;  %v1271_v36 = vld [vmem:[#allocation6 + $0x1548] sm:$0xff]  ;;  %v761_v37 = vld [vmem:[#allocation6 + $0x558] sm:$0xff] }
 0x15c   :  { %1732 = vmatprep.subr.mxu1 %v601_v38  ;;  %1591 = vmatpush1.msra.mxu0 %v1110_v39  ;;  %v1270_v38 = vld [vmem:[#allocation6 + $0x1540] sm:$0xff]  ;;  %v760_v39 = vld [vmem:[#allocation6 + $0x550] sm:$0xff] }
 0x15d   :  { %1733 = vmatpush1.msra.mxu1 %v600_v40  ;;  %1592 = vmatprep.subr.mxu0 %v1103_v41  ;;  %v1263_v40 = vld [vmem:[#allocation6 + $0x1508] sm:$0xff]  ;;  %v257_v41 = vsub.s32 4, %v3375_v15 }
 0x15e   :  { %1734 = vmatprep.subr.mxu1 %v593_v42  ;;  %1593 = vmatpush1.msra.mxu0 %v1102_v43  ;;  %v508_v30 = vpop.f32.mrf.mxu0  ;;  %v262_v42 = vrot.slane %v3379_v18, %v261_v27  ;;  %v753_v43 = vld [vmem:[#allocation6 + $0x518] sm:$0xff] }
 0x15f   :  { %1735 = vmatpush1.msra.mxu1 %v592_v44  ;;  %1594 = vmatprep.subr.mxu0 %v1351_v45  ;;  %v1262_v44 = vld [vmem:[#allocation6 + $0x1500] sm:$0xff] }
 0x160   :  { %1736 = vmatprep.subr.mxu1 %v841_v46  ;;  %1595 = vmatpush2.msra.mxu0 %v1350_v47  ;;  %v3408_v54 = vpop.f32.mrf.mxu1  ;;  %v510_v45 = vpop.f32.mrf.mxu0  ;;  %v752_v46 = vld [vmem:[#allocation6 + $0x510] sm:$0xff]  ;;  %v1255_v47 = vld [vmem:[#allocation6 + $0x14c8] sm:$0xff] }
 0x161   :  { %1737 = vmatpush2.msra.mxu1 %v840_v48  ;;  %1596 = vmatprep.subr.mxu0 %v1343_v49  ;;  %v745_v48 = vld [vmem:[#allocation6 + $0x4d8] sm:$0xff]  ;;  %v1254_v49 = vld [vmem:[#allocation6 + $0x14c0] sm:$0xff] }
 0x162   :  { %1738 = vmatprep.subr.mxu1 %v833_v50  ;;  %1597 = vmatpush2.msra.mxu0 %v1342_v51  ;;  %v581_v59 = vpop.f32.mrf.mxu1  ;;  %v258_v50 = vrot.slane %v3379_v18, %v257_v41  ;;  %v511_v51 = vadd.f32 %v510_v45, %v262_v42  ;;  %v944_v42 = vld [vmem:[#allocation6 + $0xb10] sm:$0xff]  ;;  %v1177_v45 = vld [vmem:[#allocation6 + $0x1258] sm:$0xff] }
 0x163   :  { %1739 = vmatpush2.msra.mxu1 %v832_v52  ;;  %1598 = vmatprep.subr.mxu0 %v1335_v53  ;;  %v744_v52 = vld [vmem:[#allocation6 + $0x4d0] sm:$0xff]  ;;  %v1247_v53 = vld [vmem:[#allocation6 + $0x1488] sm:$0xff] }
 0x164   :  { %1740 = vmatprep.subr.mxu1 %v825_v55  ;;  %1599 = vmatpush2.msra.mxu0 %v1334_v56  ;;  %v265_v55 = vsub.s32 6, %v3375_v15  ;;  %v737_v56 = vld [vmem:[#allocation6 + $0x498] sm:$0xff]  ;;  %v1239_v59 = vld [vmem:[#allocation6 + $0x1448] sm:$0xff] }
 0x165   :  { %1741 = vmatpush2.msra.mxu1 %v824_v57  ;;  %1600 = vmatprep.subr.mxu0 %v1327_v58  ;;  %v1246_v57 = vld [vmem:[#allocation6 + $0x1480] sm:$0xff]  ;;  %v736_v58 = vld [vmem:[#allocation6 + $0x490] sm:$0xff] }
 0x166   :  { %1742 = vmatprep.subr.mxu1 %v817_v60  ;;  %1601 = vmatpush2.msra.mxu0 %v1326_v61  ;;  %v729_v60 = vld [vmem:[#allocation6 + $0x458] sm:$0xff]  ;;  %v1238_v61 = vld [vmem:[#allocation6 + $0x1440] sm:$0xff] }
 0x167   :  { %1743 = vmatpush2.msra.mxu1 %v816_v62  ;;  %1602 = vmatprep.subr.mxu0 %v1319_v63  ;;  %v509_v62 = vadd.f32 %v508_v30, %v258_v50  ;;  %v3419_v63 = vmax.f32 %v511_v51, 0.0  ;;  %v1200_v30 = vld [vmem:[#allocation6 + $0x1310] sm:$0xff] }
 0x168   :  { %1744 = vmatprep.subr.mxu1 %v809_v0  ;;  %1603 = vmatpush2.msra.mxu0 %v1318_v1  ;;  %v728_v0 = vld [vmem:[#allocation6 + $0x450] sm:$0xff]  ;;  %v266_v1 = vrot.slane %v3379_v18, %v265_v55  ;;  %v1366_v18 = vld [vmem:[#allocation6 + $0x1840] sm:$0xff] }
 0x169   :  { %1745 = vmatpush2.msra.mxu1 %v808_v2  ;;  %1604 = vmatprep.subr.mxu0 %v1311_v3  ;;  %v1231_v2 = vld [vmem:[#allocation6 + $0x1408] sm:$0xff]  ;;  %v721_v3 = vld [vmem:[#allocation6 + $0x418] sm:$0xff]  ;;  %v928_v50 = vld [vmem:[#allocation6 + $0xa90] sm:$0xff] }
 0x16a   :  { %1746 = vmatprep.subr.mxu1 %v801_v4  ;;  %1605 = vmatpush2.msra.mxu0 %v1310_v5  ;;  %v1230_v4 = vld [vmem:[#allocation6 + $0x1400] sm:$0xff]  ;;  %v720_v5 = vld [vmem:[#allocation6 + $0x410] sm:$0xff] }
 0x16b   :  { %1747 = vmatpush2.msra.mxu1 %v800_v6  ;;  %1606 = vmatprep.subr.mxu0 %v1303_v7  ;;  %v1367_v6 = vld [vmem:[#allocation6 + $0x1848] sm:$0xff]  ;;  %v3424_v7 = vmax.f32 %v509_v62, 0.0  ;;  %v1168_v51 = vld [vmem:[#allocation6 + $0x1210] sm:$0xff]  ;;  %v905_v62 = vld [vmem:[#allocation6 + $0x9d8] sm:$0xff] }
 0x16c   :  { %1748 = vmatprep.subr.mxu1 %v793_v8  ;;  %1607 = vmatpush2.msra.mxu0 %v1302_v9  ;;  %v580_v8 = vadd.f32 %v3408_v54, %v266_v1  ;;  %v1225_v9 = vld [vmem:[#allocation6 + $0x13d8] sm:$0xff]  ;;  %v1216_v54 = vld [vmem:[#allocation6 + $0x1390] sm:$0xff] }
 0x16d   :  { %1749 = vmatpush2.msra.mxu1 %v792_v10  ;;  %1608 = vmatprep.subr.mxu0 %v1295_v12  ;;  %v1224_v10 = vld [vmem:[#allocation6 + $0x13d0] sm:$0xff]  ;;  %v1359_v12 = vld [vmem:[#allocation6 + $0x1808] sm:$0xff] }
 0x16e   :  { %1750 = vmatprep.subr.mxu1 %v785_v14  ;;  %1609 = vmatpush2.msra.mxu0 %v1294_v22  ;;  %v1217_v14 = vld [vmem:[#allocation6 + $0x1398] sm:$0xff]  ;;  %v1358_v22 = vld [vmem:[#allocation6 + $0x1800] sm:$0xff]  ;;  %v904_v1 = vld [vmem:[#allocation6 + $0x9d0] sm:$0xff] }
 0x16f   :  { %1751 = vmatpush2.msra.mxu1 %v784_v23  ;;  %1610 = vmatprep.subr.mxu0 %v1287_v11  ;;  %v3430_v23 = vmax.f32 %v580_v8, 0.0  ;;  %v969_v11 = vld [vmem:[#allocation6 + $0xbd8] sm:$0xff] }
 0x170   :  { %1752 = vmatprep.subr.mxu1 %v777_v24  ;;  %1611 = vmatpush2.msra.mxu0 %v1286_v25  ;;  %v1209_v24 = vld [vmem:[#allocation6 + $0x1358] sm:$0xff]  ;;  %v968_v25 = vld [vmem:[#allocation6 + $0xbd0] sm:$0xff] }
 0x171   :  { %1753 = vmatpush2.msra.mxu1 %v776_v13  ;;  %1612 = vmatprep.subr.mxu0 %v1279_v26  ;;  %v1208_v13 = vld [vmem:[#allocation6 + $0x1350] sm:$0xff]  ;;  %v961_v26 = vld [vmem:[#allocation6 + $0xb98] sm:$0xff] }
 0x172   :  { %1754 = vmatprep.subr.mxu1 %v769_v28  ;;  %1613 = vmatpush2.msra.mxu0 %v1278_v29  ;;  %v1201_v28 = vld [vmem:[#allocation6 + $0x1318] sm:$0xff]  ;;  %v960_v29 = vld [vmem:[#allocation6 + $0xb90] sm:$0xff] }
 0x173   :  { %1755 = vmatpush2.msra.mxu1 %v768_v31  ;;  %1614 = vmatprep.subr.mxu0 %v1271_v36  ;;  %v953_v31 = vld [vmem:[#allocation6 + $0xb58] sm:$0xff] }
 0x174   :  { %1756 = vmatprep.subr.mxu1 %v761_v37  ;;  %1615 = vmatpush2.msra.mxu0 %v1270_v38  ;;  %v1193_v36 = vld [vmem:[#allocation6 + $0x12d8] sm:$0xff]  ;;  %v952_v37 = vld [vmem:[#allocation6 + $0xb50] sm:$0xff] }
 0x175   :  { %1757 = vmatpush2.msra.mxu1 %v760_v39  ;;  %1616 = vmatprep.subr.mxu0 %v1263_v40  ;;  %v1192_v38 = vld [vmem:[#allocation6 + $0x12d0] sm:$0xff]  ;;  %v945_v39 = vld [vmem:[#allocation6 + $0xb18] sm:$0xff] }
 0x176   :  { %1758 = vmatprep.subr.mxu1 %v753_v43  ;;  %1617 = vmatpush2.msra.mxu0 %v1262_v44  ;;  %v1185_v40 = vld [vmem:[#allocation6 + $0x1298] sm:$0xff]  ;;  %v1184_v43 = vld [vmem:[#allocation6 + $0x1290] sm:$0xff] }
 0x177   :  { %1759 = vmatpush2.msra.mxu1 %v752_v46  ;;  %1618 = vmatprep.subr.mxu0 %v1255_v47  ;;  %v937_v44 = vld [vmem:[#allocation6 + $0xad8] sm:$0xff]  ;;  %v936_v46 = vld [vmem:[#allocation6 + $0xad0] sm:$0xff] }
 0x178   :  { %1760 = vmatprep.subr.mxu1 %v745_v48  ;;  %1619 = vmatpush2.msra.mxu0 %v1254_v49  ;;  %v1176_v47 = vld [vmem:[#allocation6 + $0x1250] sm:$0xff]  ;;  %v929_v48 = vld [vmem:[#allocation6 + $0xa98] sm:$0xff] }
 0x179   :  { %1761 = vmatpush2.msra.mxu1 %v744_v52  ;;  %1620 = vmatprep.subr.mxu0 %v1247_v53  ;;  %v1169_v49 = vld [vmem:[#allocation6 + $0x1218] sm:$0xff] }
 0x17a   :  { %1762 = vmatprep.subr.mxu1 %v737_v56  ;;  %1621 = vmatpush2.msra.mxu0 %v1246_v57  ;;  %v921_v52 = vld [vmem:[#allocation6 + $0xa58] sm:$0xff]  ;;  %v920_v56 = vld [vmem:[#allocation6 + $0xa50] sm:$0xff] }
 0x17b   :  { %1763 = vmatpush2.msra.mxu1 %v736_v58  ;;  %1622 = vmatprep.subr.mxu0 %v1239_v59  ;;  %v1161_v53 = vld [vmem:[#allocation6 + $0x11d8] sm:$0xff]  ;;  %v1160_v57 = vld [vmem:[#allocation6 + $0x11d0] sm:$0xff] }
 0x17c   :  { %1764 = vmatprep.subr.mxu1 %v729_v60  ;;  %1623 = vmatpush2.msra.mxu0 %v1238_v61  ;;  %v913_v58 = vld [vmem:[#allocation6 + $0xa18] sm:$0xff]  ;;  %v912_v60 = vld [vmem:[#allocation6 + $0xa10] sm:$0xff] }
 0x17d   :  { %1765 = vmatpush2.msra.mxu1 %v728_v0  ;;  %1624 = vmatprep.subr.mxu0 %v1231_v2  ;;  %v1153_v59 = vld [vmem:[#allocation6 + $0x1198] sm:$0xff]  ;;  %v1152_v61 = vld [vmem:[#allocation6 + $0x1190] sm:$0xff] }
 0x17e   :  { %1626 = vmatprep.mubr.f32.mxu0 %v3419_v63  ;;  %1766 = vmatprep.subr.mxu1 %v721_v3  ;;  %v1145_v0 = vld [vmem:[#allocation6 + $0x1158] sm:$0xff]  ;;  %v1144_v2 = vld [vmem:[#allocation6 + $0x1150] sm:$0xff] }
 0x17f   :  { %1625 = vmatpush2.msra.mxu0 %v1230_v4  ;;  %1767 = vmatpush2.msra.mxu1 %v720_v5  ;;  %v897_v3 = vld [vmem:[#allocation6 + $0x998] sm:$0xff]  ;;  %v896_v5 = vld [vmem:[#allocation6 + $0x990] sm:$0xff] }
 0x180   :  { %1627 = vmatmul.mubr.f32.vlgmr.msra.gmra.mxu0 %v3424_v7  ;;  %1661 = vmatprep.subr.mxu0 %v1367_v6  ;;  %v1137_v4 = vld [vmem:[#allocation6 + $0x1118] sm:$0xff]  ;;  %v1136_v6 = vld [vmem:[#allocation6 + $0x1110] sm:$0xff] }
 0x181   :  { %1769 = vmatmul.mubr.f32.vlgmr.msra.gmra.mxu1 %v3401_v35  ;;  %1846 = vmatprep.subr.mxu1 %v1225_v9  ;;  %v889_v8 = vld [vmem:[#allocation6 + $0x958] sm:$0xff] }
 0x182   :  { %1662 = vmatpush1.msra.mxu0 %v1366_v18  ;;  %1847 = vmatpush1.msra.mxu1 %v1224_v10  ;;  %v1129_v9 = vld [vmem:[#allocation6 + $0x10d8] sm:$0xff]  ;;  %v888_v18 = vld [vmem:[#allocation6 + $0x950] sm:$0xff] }
 0x183   :  { %1910 = vmatprep.mubr.f32.mxu1 %v3419_v63  ;;  %1663 = vmatprep.subr.mxu0 %v1359_v12  ;;  %v1128_v10 = vld [vmem:[#allocation6 + $0x10d0] sm:$0xff]  ;;  %v881_v12 = vld [vmem:[#allocation6 + $0x918] sm:$0xff] }
 0x184   :  { %1848 = vmatprep.subr.mxu1 %v1217_v14  ;;  %1664 = vmatpush1.msra.mxu0 %v1358_v22  ;;  %v1121_v14 = vld [vmem:[#allocation6 + $0x1098] sm:$0xff]  ;;  %v880_v22 = vld [vmem:[#allocation6 + $0x910] sm:$0xff] }
 0x185   :  { %1697 = vmatprep.mubr.f32.mxu0 %v3268_v19  ;;  %1849 = vmatpush1.msra.mxu1 %v1216_v54  ;;  %v1120_v54 = vld [vmem:[#allocation6 + $0x1090] sm:$0xff] }
 0x186   :  { %3003 = vmatmul.mubr.msk.f32.vlgmr.msra.gmra.mxu0 %vm1416_vm2, %v3430_v23  ;;  %1775 = vmatprep.subr.mxu0 %v969_v11  ;;  %v873_v11 = vld [vmem:[#allocation6 + $0x8d8] sm:$0xff] }
 0x187   :  { %1850 = vmatprep.subr.mxu1 %v1209_v24  ;;  %1776 = vmatpush1.msra.mxu0 %v968_v25  ;;  %v1113_v24 = vld [vmem:[#allocation6 + $0x1058] sm:$0xff]  ;;  %v872_v25 = vld [vmem:[#allocation6 + $0x8d0] sm:$0xff] }
 0x188   :  { %1839 = vmatprep.mubr.f32.mxu0 %v3399_v34  ;;  %1851 = vmatpush1.msra.mxu1 %v1208_v13  ;;  %v1112_v13 = vld [vmem:[#allocation6 + $0x1050] sm:$0xff] }
 0x189   :  { %1777 = vmatprep.subr.mxu0 %v961_v26  ;;  %1852 = vmatprep.subr.mxu1 %v1201_v28  ;;  %v865_v26 = vld [vmem:[#allocation6 + $0x898] sm:$0xff] }
 0x18a   :  { %1778 = vmatpush1.msra.mxu0 %v960_v29  ;;  %1853 = vmatpush1.msra.mxu1 %v1200_v30  ;;  %v1105_v28 = vld [vmem:[#allocation6 + $0x1018] sm:$0xff]  ;;  %v864_v29 = vld [vmem:[#allocation6 + $0x890] sm:$0xff] }
 0x18b   :  { %1779 = vmatprep.subr.mxu0 %v953_v31  ;;  %1854 = vmatprep.subr.mxu1 %v1193_v36  ;;  %v1104_v30 = vld [vmem:[#allocation6 + $0x1010] sm:$0xff]  ;;  %v857_v31 = vld [vmem:[#allocation6 + $0x858] sm:$0xff] }
 0x18c   :  { %1780 = vmatpush1.msra.mxu0 %v952_v37  ;;  %1855 = vmatpush1.msra.mxu1 %v1192_v38  ;;  %v1353_v36 = vld [vmem:[#allocation6 + $0x17d8] sm:$0xff]  ;;  %v856_v37 = vld [vmem:[#allocation6 + $0x850] sm:$0xff] }
 0x18d   :  { %1781 = vmatprep.subr.mxu0 %v945_v39  ;;  %1856 = vmatprep.subr.mxu1 %v1185_v40  ;;  %v1352_v38 = vld [vmem:[#allocation6 + $0x17d0] sm:$0xff]  ;;  %v849_v39 = vld [vmem:[#allocation6 + $0x818] sm:$0xff] }
 0x18e   :  { %1782 = vmatpush1.msra.mxu0 %v944_v42  ;;  %1857 = vmatpush1.msra.mxu1 %v1184_v43  ;;  %v1345_v40 = vld [vmem:[#allocation6 + $0x1798] sm:$0xff]  ;;  %v848_v42 = vld [vmem:[#allocation6 + $0x810] sm:$0xff] }
 0x18f   :  { %1783 = vmatprep.subr.mxu0 %v937_v44  ;;  %1858 = vmatprep.subr.mxu1 %v1177_v45  ;;  %v1344_v43 = vld [vmem:[#allocation6 + $0x1790] sm:$0xff]  ;;  %v1097_v44 = vld [vmem:[#allocation6 + $0xfd8] sm:$0xff] }
 0x190   :  { %1784 = vmatpush1.msra.mxu0 %v936_v46  ;;  %1859 = vmatpush1.msra.mxu1 %v1176_v47  ;;  %v1337_v45 = vld [vmem:[#allocation6 + $0x1758] sm:$0xff]  ;;  %v1096_v46 = vld [vmem:[#allocation6 + $0xfd0] sm:$0xff] }
 0x191   :  { %1785 = vmatprep.subr.mxu0 %v929_v48  ;;  %1860 = vmatprep.subr.mxu1 %v1169_v49  ;;  %v1336_v47 = vld [vmem:[#allocation6 + $0x1750] sm:$0xff]  ;;  %v1089_v48 = vld [vmem:[#allocation6 + $0xf98] sm:$0xff] }
 0x192   :  { %1786 = vmatpush1.msra.mxu0 %v928_v50  ;;  %1861 = vmatpush1.msra.mxu1 %v1168_v51  ;;  %v1329_v49 = vld [vmem:[#allocation6 + $0x1718] sm:$0xff]  ;;  %v1088_v50 = vld [vmem:[#allocation6 + $0xf90] sm:$0xff] }
 0x193   :  { %1787 = vmatprep.subr.mxu0 %v921_v52  ;;  %1862 = vmatprep.subr.mxu1 %v1161_v53  ;;  %v1328_v51 = vld [vmem:[#allocation6 + $0x1710] sm:$0xff]  ;;  %v1081_v52 = vld [vmem:[#allocation6 + $0xf58] sm:$0xff] }
 0x194   :  { %1788 = vmatpush1.msra.mxu0 %v920_v56  ;;  %1863 = vmatpush1.msra.mxu1 %v1160_v57  ;;  %v1321_v53 = vld [vmem:[#allocation6 + $0x16d8] sm:$0xff]  ;;  %v1080_v56 = vld [vmem:[#allocation6 + $0xf50] sm:$0xff] }
 0x195   :  { %1789 = vmatprep.subr.mxu0 %v913_v58  ;;  %1864 = vmatprep.subr.mxu1 %v1153_v59  ;;  %v1320_v57 = vld [vmem:[#allocation6 + $0x16d0] sm:$0xff]  ;;  %v1073_v58 = vld [vmem:[#allocation6 + $0xf18] sm:$0xff] }
 0x196   :  { %1790 = vmatpush1.msra.mxu0 %v912_v60  ;;  %1865 = vmatpush1.msra.mxu1 %v1152_v61  ;;  %v1313_v59 = vld [vmem:[#allocation6 + $0x1698] sm:$0xff]  ;;  %v1072_v60 = vld [vmem:[#allocation6 + $0xf10] sm:$0xff] }
 0x197   :  { %1791 = vmatprep.subr.mxu0 %v905_v62  ;;  %1866 = vmatprep.subr.mxu1 %v1145_v0  ;;  %v1312_v61 = vld [vmem:[#allocation6 + $0x1690] sm:$0xff]  ;;  %v1065_v62 = vld [vmem:[#allocation6 + $0xed8] sm:$0xff] }
 0x198   :  { %1792 = vmatpush1.msra.mxu0 %v904_v1  ;;  %1867 = vmatpush1.msra.mxu1 %v1144_v2  ;;  %v1305_v0 = vld [vmem:[#allocation6 + $0x1658] sm:$0xff]  ;;  %v1064_v1 = vld [vmem:[#allocation6 + $0xed0] sm:$0xff] }
 0x199   :  { %1793 = vmatprep.subr.mxu0 %v897_v3  ;;  %1868 = vmatprep.subr.mxu1 %v1137_v4  ;;  %v1304_v2 = vld [vmem:[#allocation6 + $0x1650] sm:$0xff]  ;;  %v1057_v3 = vld [vmem:[#allocation6 + $0xe98] sm:$0xff] }
 0x19a   :  { %1794 = vmatpush1.msra.mxu0 %v896_v5  ;;  %1869 = vmatpush1.msra.mxu1 %v1136_v6  ;;  %v1297_v4 = vld [vmem:[#allocation6 + $0x1618] sm:$0xff]  ;;  %v1056_v5 = vld [vmem:[#allocation6 + $0xe90] sm:$0xff] }
 0x19b   :  { %1795 = vmatprep.subr.mxu0 %v889_v8  ;;  %1870 = vmatprep.subr.mxu1 %v1129_v9  ;;  %v1296_v6 = vld [vmem:[#allocation6 + $0x1610] sm:$0xff]  ;;  %v1049_v8 = vld [vmem:[#allocation6 + $0xe58] sm:$0xff] }
 0x19c   :  { %1796 = vmatpush1.msra.mxu0 %v888_v18  ;;  %1871 = vmatpush1.msra.mxu1 %v1128_v10  ;;  %v1289_v9 = vld [vmem:[#allocation6 + $0x15d8] sm:$0xff]  ;;  %v1048_v18 = vld [vmem:[#allocation6 + $0xe50] sm:$0xff] }
 0x19d   :  { %1797 = vmatprep.subr.mxu0 %v881_v12  ;;  %1872 = vmatprep.subr.mxu1 %v1121_v14  ;;  %v1288_v10 = vld [vmem:[#allocation6 + $0x15d0] sm:$0xff]  ;;  %v1041_v12 = vld [vmem:[#allocation6 + $0xe18] sm:$0xff] }
 0x19e   :  { %1798 = vmatpush1.msra.mxu0 %v880_v22  ;;  %1873 = vmatpush1.msra.mxu1 %v1120_v54  ;;  %v1281_v14 = vld [vmem:[#allocation6 + $0x1598] sm:$0xff]  ;;  %v1040_v22 = vld [vmem:[#allocation6 + $0xe10] sm:$0xff] }
 0x19f   :  { %1799 = vmatprep.subr.mxu0 %v873_v11  ;;  %1874 = vmatprep.subr.mxu1 %v1113_v24  ;;  %v1280_v54 = vld [vmem:[#allocation6 + $0x1590] sm:$0xff]  ;;  %v1033_v11 = vld [vmem:[#allocation6 + $0xdd8] sm:$0xff] }
 0x1a0   :  { %1800 = vmatpush1.msra.mxu0 %v872_v25  ;;  %1875 = vmatpush1.msra.mxu1 %v1112_v13  ;;  %v1273_v24 = vld [vmem:[#allocation6 + $0x1558] sm:$0xff]  ;;  %v1032_v25 = vld [vmem:[#allocation6 + $0xdd0] sm:$0xff] }
 0x1a1   :  { %1801 = vmatprep.subr.mxu0 %v865_v26  ;;  %1876 = vmatprep.subr.mxu1 %v1105_v28  ;;  %v1272_v13 = vld [vmem:[#allocation6 + $0x1550] sm:$0xff]  ;;  %v1025_v26 = vld [vmem:[#allocation6 + $0xd98] sm:$0xff] }
 0x1a2   :  { %1802 = vmatpush1.msra.mxu0 %v864_v29  ;;  %1877 = vmatpush1.msra.mxu1 %v1104_v30  ;;  %v1265_v28 = vld [vmem:[#allocation6 + $0x1518] sm:$0xff]  ;;  %v1024_v29 = vld [vmem:[#allocation6 + $0xd90] sm:$0xff] }
 0x1a3   :  { %1803 = vmatprep.subr.mxu0 %v857_v31  ;;  %1878 = vmatprep.subr.mxu1 %v1353_v36  ;;  %v1264_v30 = vld [vmem:[#allocation6 + $0x1510] sm:$0xff]  ;;  %v1017_v31 = vld [vmem:[#allocation6 + $0xd58] sm:$0xff] }
 0x1a4   :  { %1804 = vmatpush1.msra.mxu0 %v856_v37  ;;  %1879 = vmatpush2.msra.mxu1 %v1352_v38  ;;  %v1257_v36 = vld [vmem:[#allocation6 + $0x14d8] sm:$0xff]  ;;  %v1016_v37 = vld [vmem:[#allocation6 + $0xd50] sm:$0xff] }
 0x1a5   :  { %1805 = vmatprep.subr.mxu0 %v849_v39  ;;  %1880 = vmatprep.subr.mxu1 %v1345_v40  ;;  %v1256_v38 = vld [vmem:[#allocation6 + $0x14d0] sm:$0xff]  ;;  %v1009_v39 = vld [vmem:[#allocation6 + $0xd18] sm:$0xff] }
 0x1a6   :  { %1806 = vmatpush1.msra.mxu0 %v848_v42  ;;  %1881 = vmatpush2.msra.mxu1 %v1344_v43  ;;  %v1249_v40 = vld [vmem:[#allocation6 + $0x1498] sm:$0xff]  ;;  %v1008_v42 = vld [vmem:[#allocation6 + $0xd10] sm:$0xff] }
 0x1a7   :  { %1807 = vmatprep.subr.mxu0 %v1097_v44  ;;  %1882 = vmatprep.subr.mxu1 %v1337_v45  ;;  %v1248_v43 = vld [vmem:[#allocation6 + $0x1490] sm:$0xff]  ;;  %v1001_v44 = vld [vmem:[#allocation6 + $0xcd8] sm:$0xff] }
 0x1a8   :  { %1808 = vmatpush2.msra.mxu0 %v1096_v46  ;;  %1883 = vmatpush2.msra.mxu1 %v1336_v47  ;;  %v1241_v45 = vld [vmem:[#allocation6 + $0x1458] sm:$0xff]  ;;  %v1000_v46 = vld [vmem:[#allocation6 + $0xcd0] sm:$0xff] }
 0x1a9   :  { %1809 = vmatprep.subr.mxu0 %v1089_v48  ;;  %1884 = vmatprep.subr.mxu1 %v1329_v49  ;;  %v1240_v47 = vld [vmem:[#allocation6 + $0x1450] sm:$0xff]  ;;  %v993_v48 = vld [vmem:[#allocation6 + $0xc98] sm:$0xff] }
 0x1aa   :  { %1810 = vmatpush2.msra.mxu0 %v1088_v50  ;;  %1885 = vmatpush2.msra.mxu1 %v1328_v51  ;;  %v1233_v49 = vld [vmem:[#allocation6 + $0x1418] sm:$0xff]  ;;  %v992_v50 = vld [vmem:[#allocation6 + $0xc90] sm:$0xff] }
 0x1ab   :  { %1811 = vmatprep.subr.mxu0 %v1081_v52  ;;  %1886 = vmatprep.subr.mxu1 %v1321_v53  ;;  %v1232_v51 = vld [vmem:[#allocation6 + $0x1410] sm:$0xff]  ;;  %v985_v52 = vld [vmem:[#allocation6 + $0xc58] sm:$0xff]  ;;  %v971_v53 = vld [vmem:[#allocation6 + $0xbe8] sm:$0xff] }
 0x1ac   :  { %1812 = vmatpush2.msra.mxu0 %v1080_v56  ;;  %1887 = vmatpush2.msra.mxu1 %v1320_v57  ;;  %v984_v56 = vld [vmem:[#allocation6 + $0xc50] sm:$0xff]  ;;  %v970_v57 = vld [vmem:[#allocation6 + $0xbe0] sm:$0xff] }
 0x1ad   :  { %1813 = vmatprep.subr.mxu0 %v1073_v58  ;;  %1888 = vmatprep.subr.mxu1 %v1313_v59  ;;  %v977_v58 = vld [vmem:[#allocation6 + $0xc18] sm:$0xff]  ;;  %v963_v59 = vld [vmem:[#allocation6 + $0xba8] sm:$0xff] }
 0x1ae   :  { %1814 = vmatpush2.msra.mxu0 %v1072_v60  ;;  %1889 = vmatpush2.msra.mxu1 %v1312_v61  ;;  %v976_v60 = vld [vmem:[#allocation6 + $0xc10] sm:$0xff]  ;;  %v962_v61 = vld [vmem:[#allocation6 + $0xba0] sm:$0xff] }
 0x1af   :  { %1815 = vmatprep.subr.mxu0 %v1065_v62  ;;  %1890 = vmatprep.subr.mxu1 %v1305_v0  ;;  %v1369_v62 = vld [vmem:[#allocation6 + $0x1858] sm:$0xff]  ;;  %v955_v0 = vld [vmem:[#allocation6 + $0xb68] sm:$0xff] }
 0x1b0   :  { %1816 = vmatpush2.msra.mxu0 %v1064_v1  ;;  %1891 = vmatpush2.msra.mxu1 %v1304_v2  ;;  %v1368_v1 = vld [vmem:[#allocation6 + $0x1850] sm:$0xff]  ;;  %v954_v2 = vld [vmem:[#allocation6 + $0xb60] sm:$0xff] }
 0x1b1   :  { %1817 = vmatprep.subr.mxu0 %v1057_v3  ;;  %1892 = vmatprep.subr.mxu1 %v1297_v4  ;;  %v1361_v3 = vld [vmem:[#allocation6 + $0x1818] sm:$0xff]  ;;  %v947_v4 = vld [vmem:[#allocation6 + $0xb28] sm:$0xff] }
 0x1b2   :  { %1818 = vmatpush2.msra.mxu0 %v1056_v5  ;;  %1893 = vmatpush2.msra.mxu1 %v1296_v6  ;;  %v1360_v5 = vld [vmem:[#allocation6 + $0x1810] sm:$0xff]  ;;  %v946_v6 = vld [vmem:[#allocation6 + $0xb20] sm:$0xff] }
 0x1b3   :  { %1819 = vmatprep.subr.mxu0 %v1049_v8  ;;  %1894 = vmatprep.subr.mxu1 %v1289_v9  ;;  %v715_v8 = vld [vmem:[#allocation6 + $0x3e8] sm:$0xff] }
 0x1b4   :  { %1820 = vmatpush2.msra.mxu0 %v1048_v18  ;;  %1895 = vmatpush2.msra.mxu1 %v1288_v10  ;;  %v939_v9 = vld [vmem:[#allocation6 + $0xae8] sm:$0xff]  ;;  %v714_v18 = vld [vmem:[#allocation6 + $0x3e0] sm:$0xff] }
 0x1b5   :  { %1821 = vmatprep.subr.mxu0 %v1041_v12  ;;  %1896 = vmatprep.subr.mxu1 %v1281_v14  ;;  %v938_v10 = vld [vmem:[#allocation6 + $0xae0] sm:$0xff]  ;;  %v707_v12 = vld [vmem:[#allocation6 + $0x3a8] sm:$0xff] }
 0x1b6   :  { %1822 = vmatpush2.msra.mxu0 %v1040_v22  ;;  %1897 = vmatpush2.msra.mxu1 %v1280_v54  ;;  %v931_v14 = vld [vmem:[#allocation6 + $0xaa8] sm:$0xff]  ;;  %v706_v22 = vld [vmem:[#allocation6 + $0x3a0] sm:$0xff] }
 0x1b7   :  { %1823 = vmatprep.subr.mxu0 %v1033_v11  ;;  %1898 = vmatprep.subr.mxu1 %v1273_v24  ;;  %v930_v54 = vld [vmem:[#allocation6 + $0xaa0] sm:$0xff]  ;;  %v699_v11 = vld [vmem:[#allocation6 + $0x368] sm:$0xff] }
 0x1b8   :  { %1824 = vmatpush2.msra.mxu0 %v1032_v25  ;;  %1899 = vmatpush2.msra.mxu1 %v1272_v13  ;;  %v923_v24 = vld [vmem:[#allocation6 + $0xa68] sm:$0xff]  ;;  %v698_v25 = vld [vmem:[#allocation6 + $0x360] sm:$0xff] }
 0x1b9   :  { %1825 = vmatprep.subr.mxu0 %v1025_v26  ;;  %1900 = vmatprep.subr.mxu1 %v1265_v28  ;;  %v922_v13 = vld [vmem:[#allocation6 + $0xa60] sm:$0xff]  ;;  %v691_v26 = vld [vmem:[#allocation6 + $0x328] sm:$0xff] }
 0x1ba   :  { %1826 = vmatpush2.msra.mxu0 %v1024_v29  ;;  %1901 = vmatpush2.msra.mxu1 %v1264_v30  ;;  %v915_v28 = vld [vmem:[#allocation6 + $0xa28] sm:$0xff]  ;;  %v690_v29 = vld [vmem:[#allocation6 + $0x320] sm:$0xff] }
 0x1bb   :  { %1827 = vmatprep.subr.mxu0 %v1017_v31  ;;  %1902 = vmatprep.subr.mxu1 %v1257_v36  ;;  %v914_v30 = vld [vmem:[#allocation6 + $0xa20] sm:$0xff]  ;;  %v683_v31 = vld [vmem:[#allocation6 + $0x2e8] sm:$0xff] }
 0x1bc   :  { %1828 = vmatpush2.msra.mxu0 %v1016_v37  ;;  %1903 = vmatpush2.msra.mxu1 %v1256_v38  ;;  %v907_v36 = vld [vmem:[#allocation6 + $0x9e8] sm:$0xff]  ;;  %v682_v37 = vld [vmem:[#allocation6 + $0x2e0] sm:$0xff] }
 0x1bd   :  { %1829 = vmatprep.subr.mxu0 %v1009_v39  ;;  %1904 = vmatprep.subr.mxu1 %v1249_v40  ;;  %v906_v38 = vld [vmem:[#allocation6 + $0x9e0] sm:$0xff]  ;;  %v675_v39 = vld [vmem:[#allocation6 + $0x2a8] sm:$0xff] }
 0x1be   :  { %1830 = vmatpush2.msra.mxu0 %v1008_v42  ;;  %1905 = vmatpush2.msra.mxu1 %v1248_v43  ;;  %v899_v40 = vld [vmem:[#allocation6 + $0x9a8] sm:$0xff]  ;;  %v674_v42 = vld [vmem:[#allocation6 + $0x2a0] sm:$0xff] }
 0x1bf   :  { %1831 = vmatprep.subr.mxu0 %v1001_v44  ;;  %1906 = vmatprep.subr.mxu1 %v1241_v45  ;;  %v898_v43 = vld [vmem:[#allocation6 + $0x9a0] sm:$0xff]  ;;  %v667_v44 = vld [vmem:[#allocation6 + $0x268] sm:$0xff] }
 0x1c0   :  { %1832 = vmatpush2.msra.mxu0 %v1000_v46  ;;  %1907 = vmatpush2.msra.mxu1 %v1240_v47  ;;  %v891_v45 = vld [vmem:[#allocation6 + $0x968] sm:$0xff]  ;;  %v666_v46 = vld [vmem:[#allocation6 + $0x260] sm:$0xff] }
 0x1c1   :  { %1833 = vmatprep.subr.mxu0 %v993_v48  ;;  %1908 = vmatprep.subr.mxu1 %v1233_v49  ;;  %v890_v47 = vld [vmem:[#allocation6 + $0x960] sm:$0xff]  ;;  %v659_v48 = vld [vmem:[#allocation6 + $0x228] sm:$0xff] }
 0x1c2   :  { %1834 = vmatpush2.msra.mxu0 %v992_v50  ;;  %1909 = vmatpush2.msra.mxu1 %v1232_v51  ;;  %v883_v49 = vld [vmem:[#allocation6 + $0x928] sm:$0xff]  ;;  %v658_v50 = vld [vmem:[#allocation6 + $0x220] sm:$0xff] }
 0x1c3   :  { %1835 = vmatprep.subr.mxu0 %v985_v52  ;;  %1911 = vmatmul.mubr.f32.vlgmr.msra.gmra.mxu1 %v3424_v7  ;;  %v882_v51 = vld [vmem:[#allocation6 + $0x920] sm:$0xff]  ;;  %v651_v52 = vld [vmem:[#allocation6 + $0x1e8] sm:$0xff] }
 0x1c4   :  { %2059 = vmatprep.subr.mxu1 %v971_v53  ;;  %1836 = vmatpush2.msra.mxu0 %v984_v56  ;;  %v875_v53 = vld [vmem:[#allocation6 + $0x8e8] sm:$0xff]  ;;  %v650_v56 = vld [vmem:[#allocation6 + $0x1e0] sm:$0xff] }
 0x1c5   :  { %2060 = vmatpush1.msra.mxu1 %v970_v57  ;;  %2123 = vmatprep.mubr.f32.mxu1 %v3399_v34  ;;  %v874_v57 = vld [vmem:[#allocation6 + $0x8e0] sm:$0xff] }
 0x1c6   :  { %1837 = vmatprep.subr.mxu0 %v977_v58  ;;  %2061 = vmatprep.subr.mxu1 %v963_v59  ;;  %v643_v58 = vld [vmem:[#allocation6 + $0x1a8] sm:$0xff] }
 0x1c7   :  { %1838 = vmatpush2.msra.mxu0 %v976_v60  ;;  %2062 = vmatpush1.msra.mxu1 %v962_v61  ;;  %v867_v59 = vld [vmem:[#allocation6 + $0x8a8] sm:$0xff]  ;;  %v642_v60 = vld [vmem:[#allocation6 + $0x1a0] sm:$0xff] }
 0x1c8   :  { %1840 = vmatmul.mubr.f32.vlgmr.msra.gmra.mxu0 %v3395_v32  ;;  %1945 = vmatprep.subr.mxu0 %v1369_v62  ;;  %v866_v61 = vld [vmem:[#allocation6 + $0x8a0] sm:$0xff]  ;;  %v635_v62 = vld [vmem:[#allocation6 + $0x168] sm:$0xff] }
 0x1c9   :  { %2063 = vmatprep.subr.mxu1 %v955_v0  ;;  %1946 = vmatpush1.msra.mxu0 %v1368_v1  ;;  %v859_v0 = vld [vmem:[#allocation6 + $0x868] sm:$0xff]  ;;  %v634_v1 = vld [vmem:[#allocation6 + $0x160] sm:$0xff] }
 0x1ca   :  { %2064 = vmatpush1.msra.mxu1 %v954_v2  ;;  %1947 = vmatprep.subr.mxu0 %v1361_v3  ;;  %v858_v2 = vld [vmem:[#allocation6 + $0x860] sm:$0xff]  ;;  %v627_v3 = vld [vmem:[#allocation6 + $0x128] sm:$0xff] }
 0x1cb   :  { %2065 = vmatprep.subr.mxu1 %v947_v4  ;;  %1948 = vmatpush1.msra.mxu0 %v1360_v5  ;;  %v851_v4 = vld [vmem:[#allocation6 + $0x828] sm:$0xff]  ;;  %v626_v5 = vld [vmem:[#allocation6 + $0x120] sm:$0xff] }
 0x1cc   :  { %1981 = vmatprep.mubr.f32.mxu0 %v3268_v19  ;;  %2066 = vmatpush1.msra.mxu1 %v946_v6  ;;  %v850_v6 = vld [vmem:[#allocation6 + $0x820] sm:$0xff] }
 0x1cd   :  { %3004 = vmatmul.mubr.msk.f32.vlgmr.msra.gmra.mxu0 %vm1416_vm2, %v3430_v23  ;;  %1988 = vmatprep.subr.mxu0 %v715_v8  ;;  %v619_v8 = vld [vmem:[#allocation6 + $0xe8] sm:$0xff] }
 0x1ce   :  { %2067 = vmatprep.subr.mxu1 %v939_v9  ;;  %1989 = vmatpush1.msra.mxu0 %v714_v18  ;;  %v1099_v9 = vld [vmem:[#allocation6 + $0xfe8] sm:$0xff]  ;;  %v618_v18 = vld [vmem:[#allocation6 + $0xe0] sm:$0xff] }
 0x1cf   :  { %2052 = vmatprep.mubr.f32.mxu0 %v3397_v33  ;;  %2068 = vmatpush1.msra.mxu1 %v938_v10  ;;  %v1098_v10 = vld [vmem:[#allocation6 + $0xfe0] sm:$0xff] }
 0x1d0   :  { %1990 = vmatprep.subr.mxu0 %v707_v12  ;;  %2069 = vmatprep.subr.mxu1 %v931_v14  ;;  %v611_v12 = vld [vmem:[#allocation6 + $0xa8] sm:$0xff] }
 0x1d1   :  { %1991 = vmatpush1.msra.mxu0 %v706_v22  ;;  %2070 = vmatpush1.msra.mxu1 %v930_v54  ;;  %v1091_v14 = vld [vmem:[#allocation6 + $0xfa8] sm:$0xff]  ;;  %v610_v22 = vld [vmem:[#allocation6 + $0xa0] sm:$0xff] }
 0x1d2   :  { %1992 = vmatprep.subr.mxu0 %v699_v11  ;;  %2071 = vmatprep.subr.mxu1 %v923_v24  ;;  %v1090_v54 = vld [vmem:[#allocation6 + $0xfa0] sm:$0xff]  ;;  %v603_v11 = vld [vmem:[#allocation6 + $0x68] sm:$0xff] }
 0x1d3   :  { %1993 = vmatpush1.msra.mxu0 %v698_v25  ;;  %2072 = vmatpush1.msra.mxu1 %v922_v13  ;;  %v1083_v24 = vld [vmem:[#allocation6 + $0xf68] sm:$0xff]  ;;  %v602_v25 = vld [vmem:[#allocation6 + $0x60] sm:$0xff] }
 0x1d4   :  { %1994 = vmatprep.subr.mxu0 %v691_v26  ;;  %2073 = vmatprep.subr.mxu1 %v915_v28  ;;  %v1082_v13 = vld [vmem:[#allocation6 + $0xf60] sm:$0xff]  ;;  %v595_v26 = vld [vmem:[#allocation6 + $0x28] sm:$0xff] }
 0x1d5   :  { %1995 = vmatpush1.msra.mxu0 %v690_v29  ;;  %2074 = vmatpush1.msra.mxu1 %v914_v30  ;;  %v1075_v28 = vld [vmem:[#allocation6 + $0xf28] sm:$0xff]  ;;  %v594_v29 = vld [vmem:[#allocation6 + $0x20] sm:$0xff] }
 0x1d6   :  { %1996 = vmatprep.subr.mxu0 %v683_v31  ;;  %2075 = vmatprep.subr.mxu1 %v907_v36  ;;  %v1074_v30 = vld [vmem:[#allocation6 + $0xf20] sm:$0xff]  ;;  %v843_v31 = vld [vmem:[#allocation6 + $0x7e8] sm:$0xff] }
 0x1d7   :  { %1997 = vmatpush1.msra.mxu0 %v682_v37  ;;  %2076 = vmatpush1.msra.mxu1 %v906_v38  ;;  %v1067_v36 = vld [vmem:[#allocation6 + $0xee8] sm:$0xff]  ;;  %v842_v37 = vld [vmem:[#allocation6 + $0x7e0] sm:$0xff] }
 0x1d8   :  { %1998 = vmatprep.subr.mxu0 %v675_v39  ;;  %2077 = vmatprep.subr.mxu1 %v899_v40  ;;  %v1066_v38 = vld [vmem:[#allocation6 + $0xee0] sm:$0xff]  ;;  %v835_v39 = vld [vmem:[#allocation6 + $0x7a8] sm:$0xff] }
 0x1d9   :  { %1999 = vmatpush1.msra.mxu0 %v674_v42  ;;  %2078 = vmatpush1.msra.mxu1 %v898_v43  ;;  %v1059_v40 = vld [vmem:[#allocation6 + $0xea8] sm:$0xff]  ;;  %v834_v42 = vld [vmem:[#allocation6 + $0x7a0] sm:$0xff] }
 0x1da   :  { %2000 = vmatprep.subr.mxu0 %v667_v44  ;;  %2079 = vmatprep.subr.mxu1 %v891_v45  ;;  %v1058_v43 = vld [vmem:[#allocation6 + $0xea0] sm:$0xff]  ;;  %v827_v44 = vld [vmem:[#allocation6 + $0x768] sm:$0xff] }
 0x1db   :  { %2001 = vmatpush1.msra.mxu0 %v666_v46  ;;  %2080 = vmatpush1.msra.mxu1 %v890_v47  ;;  %v1051_v45 = vld [vmem:[#allocation6 + $0xe68] sm:$0xff]  ;;  %v826_v46 = vld [vmem:[#allocation6 + $0x760] sm:$0xff] }
 0x1dc   :  { %2002 = vmatprep.subr.mxu0 %v659_v48  ;;  %2081 = vmatprep.subr.mxu1 %v883_v49  ;;  %v1050_v47 = vld [vmem:[#allocation6 + $0xe60] sm:$0xff]  ;;  %v819_v48 = vld [vmem:[#allocation6 + $0x728] sm:$0xff] }
 0x1dd   :  { %2003 = vmatpush1.msra.mxu0 %v658_v50  ;;  %2082 = vmatpush1.msra.mxu1 %v882_v51  ;;  %v1043_v49 = vld [vmem:[#allocation6 + $0xe28] sm:$0xff]  ;;  %v818_v50 = vld [vmem:[#allocation6 + $0x720] sm:$0xff] }
 0x1de   :  { %2004 = vmatprep.subr.mxu0 %v651_v52  ;;  %2083 = vmatprep.subr.mxu1 %v875_v53  ;;  %v1042_v51 = vld [vmem:[#allocation6 + $0xe20] sm:$0xff]  ;;  %v811_v52 = vld [vmem:[#allocation6 + $0x6e8] sm:$0xff] }
 0x1df   :  { %2005 = vmatpush1.msra.mxu0 %v650_v56  ;;  %2084 = vmatpush1.msra.mxu1 %v874_v57  ;;  %v1035_v53 = vld [vmem:[#allocation6 + $0xde8] sm:$0xff]  ;;  %v810_v56 = vld [vmem:[#allocation6 + $0x6e0] sm:$0xff] }
 0x1e0   :  { %2006 = vmatprep.subr.mxu0 %v643_v58  ;;  %2085 = vmatprep.subr.mxu1 %v867_v59  ;;  %v1034_v57 = vld [vmem:[#allocation6 + $0xde0] sm:$0xff]  ;;  %v803_v58 = vld [vmem:[#allocation6 + $0x6a8] sm:$0xff] }
 0x1e1   :  { %2007 = vmatpush1.msra.mxu0 %v642_v60  ;;  %2086 = vmatpush1.msra.mxu1 %v866_v61  ;;  %v1027_v59 = vld [vmem:[#allocation6 + $0xda8] sm:$0xff]  ;;  %v802_v60 = vld [vmem:[#allocation6 + $0x6a0] sm:$0xff] }
 0x1e2   :  { %2008 = vmatprep.subr.mxu0 %v635_v62  ;;  %2087 = vmatprep.subr.mxu1 %v859_v0  ;;  %v1026_v61 = vld [vmem:[#allocation6 + $0xda0] sm:$0xff]  ;;  %v795_v62 = vld [vmem:[#allocation6 + $0x668] sm:$0xff] }
 0x1e3   :  { %2009 = vmatpush1.msra.mxu0 %v634_v1  ;;  %2088 = vmatpush1.msra.mxu1 %v858_v2  ;;  %v1019_v0 = vld [vmem:[#allocation6 + $0xd68] sm:$0xff]  ;;  %v794_v1 = vld [vmem:[#allocation6 + $0x660] sm:$0xff] }
 0x1e4   :  { %2010 = vmatprep.subr.mxu0 %v627_v3  ;;  %2089 = vmatprep.subr.mxu1 %v851_v4  ;;  %v1018_v2 = vld [vmem:[#allocation6 + $0xd60] sm:$0xff]  ;;  %v787_v3 = vld [vmem:[#allocation6 + $0x628] sm:$0xff] }
 0x1e5   :  { %2011 = vmatpush1.msra.mxu0 %v626_v5  ;;  %2090 = vmatpush1.msra.mxu1 %v850_v6  ;;  %v1011_v4 = vld [vmem:[#allocation6 + $0xd28] sm:$0xff]  ;;  %v786_v5 = vld [vmem:[#allocation6 + $0x620] sm:$0xff] }
 0x1e6   :  { %2012 = vmatprep.subr.mxu0 %v619_v8  ;;  %2091 = vmatprep.subr.mxu1 %v1099_v9  ;;  %v1010_v6 = vld [vmem:[#allocation6 + $0xd20] sm:$0xff]  ;;  %v779_v8 = vld [vmem:[#allocation6 + $0x5e8] sm:$0xff] }
 0x1e7   :  { %2013 = vmatpush1.msra.mxu0 %v618_v18  ;;  %2092 = vmatpush2.msra.mxu1 %v1098_v10  ;;  %v1003_v9 = vld [vmem:[#allocation6 + $0xce8] sm:$0xff]  ;;  %v778_v18 = vld [vmem:[#allocation6 + $0x5e0] sm:$0xff] }
 0x1e8   :  { %2014 = vmatprep.subr.mxu0 %v611_v12  ;;  %2093 = vmatprep.subr.mxu1 %v1091_v14  ;;  %v1002_v10 = vld [vmem:[#allocation6 + $0xce0] sm:$0xff]  ;;  %v771_v12 = vld [vmem:[#allocation6 + $0x5a8] sm:$0xff] }
 0x1e9   :  { %2015 = vmatpush1.msra.mxu0 %v610_v22  ;;  %2094 = vmatpush2.msra.mxu1 %v1090_v54  ;;  %v995_v14 = vld [vmem:[#allocation6 + $0xca8] sm:$0xff]  ;;  %v770_v22 = vld [vmem:[#allocation6 + $0x5a0] sm:$0xff] }
 0x1ea   :  { %2016 = vmatprep.subr.mxu0 %v603_v11  ;;  %2095 = vmatprep.subr.mxu1 %v1083_v24  ;;  %v994_v54 = vld [vmem:[#allocation6 + $0xca0] sm:$0xff]  ;;  %v763_v11 = vld [vmem:[#allocation6 + $0x568] sm:$0xff] }
 0x1eb   :  { %2017 = vmatpush1.msra.mxu0 %v602_v25  ;;  %2096 = vmatpush2.msra.mxu1 %v1082_v13  ;;  %v987_v24 = vld [vmem:[#allocation6 + $0xc68] sm:$0xff]  ;;  %v762_v25 = vld [vmem:[#allocation6 + $0x560] sm:$0xff] }
 0x1ec   :  { %2018 = vmatprep.subr.mxu0 %v595_v26  ;;  %2097 = vmatprep.subr.mxu1 %v1075_v28  ;;  %v986_v13 = vld [vmem:[#allocation6 + $0xc60] sm:$0xff]  ;;  %v755_v26 = vld [vmem:[#allocation6 + $0x528] sm:$0xff] }
 0x1ed   :  { %2019 = vmatpush1.msra.mxu0 %v594_v29  ;;  %2098 = vmatpush2.msra.mxu1 %v1074_v30  ;;  %v979_v28 = vld [vmem:[#allocation6 + $0xc28] sm:$0xff]  ;;  %v754_v29 = vld [vmem:[#allocation6 + $0x520] sm:$0xff] }
 0x1ee   :  { %2020 = vmatprep.subr.mxu0 %v843_v31  ;;  %2099 = vmatprep.subr.mxu1 %v1067_v36  ;;  %v978_v30 = vld [vmem:[#allocation6 + $0xc20] sm:$0xff]  ;;  %v747_v31 = vld [vmem:[#allocation6 + $0x4e8] sm:$0xff]  ;;  %v717_v36 = vld [vmem:[#allocation6 + $0x3f8] sm:$0xff] }
 0x1ef   :  { %2021 = vmatpush2.msra.mxu0 %v842_v37  ;;  %2100 = vmatpush2.msra.mxu1 %v1066_v38  ;;  %v746_v37 = vld [vmem:[#allocation6 + $0x4e0] sm:$0xff]  ;;  %v716_v38 = vld [vmem:[#allocation6 + $0x3f0] sm:$0xff] }
 0x1f0   :  { %2022 = vmatprep.subr.mxu0 %v835_v39  ;;  %2101 = vmatprep.subr.mxu1 %v1059_v40  ;;  %v739_v39 = vld [vmem:[#allocation6 + $0x4a8] sm:$0xff]  ;;  %v709_v40 = vld [vmem:[#allocation6 + $0x3b8] sm:$0xff] }
 0x1f1   :  { %2023 = vmatpush2.msra.mxu0 %v834_v42  ;;  %2102 = vmatpush2.msra.mxu1 %v1058_v43  ;;  %v738_v42 = vld [vmem:[#allocation6 + $0x4a0] sm:$0xff]  ;;  %v708_v43 = vld [vmem:[#allocation6 + $0x3b0] sm:$0xff] }
 0x1f2   :  { %2024 = vmatprep.subr.mxu0 %v827_v44  ;;  %2103 = vmatprep.subr.mxu1 %v1051_v45  ;;  %v731_v44 = vld [vmem:[#allocation6 + $0x468] sm:$0xff]  ;;  %v701_v45 = vld [vmem:[#allocation6 + $0x378] sm:$0xff] }
 0x1f3   :  { %2025 = vmatpush2.msra.mxu0 %v826_v46  ;;  %2104 = vmatpush2.msra.mxu1 %v1050_v47  ;;  %v730_v46 = vld [vmem:[#allocation6 + $0x460] sm:$0xff]  ;;  %v700_v47 = vld [vmem:[#allocation6 + $0x370] sm:$0xff] }
 0x1f4   :  { %2026 = vmatprep.subr.mxu0 %v819_v48  ;;  %2105 = vmatprep.subr.mxu1 %v1043_v49  ;;  %v723_v48 = vld [vmem:[#allocation6 + $0x428] sm:$0xff]  ;;  %v693_v49 = vld [vmem:[#allocation6 + $0x338] sm:$0xff] }
 0x1f5   :  { %2027 = vmatpush2.msra.mxu0 %v818_v50  ;;  %2106 = vmatpush2.msra.mxu1 %v1042_v51  ;;  %v722_v50 = vld [vmem:[#allocation6 + $0x420] sm:$0xff]  ;;  %v692_v51 = vld [vmem:[#allocation6 + $0x330] sm:$0xff] }
 0x1f6   :  { %2028 = vmatprep.subr.mxu0 %v811_v52  ;;  %2107 = vmatprep.subr.mxu1 %v1035_v53  ;;  %v1227_v52 = vld [vmem:[#allocation6 + $0x13e8] sm:$0xff]  ;;  %v1226_v53 = vld [vmem:[#allocation6 + $0x13e0] sm:$0xff] }
 0x1f7   :  { %2029 = vmatpush2.msra.mxu0 %v810_v56  ;;  %2108 = vmatpush2.msra.mxu1 %v1034_v57  ;;  %v684_v56 = vld [vmem:[#allocation6 + $0x2f0] sm:$0xff]  ;;  %v1219_v57 = vld [vmem:[#allocation6 + $0x13a8] sm:$0xff] }
 0x1f8   :  { %2030 = vmatprep.subr.mxu0 %v803_v58  ;;  %2109 = vmatprep.subr.mxu1 %v1027_v59  ;;  %v677_v58 = vld [vmem:[#allocation6 + $0x2b8] sm:$0xff]  ;;  %v1218_v59 = vld [vmem:[#allocation6 + $0x13a0] sm:$0xff] }
 0x1f9   :  { %2031 = vmatpush2.msra.mxu0 %v802_v60  ;;  %2110 = vmatpush2.msra.mxu1 %v1026_v61  ;;  %v676_v60 = vld [vmem:[#allocation6 + $0x2b0] sm:$0xff]  ;;  %v1211_v61 = vld [vmem:[#allocation6 + $0x1368] sm:$0xff] }
 0x1fa   :  { %2032 = vmatprep.subr.mxu0 %v795_v62  ;;  %2111 = vmatprep.subr.mxu1 %v1019_v0  ;;  %v669_v62 = vld [vmem:[#allocation6 + $0x278] sm:$0xff]  ;;  %v1210_v0 = vld [vmem:[#allocation6 + $0x1360] sm:$0xff] }
 0x1fb   :  { %2033 = vmatpush2.msra.mxu0 %v794_v1  ;;  %2112 = vmatpush2.msra.mxu1 %v1018_v2  ;;  %v668_v1 = vld [vmem:[#allocation6 + $0x270] sm:$0xff]  ;;  %v1203_v2 = vld [vmem:[#allocation6 + $0x1328] sm:$0xff] }
 0x1fc   :  { %2034 = vmatprep.subr.mxu0 %v787_v3  ;;  %2113 = vmatprep.subr.mxu1 %v1011_v4  ;;  %v661_v3 = vld [vmem:[#allocation6 + $0x238] sm:$0xff]  ;;  %v1202_v4 = vld [vmem:[#allocation6 + $0x1320] sm:$0xff] }
 0x1fd   :  { %2035 = vmatpush2.msra.mxu0 %v786_v5  ;;  %2114 = vmatpush2.msra.mxu1 %v1010_v6  ;;  %v660_v5 = vld [vmem:[#allocation6 + $0x230] sm:$0xff]  ;;  %v1195_v6 = vld [vmem:[#allocation6 + $0x12e8] sm:$0xff] }
 0x1fe   :  { %2036 = vmatprep.subr.mxu0 %v779_v8  ;;  %2115 = vmatprep.subr.mxu1 %v1003_v9  ;;  %v653_v8 = vld [vmem:[#allocation6 + $0x1f8] sm:$0xff]  ;;  %v1194_v9 = vld [vmem:[#allocation6 + $0x12e0] sm:$0xff] }
 0x1ff   :  { %2037 = vmatpush2.msra.mxu0 %v778_v18  ;;  %2116 = vmatpush2.msra.mxu1 %v1002_v10  ;;  %v652_v18 = vld [vmem:[#allocation6 + $0x1f0] sm:$0xff]  ;;  %v1187_v10 = vld [vmem:[#allocation6 + $0x12a8] sm:$0xff] }
 0x200   :  { %2038 = vmatprep.subr.mxu0 %v771_v12  ;;  %2117 = vmatprep.subr.mxu1 %v995_v14  ;;  %v645_v12 = vld [vmem:[#allocation6 + $0x1b8] sm:$0xff]  ;;  %v1186_v14 = vld [vmem:[#allocation6 + $0x12a0] sm:$0xff] }
 0x201   :  { %2039 = vmatpush2.msra.mxu0 %v770_v22  ;;  %2118 = vmatpush2.msra.mxu1 %v994_v54  ;;  %v644_v22 = vld [vmem:[#allocation6 + $0x1b0] sm:$0xff]  ;;  %v1179_v54 = vld [vmem:[#allocation6 + $0x1268] sm:$0xff] }
 0x202   :  { %2040 = vmatprep.subr.mxu0 %v763_v11  ;;  %2119 = vmatprep.subr.mxu1 %v987_v24  ;;  %v637_v11 = vld [vmem:[#allocation6 + $0x178] sm:$0xff]  ;;  %v1178_v24 = vld [vmem:[#allocation6 + $0x1260] sm:$0xff] }
 0x203   :  { %2041 = vmatpush2.msra.mxu0 %v762_v25  ;;  %2120 = vmatpush2.msra.mxu1 %v986_v13  ;;  %v636_v25 = vld [vmem:[#allocation6 + $0x170] sm:$0xff]  ;;  %v1171_v13 = vld [vmem:[#allocation6 + $0x1228] sm:$0xff] }
 0x204   :  { %2042 = vmatprep.subr.mxu0 %v755_v26  ;;  %2121 = vmatprep.subr.mxu1 %v979_v28  ;;  %v629_v26 = vld [vmem:[#allocation6 + $0x138] sm:$0xff]  ;;  %v1170_v28 = vld [vmem:[#allocation6 + $0x1220] sm:$0xff] }
 0x205   :  { %2043 = vmatpush2.msra.mxu0 %v754_v29  ;;  %2122 = vmatpush2.msra.mxu1 %v978_v30  ;;  %v628_v29 = vld [vmem:[#allocation6 + $0x130] sm:$0xff]  ;;  %v1163_v30 = vld [vmem:[#allocation6 + $0x11e8] sm:$0xff] }
 0x206   :  { %2044 = vmatprep.subr.mxu0 %v747_v31  ;;  %2124 = vmatmul.mubr.f32.vlgmr.msra.gmra.mxu1 %v3395_v32  ;;  %v621_v31 = vld [vmem:[#allocation6 + $0xf8] sm:$0xff] }
 0x207   :  { %2272 = vmatprep.subr.mxu1 %v717_v36  ;;  %2045 = vmatpush2.msra.mxu0 %v746_v37  ;;  %v1162_v36 = vld [vmem:[#allocation6 + $0x11e0] sm:$0xff]  ;;  %v620_v37 = vld [vmem:[#allocation6 + $0xf0] sm:$0xff] }
 0x208   :  { %2273 = vmatpush1.msra.mxu1 %v716_v38  ;;  %2336 = vmatprep.mubr.f32.mxu1 %v3397_v33  ;;  %v685_v33 = vld [vmem:[#allocation6 + $0x2f8] sm:$0xff]  ;;  %v1155_v38 = vld [vmem:[#allocation6 + $0x11a8] sm:$0xff] }
 0x209   :  { %2046 = vmatprep.subr.mxu0 %v739_v39  ;;  %2274 = vmatprep.subr.mxu1 %v709_v40  ;;  %v613_v39 = vld [vmem:[#allocation6 + $0xb8] sm:$0xff]  ;;  %v1154_v40 = vld [vmem:[#allocation6 + $0x11a0] sm:$0xff] }
 0x20a   :  { %2047 = vmatpush2.msra.mxu0 %v738_v42  ;;  %2275 = vmatpush1.msra.mxu1 %v708_v43  ;;  %v612_v42 = vld [vmem:[#allocation6 + $0xb0] sm:$0xff]  ;;  %v1147_v43 = vld [vmem:[#allocation6 + $0x1168] sm:$0xff] }
 0x20b   :  { %2048 = vmatprep.subr.mxu0 %v731_v44  ;;  %2276 = vmatprep.subr.mxu1 %v701_v45  ;;  %v605_v44 = vld [vmem:[#allocation6 + $0x78] sm:$0xff]  ;;  %v1146_v45 = vld [vmem:[#allocation6 + $0x1160] sm:$0xff] }
 0x20c   :  { %2049 = vmatpush2.msra.mxu0 %v730_v46  ;;  %2277 = vmatpush1.msra.mxu1 %v700_v47  ;;  %v604_v46 = vld [vmem:[#allocation6 + $0x70] sm:$0xff]  ;;  %v1139_v47 = vld [vmem:[#allocation6 + $0x1128] sm:$0xff] }
 0x20d   :  { %2050 = vmatprep.subr.mxu0 %v723_v48  ;;  %2278 = vmatprep.subr.mxu1 %v693_v49  ;;  %v597_v48 = vld [vmem:[#allocation6 + $0x38] sm:$0xff]  ;;  %v1138_v49 = vld [vmem:[#allocation6 + $0x1120] sm:$0xff] }
 0x20e   :  { %2051 = vmatpush2.msra.mxu0 %v722_v50  ;;  %2279 = vmatpush1.msra.mxu1 %v692_v51  ;;  %v596_v50 = vld [vmem:[#allocation6 + $0x30] sm:$0xff]  ;;  %v1131_v51 = vld [vmem:[#allocation6 + $0x10e8] sm:$0xff] }
 0x20f   :  { %2053 = vmatmul.mubr.f32.vlgmr.msra.gmra.mxu0 %v3401_v35  ;;  %2130 = vmatprep.subr.mxu0 %v1227_v52  ;;  %v845_v52 = vld [vmem:[#allocation6 + $0x7f8] sm:$0xff] }
 0x210   :  { %2280 = vmatprep.subr.mxu1 %v685_v33  ;;  %2131 = vmatpush1.msra.mxu0 %v1226_v53  ;;  %v1130_v33 = vld [vmem:[#allocation6 + $0x10e0] sm:$0xff]  ;;  %v844_v53 = vld [vmem:[#allocation6 + $0x7f0] sm:$0xff] }
 0x211   :  { %2194 = vmatprep.mubr.f32.mxu0 %v3419_v63  ;;  %2281 = vmatpush1.msra.mxu1 %v684_v56  ;;  %v1123_v56 = vld [vmem:[#allocation6 + $0x10a8] sm:$0xff] }
 0x212   :  { %2132 = vmatprep.subr.mxu0 %v1219_v57  ;;  %2282 = vmatprep.subr.mxu1 %v677_v58  ;;  %v837_v57 = vld [vmem:[#allocation6 + $0x7b8] sm:$0xff]  ;;  %v1122_v58 = vld [vmem:[#allocation6 + $0x10a0] sm:$0xff] }
 0x213   :  { %2133 = vmatpush1.msra.mxu0 %v1218_v59  ;;  %2283 = vmatpush1.msra.mxu1 %v676_v60  ;;  %v836_v59 = vld [vmem:[#allocation6 + $0x7b0] sm:$0xff]  ;;  %v1115_v60 = vld [vmem:[#allocation6 + $0x1068] sm:$0xff] }
 0x214   :  { %2134 = vmatprep.subr.mxu0 %v1211_v61  ;;  %2284 = vmatprep.subr.mxu1 %v669_v62  ;;  %v829_v61 = vld [vmem:[#allocation6 + $0x778] sm:$0xff]  ;;  %v1114_v62 = vld [vmem:[#allocation6 + $0x1060] sm:$0xff] }
 0x215   :  { %2135 = vmatpush1.msra.mxu0 %v1210_v0  ;;  %2285 = vmatpush1.msra.mxu1 %v668_v1  ;;  %v828_v0 = vld [vmem:[#allocation6 + $0x770] sm:$0xff]  ;;  %v1107_v1 = vld [vmem:[#allocation6 + $0x1028] sm:$0xff] }
 0x216   :  { %2136 = vmatprep.subr.mxu0 %v1203_v2  ;;  %2286 = vmatprep.subr.mxu1 %v661_v3  ;;  %v821_v2 = vld [vmem:[#allocation6 + $0x738] sm:$0xff]  ;;  %v1106_v3 = vld [vmem:[#allocation6 + $0x1020] sm:$0xff] }
 0x217   :  { %2137 = vmatpush1.msra.mxu0 %v1202_v4  ;;  %2287 = vmatpush1.msra.mxu1 %v660_v5  ;;  %v820_v4 = vld [vmem:[#allocation6 + $0x730] sm:$0xff]  ;;  %v1355_v5 = vld [vmem:[#allocation6 + $0x17e8] sm:$0xff] }
 0x218   :  { %2138 = vmatprep.subr.mxu0 %v1195_v6  ;;  %2288 = vmatprep.subr.mxu1 %v653_v8  ;;  %v813_v6 = vld [vmem:[#allocation6 + $0x6f8] sm:$0xff]  ;;  %v1354_v8 = vld [vmem:[#allocation6 + $0x17e0] sm:$0xff] }
 0x219   :  { %2139 = vmatpush1.msra.mxu0 %v1194_v9  ;;  %2289 = vmatpush1.msra.mxu1 %v652_v18  ;;  %v812_v9 = vld [vmem:[#allocation6 + $0x6f0] sm:$0xff]  ;;  %v1347_v18 = vld [vmem:[#allocation6 + $0x17a8] sm:$0xff] }
 0x21a   :  { %2140 = vmatprep.subr.mxu0 %v1187_v10  ;;  %2290 = vmatprep.subr.mxu1 %v645_v12  ;;  %v805_v10 = vld [vmem:[#allocation6 + $0x6b8] sm:$0xff]  ;;  %v1346_v12 = vld [vmem:[#allocation6 + $0x17a0] sm:$0xff] }
 0x21b   :  { %2141 = vmatpush1.msra.mxu0 %v1186_v14  ;;  %2291 = vmatpush1.msra.mxu1 %v644_v22  ;;  %v804_v14 = vld [vmem:[#allocation6 + $0x6b0] sm:$0xff]  ;;  %v1339_v22 = vld [vmem:[#allocation6 + $0x1768] sm:$0xff] }
 0x21c   :  { %2142 = vmatprep.subr.mxu0 %v1179_v54  ;;  %2292 = vmatprep.subr.mxu1 %v637_v11  ;;  %v797_v54 = vld [vmem:[#allocation6 + $0x678] sm:$0xff]  ;;  %v1338_v11 = vld [vmem:[#allocation6 + $0x1760] sm:$0xff] }
 0x21d   :  { %2143 = vmatpush1.msra.mxu0 %v1178_v24  ;;  %2293 = vmatpush1.msra.mxu1 %v636_v25  ;;  %v796_v24 = vld [vmem:[#allocation6 + $0x670] sm:$0xff]  ;;  %v1331_v25 = vld [vmem:[#allocation6 + $0x1728] sm:$0xff] }
 0x21e   :  { %2144 = vmatprep.subr.mxu0 %v1171_v13  ;;  %2294 = vmatprep.subr.mxu1 %v629_v26  ;;  %v789_v13 = vld [vmem:[#allocation6 + $0x638] sm:$0xff]  ;;  %v1330_v26 = vld [vmem:[#allocation6 + $0x1720] sm:$0xff] }
 0x21f   :  { %2145 = vmatpush1.msra.mxu0 %v1170_v28  ;;  %2295 = vmatpush1.msra.mxu1 %v628_v29  ;;  %v788_v28 = vld [vmem:[#allocation6 + $0x630] sm:$0xff]  ;;  %v1323_v29 = vld [vmem:[#allocation6 + $0x16e8] sm:$0xff] }
 0x220   :  { %2146 = vmatprep.subr.mxu0 %v1163_v30  ;;  %2296 = vmatprep.subr.mxu1 %v621_v31  ;;  %v781_v30 = vld [vmem:[#allocation6 + $0x5f8] sm:$0xff]  ;;  %v1322_v31 = vld [vmem:[#allocation6 + $0x16e0] sm:$0xff] }
 0x221   :  { %2147 = vmatpush1.msra.mxu0 %v1162_v36  ;;  %2297 = vmatpush1.msra.mxu1 %v620_v37  ;;  %v780_v36 = vld [vmem:[#allocation6 + $0x5f0] sm:$0xff]  ;;  %v1315_v37 = vld [vmem:[#allocation6 + $0x16a8] sm:$0xff] }
 0x222   :  { %2148 = vmatprep.subr.mxu0 %v1155_v38  ;;  %2298 = vmatprep.subr.mxu1 %v613_v39  ;;  %v773_v38 = vld [vmem:[#allocation6 + $0x5b8] sm:$0xff]  ;;  %v1314_v39 = vld [vmem:[#allocation6 + $0x16a0] sm:$0xff] }
 0x223   :  { %2149 = vmatpush1.msra.mxu0 %v1154_v40  ;;  %2299 = vmatpush1.msra.mxu1 %v612_v42  ;;  %v772_v40 = vld [vmem:[#allocation6 + $0x5b0] sm:$0xff]  ;;  %v1307_v42 = vld [vmem:[#allocation6 + $0x1668] sm:$0xff] }
 0x224   :  { %2150 = vmatprep.subr.mxu0 %v1147_v43  ;;  %2300 = vmatprep.subr.mxu1 %v605_v44  ;;  %v765_v43 = vld [vmem:[#allocation6 + $0x578] sm:$0xff]  ;;  %v1306_v44 = vld [vmem:[#allocation6 + $0x1660] sm:$0xff] }
 0x225   :  { %2151 = vmatpush1.msra.mxu0 %v1146_v45  ;;  %2301 = vmatpush1.msra.mxu1 %v604_v46  ;;  %v764_v45 = vld [vmem:[#allocation6 + $0x570] sm:$0xff]  ;;  %v1299_v46 = vld [vmem:[#allocation6 + $0x1628] sm:$0xff] }
 0x226   :  { %2152 = vmatprep.subr.mxu0 %v1139_v47  ;;  %2302 = vmatprep.subr.mxu1 %v597_v48  ;;  %v757_v47 = vld [vmem:[#allocation6 + $0x538] sm:$0xff]  ;;  %v1298_v48 = vld [vmem:[#allocation6 + $0x1620] sm:$0xff] }
 0x227   :  { %2153 = vmatpush1.msra.mxu0 %v1138_v49  ;;  %2303 = vmatpush1.msra.mxu1 %v596_v50  ;;  %v756_v49 = vld [vmem:[#allocation6 + $0x530] sm:$0xff]  ;;  %v1291_v50 = vld [vmem:[#allocation6 + $0x15e8] sm:$0xff] }
 0x228   :  { %2154 = vmatprep.subr.mxu0 %v1131_v51  ;;  %2304 = vmatprep.subr.mxu1 %v845_v52  ;;  %v749_v51 = vld [vmem:[#allocation6 + $0x4f8] sm:$0xff]  ;;  %v1290_v52 = vld [vmem:[#allocation6 + $0x15e0] sm:$0xff] }
 0x229   :  { %2155 = vmatpush1.msra.mxu0 %v1130_v33  ;;  %2305 = vmatpush2.msra.mxu1 %v844_v53  ;;  %v748_v33 = vld [vmem:[#allocation6 + $0x4f0] sm:$0xff]  ;;  %v1283_v53 = vld [vmem:[#allocation6 + $0x15a8] sm:$0xff] }
 0x22a   :  { %2156 = vmatprep.subr.mxu0 %v1123_v56  ;;  %2306 = vmatprep.subr.mxu1 %v837_v57  ;;  %v741_v56 = vld [vmem:[#allocation6 + $0x4b8] sm:$0xff]  ;;  %v1282_v57 = vld [vmem:[#allocation6 + $0x15a0] sm:$0xff] }
 0x22b   :  { %2157 = vmatpush1.msra.mxu0 %v1122_v58  ;;  %2307 = vmatpush2.msra.mxu1 %v836_v59  ;;  %v740_v58 = vld [vmem:[#allocation6 + $0x4b0] sm:$0xff]  ;;  %v1275_v59 = vld [vmem:[#allocation6 + $0x1568] sm:$0xff] }
 0x22c   :  { %2158 = vmatprep.subr.mxu0 %v1115_v60  ;;  %2308 = vmatprep.subr.mxu1 %v829_v61  ;;  %v733_v60 = vld [vmem:[#allocation6 + $0x478] sm:$0xff]  ;;  %v1274_v61 = vld [vmem:[#allocation6 + $0x1560] sm:$0xff] }
 0x22d   :  { %2159 = vmatpush1.msra.mxu0 %v1114_v62  ;;  %2309 = vmatpush2.msra.mxu1 %v828_v0  ;;  %v732_v62 = vld [vmem:[#allocation6 + $0x470] sm:$0xff]  ;;  %v1267_v0 = vld [vmem:[#allocation6 + $0x1528] sm:$0xff] }
 0x22e   :  { %2160 = vmatprep.subr.mxu0 %v1107_v1  ;;  %2310 = vmatprep.subr.mxu1 %v821_v2  ;;  %v725_v1 = vld [vmem:[#allocation6 + $0x438] sm:$0xff]  ;;  %v1266_v2 = vld [vmem:[#allocation6 + $0x1520] sm:$0xff] }
 0x22f   :  { %2161 = vmatpush1.msra.mxu0 %v1106_v3  ;;  %2311 = vmatpush2.msra.mxu1 %v820_v4  ;;  %v724_v3 = vld [vmem:[#allocation6 + $0x430] sm:$0xff]  ;;  %v1259_v4 = vld [vmem:[#allocation6 + $0x14e8] sm:$0xff] }
 0x230   :  { %2162 = vmatprep.subr.mxu0 %v1355_v5  ;;  %2312 = vmatprep.subr.mxu1 %v813_v6  ;;  %v1229_v5 = vld [vmem:[#allocation6 + $0x13f8] sm:$0xff]  ;;  %v1258_v6 = vld [vmem:[#allocation6 + $0x14e0] sm:$0xff] }
 0x231   :  { %2163 = vmatpush2.msra.mxu0 %v1354_v8  ;;  %2313 = vmatpush2.msra.mxu1 %v812_v9  ;;  %v1228_v8 = vld [vmem:[#allocation6 + $0x13f0] sm:$0xff]  ;;  %v1251_v9 = vld [vmem:[#allocation6 + $0x14a8] sm:$0xff] }
 0x232   :  { %2164 = vmatprep.subr.mxu0 %v1347_v18  ;;  %2314 = vmatprep.subr.mxu1 %v805_v10  ;;  %v1221_v18 = vld [vmem:[#allocation6 + $0x13b8] sm:$0xff]  ;;  %v1250_v10 = vld [vmem:[#allocation6 + $0x14a0] sm:$0xff] }
 0x233   :  { %2165 = vmatpush2.msra.mxu0 %v1346_v12  ;;  %2315 = vmatpush2.msra.mxu1 %v804_v14  ;;  %v1220_v12 = vld [vmem:[#allocation6 + $0x13b0] sm:$0xff]  ;;  %v1243_v14 = vld [vmem:[#allocation6 + $0x1468] sm:$0xff] }
 0x234   :  { %2166 = vmatprep.subr.mxu0 %v1339_v22  ;;  %2316 = vmatprep.subr.mxu1 %v797_v54  ;;  %v1213_v22 = vld [vmem:[#allocation6 + $0x1378] sm:$0xff]  ;;  %v1242_v54 = vld [vmem:[#allocation6 + $0x1460] sm:$0xff] }
 0x235   :  { %2167 = vmatpush2.msra.mxu0 %v1338_v11  ;;  %2317 = vmatpush2.msra.mxu1 %v796_v24  ;;  %v1212_v11 = vld [vmem:[#allocation6 + $0x1370] sm:$0xff]  ;;  %v1235_v24 = vld [vmem:[#allocation6 + $0x1428] sm:$0xff] }
 0x236   :  { %2168 = vmatprep.subr.mxu0 %v1331_v25  ;;  %2318 = vmatprep.subr.mxu1 %v789_v13  ;;  %v1205_v25 = vld [vmem:[#allocation6 + $0x1338] sm:$0xff]  ;;  %v1204_v13 = vld [vmem:[#allocation6 + $0x1330] sm:$0xff] }
 0x237   :  { %2169 = vmatpush2.msra.mxu0 %v1330_v26  ;;  %2319 = vmatpush2.msra.mxu1 %v788_v28  ;;  %v1371_v26 = vld [vmem:[#allocation6 + $0x1868] sm:$0xff]  ;;  %v1370_v28 = vld [vmem:[#allocation6 + $0x1860] sm:$0xff] }
 0x238   :  { %2170 = vmatprep.subr.mxu0 %v1323_v29  ;;  %2320 = vmatprep.subr.mxu1 %v781_v30  ;;  %v1196_v29 = vld [vmem:[#allocation6 + $0x12f0] sm:$0xff]  ;;  %v1363_v30 = vld [vmem:[#allocation6 + $0x1828] sm:$0xff] }
 0x239   :  { %2171 = vmatpush2.msra.mxu0 %v1322_v31  ;;  %2321 = vmatpush2.msra.mxu1 %v780_v36  ;;  %v1189_v31 = vld [vmem:[#allocation6 + $0x12b8] sm:$0xff]  ;;  %v1362_v36 = vld [vmem:[#allocation6 + $0x1820] sm:$0xff] }
 0x23a   :  { %2172 = vmatprep.subr.mxu0 %v1315_v37  ;;  %2322 = vmatprep.subr.mxu1 %v773_v38  ;;  %v1188_v37 = vld [vmem:[#allocation6 + $0x12b0] sm:$0xff]  ;;  %v973_v38 = vld [vmem:[#allocation6 + $0xbf8] sm:$0xff] }
 0x23b   :  { %2173 = vmatpush2.msra.mxu0 %v1314_v39  ;;  %2323 = vmatpush2.msra.mxu1 %v772_v40  ;;  %v1181_v39 = vld [vmem:[#allocation6 + $0x1278] sm:$0xff]  ;;  %v972_v40 = vld [vmem:[#allocation6 + $0xbf0] sm:$0xff] }
 0x23c   :  { %2174 = vmatprep.subr.mxu0 %v1307_v42  ;;  %2324 = vmatprep.subr.mxu1 %v765_v43  ;;  %v1180_v42 = vld [vmem:[#allocation6 + $0x1270] sm:$0xff]  ;;  %v965_v43 = vld [vmem:[#allocation6 + $0xbb8] sm:$0xff] }
 0x23d   :  { %2175 = vmatpush2.msra.mxu0 %v1306_v44  ;;  %2325 = vmatpush2.msra.mxu1 %v764_v45  ;;  %v1173_v44 = vld [vmem:[#allocation6 + $0x1238] sm:$0xff]  ;;  %v964_v45 = vld [vmem:[#allocation6 + $0xbb0] sm:$0xff] }
 0x23e   :  { %2176 = vmatprep.subr.mxu0 %v1299_v46  ;;  %2326 = vmatprep.subr.mxu1 %v757_v47  ;;  %v1172_v46 = vld [vmem:[#allocation6 + $0x1230] sm:$0xff]  ;;  %v957_v47 = vld [vmem:[#allocation6 + $0xb78] sm:$0xff] }
 0x23f   :  { %2177 = vmatpush2.msra.mxu0 %v1298_v48  ;;  %2327 = vmatpush2.msra.mxu1 %v756_v49  ;;  %v1165_v48 = vld [vmem:[#allocation6 + $0x11f8] sm:$0xff]  ;;  %v956_v49 = vld [vmem:[#allocation6 + $0xb70] sm:$0xff] }
 0x240   :  { %2178 = vmatprep.subr.mxu0 %v1291_v50  ;;  %2328 = vmatprep.subr.mxu1 %v749_v51  ;;  %v1164_v50 = vld [vmem:[#allocation6 + $0x11f0] sm:$0xff]  ;;  %v949_v51 = vld [vmem:[#allocation6 + $0xb38] sm:$0xff] }
 0x241   :  { %2179 = vmatpush2.msra.mxu0 %v1290_v52  ;;  %2329 = vmatpush2.msra.mxu1 %v748_v33  ;;  %v1157_v52 = vld [vmem:[#allocation6 + $0x11b8] sm:$0xff]  ;;  %v948_v33 = vld [vmem:[#allocation6 + $0xb30] sm:$0xff] }
 0x242   :  { %2180 = vmatprep.subr.mxu0 %v1283_v53  ;;  %2330 = vmatprep.subr.mxu1 %v741_v56  ;;  %v1156_v53 = vld [vmem:[#allocation6 + $0x11b0] sm:$0xff]  ;;  %v941_v56 = vld [vmem:[#allocation6 + $0xaf8] sm:$0xff] }
 0x243   :  { %2181 = vmatpush2.msra.mxu0 %v1282_v57  ;;  %2331 = vmatpush2.msra.mxu1 %v740_v58  ;;  %v1149_v57 = vld [vmem:[#allocation6 + $0x1178] sm:$0xff]  ;;  %v1148_v58 = vld [vmem:[#allocation6 + $0x1170] sm:$0xff] }
 0x244   :  { %2182 = vmatprep.subr.mxu0 %v1275_v59  ;;  %2332 = vmatprep.subr.mxu1 %v733_v60  ;;  %v933_v59 = vld [vmem:[#allocation6 + $0xab8] sm:$0xff] }
 0x245   :  { %2183 = vmatpush2.msra.mxu0 %v1274_v61  ;;  %2333 = vmatpush2.msra.mxu1 %v732_v62  ;;  %v1141_v60 = vld [vmem:[#allocation6 + $0x1138] sm:$0xff]  ;;  %v932_v61 = vld [vmem:[#allocation6 + $0xab0] sm:$0xff] }
 0x246   :  { %2184 = vmatprep.subr.mxu0 %v1267_v0  ;;  %2334 = vmatprep.subr.mxu1 %v725_v1  ;;  %v1140_v62 = vld [vmem:[#allocation6 + $0x1130] sm:$0xff]  ;;  %v925_v0 = vld [vmem:[#allocation6 + $0xa78] sm:$0xff] }
 0x247   :  { %2185 = vmatpush2.msra.mxu0 %v1266_v2  ;;  %2335 = vmatpush2.msra.mxu1 %v724_v3  ;;  %v1133_v1 = vld [vmem:[#allocation6 + $0x10f8] sm:$0xff]  ;;  %v924_v2 = vld [vmem:[#allocation6 + $0xa70] sm:$0xff] }
 0x248   :  { %2186 = vmatprep.subr.mxu0 %v1259_v4  ;;  %2337 = vmatmul.mubr.f32.vlgmr.msra.gmra.mxu1 %v3401_v35  ;;  %v1234_v35 = vld [vmem:[#allocation6 + $0x1420] sm:$0xff]  ;;  %v1132_v3 = vld [vmem:[#allocation6 + $0x10f0] sm:$0xff]  ;;  %v917_v4 = vld [vmem:[#allocation6 + $0xa38] sm:$0xff] }
 0x249   :  { %2414 = vmatprep.subr.mxu1 %v1229_v5  ;;  %2187 = vmatpush2.msra.mxu0 %v1258_v6  ;;  %v1125_v5 = vld [vmem:[#allocation6 + $0x10b8] sm:$0xff]  ;;  %v916_v6 = vld [vmem:[#allocation6 + $0xa30] sm:$0xff] }
 0x24a   :  { %2415 = vmatpush1.msra.mxu1 %v1228_v8  ;;  %2478 = vmatprep.mubr.f32.mxu1 %v3419_v63  ;;  %v1197_v63 = vld [vmem:[#allocation6 + $0x12f8] sm:$0xff]  ;;  %v1124_v8 = vld [vmem:[#allocation6 + $0x10b0] sm:$0xff] }
 0x24b   :  { %2188 = vmatprep.subr.mxu0 %v1251_v9  ;;  %2416 = vmatprep.subr.mxu1 %v1221_v18  ;;  %v909_v9 = vld [vmem:[#allocation6 + $0x9f8] sm:$0xff] }
 0x24c   :  { %2189 = vmatpush2.msra.mxu0 %v1250_v10  ;;  %2417 = vmatpush1.msra.mxu1 %v1220_v12  ;;  %v1117_v18 = vld [vmem:[#allocation6 + $0x1078] sm:$0xff]  ;;  %v908_v10 = vld [vmem:[#allocation6 + $0x9f0] sm:$0xff] }
 0x24d   :  { %2190 = vmatprep.subr.mxu0 %v1243_v14  ;;  %2418 = vmatprep.subr.mxu1 %v1213_v22  ;;  %v1116_v12 = vld [vmem:[#allocation6 + $0x1070] sm:$0xff]  ;;  %v901_v14 = vld [vmem:[#allocation6 + $0x9b8] sm:$0xff] }
 0x24e   :  { %2191 = vmatpush2.msra.mxu0 %v1242_v54  ;;  %2419 = vmatpush1.msra.mxu1 %v1212_v11  ;;  %v1109_v22 = vld [vmem:[#allocation6 + $0x1038] sm:$0xff]  ;;  %v900_v54 = vld [vmem:[#allocation6 + $0x9b0] sm:$0xff] }
 0x24f   :  { %2192 = vmatprep.subr.mxu0 %v1235_v24  ;;  %2420 = vmatprep.subr.mxu1 %v1205_v25  ;;  %v1108_v11 = vld [vmem:[#allocation6 + $0x1030] sm:$0xff]  ;;  %v893_v24 = vld [vmem:[#allocation6 + $0x978] sm:$0xff] }
 0x250   :  { %2193 = vmatpush2.msra.mxu0 %v1234_v35  ;;  %2421 = vmatpush1.msra.mxu1 %v1204_v13  ;;  %v1357_v25 = vld [vmem:[#allocation6 + $0x17f8] sm:$0xff]  ;;  %v892_v35 = vld [vmem:[#allocation6 + $0x970] sm:$0xff] }
 0x251   :  { %2195 = vmatmul.mubr.f32.vlgmr.msra.gmra.mxu0 %v3424_v7  ;;  %2229 = vmatprep.subr.mxu0 %v1371_v26  ;;  %v1356_v13 = vld [vmem:[#allocation6 + $0x17f0] sm:$0xff]  ;;  %v885_v26 = vld [vmem:[#allocation6 + $0x938] sm:$0xff] }
 0x252   :  { %2422 = vmatprep.subr.mxu1 %v1197_v63  ;;  %2230 = vmatpush1.msra.mxu0 %v1370_v28  ;;  %v1349_v63 = vld [vmem:[#allocation6 + $0x17b8] sm:$0xff]  ;;  %v884_v28 = vld [vmem:[#allocation6 + $0x930] sm:$0xff] }
 0x253   :  { %2423 = vmatpush1.msra.mxu1 %v1196_v29  ;;  %2231 = vmatprep.subr.mxu0 %v1363_v30  ;;  %v1348_v29 = vld [vmem:[#allocation6 + $0x17b0] sm:$0xff]  ;;  %v877_v30 = vld [vmem:[#allocation6 + $0x8f8] sm:$0xff] }
 0x254   :  { %2424 = vmatprep.subr.mxu1 %v1189_v31  ;;  %2232 = vmatpush1.msra.mxu0 %v1362_v36  ;;  %v1341_v31 = vld [vmem:[#allocation6 + $0x1778] sm:$0xff]  ;;  %v876_v36 = vld [vmem:[#allocation6 + $0x8f0] sm:$0xff] }
 0x255   :  { %2265 = vmatprep.mubr.f32.mxu0 %v3268_v19  ;;  %2425 = vmatpush1.msra.mxu1 %v1188_v37  ;;  %v1340_v37 = vld [vmem:[#allocation6 + $0x1770] sm:$0xff] }
 0x256   :  { %3005 = vmatmul.mubr.msk.f32.vlgmr.msra.gmra.mxu0 %vm1416_vm2, %v3430_v23  ;;  %2343 = vmatprep.subr.mxu0 %v973_v38  ;;  %v869_v38 = vld [vmem:[#allocation6 + $0x8b8] sm:$0xff] }
 0x257   :  { %2426 = vmatprep.subr.mxu1 %v1181_v39  ;;  %2344 = vmatpush1.msra.mxu0 %v972_v40  ;;  %v1333_v39 = vld [vmem:[#allocation6 + $0x1738] sm:$0xff]  ;;  %v868_v40 = vld [vmem:[#allocation6 + $0x8b0] sm:$0xff] }
 0x258   :  { %2407 = vmatprep.mubr.f32.mxu0 %v3399_v34  ;;  %2427 = vmatpush1.msra.mxu1 %v1180_v42  ;;  %v940_v34 = vld [vmem:[#allocation6 + $0xaf0] sm:$0xff] }
 0x259   :  { %2345 = vmatprep.subr.mxu0 %v965_v43  ;;  %2428 = vmatprep.subr.mxu1 %v1173_v44  ;;  %v1332_v42 = vld [vmem:[#allocation6 + $0x1730] sm:$0xff]  ;;  %v861_v43 = vld [vmem:[#allocation6 + $0x878] sm:$0xff] }
 0x25a   :  { %2346 = vmatpush1.msra.mxu0 %v964_v45  ;;  %2429 = vmatpush1.msra.mxu1 %v1172_v46  ;;  %v1325_v44 = vld [vmem:[#allocation6 + $0x16f8] sm:$0xff]  ;;  %v860_v45 = vld [vmem:[#allocation6 + $0x870] sm:$0xff] }
 0x25b   :  { %2347 = vmatprep.subr.mxu0 %v957_v47  ;;  %2430 = vmatprep.subr.mxu1 %v1165_v48  ;;  %v1324_v46 = vld [vmem:[#allocation6 + $0x16f0] sm:$0xff]  ;;  %v853_v47 = vld [vmem:[#allocation6 + $0x838] sm:$0xff] }
 0x25c   :  { %2348 = vmatpush1.msra.mxu0 %v956_v49  ;;  %2431 = vmatpush1.msra.mxu1 %v1164_v50  ;;  %v1317_v48 = vld [vmem:[#allocation6 + $0x16b8] sm:$0xff]  ;;  %v852_v49 = vld [vmem:[#allocation6 + $0x830] sm:$0xff] }
 0x25d   :  { %2349 = vmatprep.subr.mxu0 %v949_v51  ;;  %2432 = vmatprep.subr.mxu1 %v1157_v52  ;;  %v1316_v50 = vld [vmem:[#allocation6 + $0x16b0] sm:$0xff]  ;;  %v3455_v51 = vpop.f32.mrf.mxu0  ;;  %v1101_v52 = vld [vmem:[#allocation6 + $0xff8] sm:$0xff] }
 0x25e   :  { %2350 = vmatpush1.msra.mxu0 %v948_v33  ;;  %2433 = vmatpush1.msra.mxu1 %v1156_v53  ;;  %v1309_v33 = vld [vmem:[#allocation6 + $0x1678] sm:$0xff]  ;;  %v1100_v53 = vld [vmem:[#allocation6 + $0xff0] sm:$0xff] }
 0x25f   :  { %2351 = vmatprep.subr.mxu0 %v941_v56  ;;  %2434 = vmatprep.subr.mxu1 %v1149_v57  ;;  %v1308_v56 = vld [vmem:[#allocation6 + $0x1670] sm:$0xff]  ;;  %v1093_v57 = vld [vmem:[#allocation6 + $0xfb8] sm:$0xff] }
 0x260   :  { %2352 = vmatpush1.msra.mxu0 %v940_v34  ;;  %2435 = vmatpush1.msra.mxu1 %v1148_v58  ;;  %v1301_v34 = vld [vmem:[#allocation6 + $0x1638] sm:$0xff]  ;;  %v1092_v58 = vld [vmem:[#allocation6 + $0xfb0] sm:$0xff] }
 0x261   :  { %2353 = vmatprep.subr.mxu0 %v933_v59  ;;  %2436 = vmatprep.subr.mxu1 %v1141_v60  ;;  %v1300_v59 = vld [vmem:[#allocation6 + $0x1630] sm:$0xff]  ;;  %v3457_v60 = vpop.f32.mrf.mxu0 }
 0x262   :  { %2354 = vmatpush1.msra.mxu0 %v932_v61  ;;  %2437 = vmatpush1.msra.mxu1 %v1140_v62  ;;  %v1085_v61 = vld [vmem:[#allocation6 + $0xf78] sm:$0xff] }
 0x263   :  { %2355 = vmatprep.subr.mxu0 %v925_v0  ;;  %2438 = vmatprep.subr.mxu1 %v1133_v1  ;;  %v1293_v62 = vld [vmem:[#allocation6 + $0x15f8] sm:$0xff]  ;;  %v1084_v0 = vld [vmem:[#allocation6 + $0xf70] sm:$0xff] }
 0x264   :  { %2356 = vmatpush1.msra.mxu0 %v924_v2  ;;  %2439 = vmatpush1.msra.mxu1 %v1132_v3  ;;  %v1292_v1 = vld [vmem:[#allocation6 + $0x15f0] sm:$0xff]  ;;  %v3459_v2 = vpop.f32.mrf.mxu0  ;;  %v1077_v3 = vld [vmem:[#allocation6 + $0xf38] sm:$0xff] }
 0x265   :  { %2357 = vmatprep.subr.mxu0 %v917_v4  ;;  %2440 = vmatprep.subr.mxu1 %v1125_v5  ;;  %v1285_v4 = vld [vmem:[#allocation6 + $0x15b8] sm:$0xff]  ;;  %v1076_v5 = vld [vmem:[#allocation6 + $0xf30] sm:$0xff] }
 0x266   :  { %2358 = vmatpush1.msra.mxu0 %v916_v6  ;;  %2441 = vmatpush1.msra.mxu1 %v1124_v8  ;;  %v1284_v6 = vld [vmem:[#allocation6 + $0x15b0] sm:$0xff]  ;;  %v1069_v8 = vld [vmem:[#allocation6 + $0xef8] sm:$0xff] }
 0x267   :  { %2359 = vmatprep.subr.mxu0 %v909_v9  ;;  %2442 = vmatprep.subr.mxu1 %v1117_v18  ;;  %v1277_v9 = vld [vmem:[#allocation6 + $0x1578] sm:$0xff]  ;;  %v3461_v18 = vpop.f32.mrf.mxu1 }
 0x268   :  { %2360 = vmatpush1.msra.mxu0 %v908_v10  ;;  %2443 = vmatpush1.msra.mxu1 %v1116_v12  ;;  %v1068_v10 = vld [vmem:[#allocation6 + $0xef0] sm:$0xff] }
 0x269   :  { %2361 = vmatprep.subr.mxu0 %v901_v14  ;;  %2444 = vmatprep.subr.mxu1 %v1109_v22  ;;  %v1276_v12 = vld [vmem:[#allocation6 + $0x1570] sm:$0xff]  ;;  %v3463_v14 = vpop.f32.mrf.mxu0  ;;  %v1061_v22 = vld [vmem:[#allocation6 + $0xeb8] sm:$0xff] }
 0x26a   :  { %2362 = vmatpush1.msra.mxu0 %v900_v54  ;;  %2445 = vmatpush1.msra.mxu1 %v1108_v11  ;;  %v1269_v54 = vld [vmem:[#allocation6 + $0x1538] sm:$0xff]  ;;  %v1060_v11 = vld [vmem:[#allocation6 + $0xeb0] sm:$0xff] }
 0x26b   :  { %2363 = vmatprep.subr.mxu0 %v893_v24  ;;  %2446 = vmatprep.subr.mxu1 %v1357_v25  ;;  %v1268_v24 = vld [vmem:[#allocation6 + $0x1530] sm:$0xff]  ;;  %v1053_v25 = vld [vmem:[#allocation6 + $0xe78] sm:$0xff] }
 0x26c   :  { %2364 = vmatpush1.msra.mxu0 %v892_v35  ;;  %2447 = vmatpush2.msra.mxu1 %v1356_v13  ;;  %v1261_v35 = vld [vmem:[#allocation6 + $0x14f8] sm:$0xff]  ;;  %v3465_v13 = vpop.f32.mrf.mxu1 }
 0x26d   :  { %2365 = vmatprep.subr.mxu0 %v885_v26  ;;  %2448 = vmatprep.subr.mxu1 %v1349_v63  ;;  %v1052_v26 = vld [vmem:[#allocation6 + $0xe70] sm:$0xff] }
 0x26e   :  { %2366 = vmatpush1.msra.mxu0 %v884_v28  ;;  %2449 = vmatpush2.msra.mxu1 %v1348_v29  ;;  %v1260_v63 = vld [vmem:[#allocation6 + $0x14f0] sm:$0xff]  ;;  %v3467_v28 = vpop.f32.mrf.mxu0  ;;  %v1045_v29 = vld [vmem:[#allocation6 + $0xe38] sm:$0xff] }
 0x26f   :  { %2367 = vmatprep.subr.mxu0 %v877_v30  ;;  %2450 = vmatprep.subr.mxu1 %v1341_v31  ;;  %v1253_v30 = vld [vmem:[#allocation6 + $0x14b8] sm:$0xff]  ;;  %v3469_v31 = vpop.f32.mrf.mxu1 }
 0x270   :  { %2368 = vmatpush1.msra.mxu0 %v876_v36  ;;  %2451 = vmatpush2.msra.mxu1 %v1340_v37  ;;  %v1044_v36 = vld [vmem:[#allocation6 + $0xe30] sm:$0xff] }
 0x271   :  { %2369 = vmatprep.subr.mxu0 %v869_v38  ;;  %2452 = vmatprep.subr.mxu1 %v1333_v39  ;;  %v1252_v37 = vld [vmem:[#allocation6 + $0x14b0] sm:$0xff]  ;;  %v1037_v38 = vld [vmem:[#allocation6 + $0xdf8] sm:$0xff] }
 0x272   :  { %2370 = vmatpush1.msra.mxu0 %v868_v40  ;;  %2453 = vmatpush2.msra.mxu1 %v1332_v42  ;;  %v1245_v39 = vld [vmem:[#allocation6 + $0x1478] sm:$0xff]  ;;  %v3471_v40 = vld [vmem:[#allocation7] sm:$0xff]  ;;  %v1036_v42 = vld [vmem:[#allocation6 + $0xdf0] sm:$0xff] }
 0x273   :  { %2371 = vmatprep.subr.mxu0 %v861_v43  ;;  %2454 = vmatprep.subr.mxu1 %v1325_v44  ;;  %v1244_v43 = vld [vmem:[#allocation6 + $0x1470] sm:$0xff]  ;;  %v1391_v44 = vrot.slane %v3471_v40, %v253_v21 }
 0x274   :  { %2372 = vmatpush1.msra.mxu0 %v860_v45  ;;  %2455 = vmatpush2.msra.mxu1 %v1324_v46  ;;  %v3476_v45 = vpop.f32.mrf.mxu0  ;;  %v1029_v46 = vld [vmem:[#allocation6 + $0xdb8] sm:$0xff]  ;;  %v1020_v21 = vld [vmem:[#allocation6 + $0xd70] sm:$0xff] }
 0x275   :  { %2373 = vmatprep.subr.mxu0 %v853_v47  ;;  %2456 = vmatprep.subr.mxu1 %v1317_v48  ;;  %v1237_v47 = vld [vmem:[#allocation6 + $0x1438] sm:$0xff]  ;;  %v1772_v48 = vpop.f32.mrf.mxu1 }
 0x276   :  { %2374 = vmatpush1.msra.mxu0 %v852_v49  ;;  %2457 = vmatpush2.msra.mxu1 %v1316_v50  ;;  %v1028_v49 = vld [vmem:[#allocation6 + $0xdb0] sm:$0xff] }
 0x277   :  { %2375 = vmatprep.subr.mxu0 %v1101_v52  ;;  %2458 = vmatprep.subr.mxu1 %v1309_v33  ;;  %v1236_v50 = vld [vmem:[#allocation6 + $0x1430] sm:$0xff]  ;;  %v1021_v52 = vld [vmem:[#allocation6 + $0xd78] sm:$0xff] }
 0x278   :  { %2376 = vmatpush2.msra.mxu0 %v1100_v53  ;;  %2459 = vmatpush2.msra.mxu1 %v1308_v56  ;;  %v2627_v53 = vld [vmem:[#allocation9 + $0x1f8] sm:$0xff]  ;;  %v1773_v56 = vadd.f32 %v1772_v48, %v1391_v44  ;;  %v2605_v44 = vld [vmem:[#allocation9 + $0x148] sm:$0xff]  ;;  %v2620_v48 = vld [vmem:[#allocation9 + $0x1c0] sm:$0xff] }
 0x279   :  { %2377 = vmatprep.subr.mxu0 %v1093_v57  ;;  %2460 = vmatprep.subr.mxu1 %v1301_v34  ;;  %v2611_v57 = vld [vmem:[#allocation9 + $0x178] sm:$0xff]  ;;  %v1013_v34 = vld [vmem:[#allocation6 + $0xd38] sm:$0xff] }
 0x27a   :  { %2378 = vmatpush2.msra.mxu0 %v1092_v58  ;;  %2461 = vmatpush2.msra.mxu1 %v1300_v59 }
 0x27b   :  { %2379 = vmatprep.subr.mxu0 %v1085_v61  ;;  %2462 = vmatprep.subr.mxu1 %v1293_v62  ;;  %v2626_v61 = vld [vmem:[#allocation9 + $0x1f0] sm:$0xff]  ;;  %v1012_v62 = vld [vmem:[#allocation6 + $0xd30] sm:$0xff] }
 0x27c   :  { %2380 = vmatpush2.msra.mxu0 %v1084_v0  ;;  %2463 = vmatpush2.msra.mxu1 %v1292_v1  ;;  %v2610_v0 = vld [vmem:[#allocation9 + $0x170] sm:$0xff] }
 0x27d   :  { %2381 = vmatprep.subr.mxu0 %v1077_v3  ;;  %2464 = vmatprep.subr.mxu1 %v1285_v4  ;;  %v1005_v1 = vld [vmem:[#allocation6 + $0xcf8] sm:$0xff]  ;;  %v1383_v4 = vrot.slane %v3471_v40, %v245_v20 }
 0x27e   :  { %2382 = vmatpush2.msra.mxu0 %v1076_v5  ;;  %2465 = vmatpush2.msra.mxu1 %v1284_v6  ;;  %v2625_v5 = vld [vmem:[#allocation9 + $0x1e8] sm:$0xff] }
 0x27f   :  { %2383 = vmatprep.subr.mxu0 %v1069_v8  ;;  %2466 = vmatprep.subr.mxu1 %v1277_v9  ;;  %v1004_v6 = vld [vmem:[#allocation6 + $0xcf0] sm:$0xff]  ;;  %v997_v9 = vld [vmem:[#allocation6 + $0xcb8] sm:$0xff] }
 0x280   :  { %2384 = vmatpush2.msra.mxu0 %v1068_v10  ;;  %2467 = vmatpush2.msra.mxu1 %v1276_v12  ;;  %v2624_v12 = vld [vmem:[#allocation9 + $0x1e0] sm:$0xff] }
 0x281   :  { %2385 = vmatprep.subr.mxu0 %v1061_v22  ;;  %2468 = vmatprep.subr.mxu1 %v1269_v54  ;;  %v996_v22 = vld [vmem:[#allocation6 + $0xcb0] sm:$0xff]  ;;  %v2608_v54 = vld [vmem:[#allocation9 + $0x160] sm:$0xff] }
 0x282   :  { %2386 = vmatpush2.msra.mxu0 %v1060_v11  ;;  %2469 = vmatpush2.msra.mxu1 %v1268_v24  ;;  %v989_v11 = vld [vmem:[#allocation6 + $0xc78] sm:$0xff]  ;;  %v1489_v24 = vadd.f32 %v3457_v60, %v1383_v4  ;;  %v2601_v4 = vld [vmem:[#allocation9 + $0x128] sm:$0xff] }
 0x283   :  { %2387 = vmatprep.subr.mxu0 %v1053_v25  ;;  %2470 = vmatprep.subr.mxu1 %v1261_v35  ;;  %v3480_v59 = vpop.f32.mrf.mxu1  ;;  %v2623_v25 = vld [vmem:[#allocation9 + $0x1d8] sm:$0xff]  ;;  %v988_v35 = vld [vmem:[#allocation6 + $0xc70] sm:$0xff]  ;;  %v1373_v60 = vld [vmem:[#allocation6 + $0x1878] sm:$0xff] }
 0x284   :  { %2388 = vmatpush2.msra.mxu0 %v1052_v26  ;;  %2471 = vmatpush2.msra.mxu1 %v1260_v63  ;;  %v2607_v63 = vld [vmem:[#allocation9 + $0x158] sm:$0xff] }
 0x285   :  { %2389 = vmatprep.subr.mxu0 %v1045_v29  ;;  %2472 = vmatprep.subr.mxu1 %v1253_v30  ;;  %v1914_v10 = vpop.f32.mrf.mxu1  ;;  %v981_v29 = vld [vmem:[#allocation6 + $0xc38] sm:$0xff] }
 0x286   :  { %2390 = vmatpush2.msra.mxu0 %v1044_v36  ;;  %2473 = vmatpush2.msra.mxu1 %v1252_v37  ;;  %v2622_v30 = vld [vmem:[#allocation9 + $0x1d0] sm:$0xff]  ;;  %v980_v36 = vld [vmem:[#allocation6 + $0xc30] sm:$0xff] }
 0x287   :  { %2391 = vmatprep.subr.mxu0 %v1037_v38  ;;  %2474 = vmatprep.subr.mxu1 %v1245_v39  ;;  %v2606_v38 = vld [vmem:[#allocation9 + $0x150] sm:$0xff]  ;;  %v1560_v39 = vadd.f32 %v3465_v13, %v1489_v24  ;;  %v2589_v24 = vld [vmem:[#allocation9 + $0xc8] sm:$0xff] }
 0x288   :  { %2392 = vmatpush2.msra.mxu0 %v1036_v42  ;;  %2475 = vmatpush2.msra.mxu1 %v1244_v43  ;;  %v3478_v33 = vpop.f32.mrf.mxu0  ;;  %v2621_v42 = vld [vmem:[#allocation9 + $0x1c8] sm:$0xff] }
 0x289   :  { %2393 = vmatprep.subr.mxu0 %v1029_v46  ;;  %2476 = vmatprep.subr.mxu1 %v1237_v47  ;;  %v1372_v43 = vld [vmem:[#allocation6 + $0x1870] sm:$0xff]  ;;  %v1631_v46 = vadd.f32 %v3463_v14, %v1560_v39  ;;  %v1365_v47 = vld [vmem:[#allocation6 + $0x1838] sm:$0xff]  ;;  %v2595_v14 = vld [vmem:[#allocation9 + $0xf8] sm:$0xff] }
 0x28a   :  { %2394 = vmatpush2.msra.mxu0 %v1028_v49  ;;  %2477 = vmatpush2.msra.mxu1 %v1236_v50  ;;  %v1843_v58 = vpop.f32.mrf.mxu0  ;;  %v1364_v50 = vld [vmem:[#allocation6 + $0x1830] sm:$0xff]  ;;  %v2571_v39 = vld [vmem:[#allocation9 + $0x38] sm:$0xff] }
 0x28b   :  { %2395 = vmatprep.subr.mxu0 %v1021_v52  ;;  %2479 = vmatmul.mubr.f32.vlgmr.msra.gmra.mxu1 %v3424_v7  ;;  %v1844_v3 = vadd.f32 %v1843_v58, %v1773_v56  ;;  %v2609_v7 = vld [vmem:[#allocation9 + $0x168] sm:$0xff]  ;;  %v1702_v13 = vadd.f32 %v3476_v45, %v1631_v46  ;;  %v2604_v52 = vld [vmem:[#allocation9 + $0x140] sm:$0xff]  ;;  %v2603_v56 = vld [vmem:[#allocation9 + $0x138] sm:$0xff] }
 0x28c   :  { %3045 = vmatprep.subr.mxu1 %v2627_v53  ;;  %2396 = vmatpush2.msra.mxu0 %v1020_v21  ;;  %v1387_v53 = vrot.slane %v3471_v40, %v249_v16  ;;  %v2579_v21 = vld [vmem:[#allocation9 + $0x78] sm:$0xff]  ;;  %v2594_v45 = vld [vmem:[#allocation9 + $0xf0] sm:$0xff] }
 0x28d   :  { %3046 = vmatpush3.msra.mxu1 %v2611_v57  ;;  %2397 = vmatprep.subr.mxu0 %v1013_v34  ;;  %v3486_v8 = vpop.f32.mrf.mxu0  ;;  %v1915_v20 = vadd.f32 %v1914_v10, %v1844_v3  ;;  %v2557_v57 = vmax.f32 %v1702_v13, 0.0  ;;  %v2618_v34 = vld [vmem:[#allocation9 + $0x1b0] sm:$0xff]  ;;  %v2577_v3 = vld [vmem:[#allocation9 + $0x68] sm:$0xff]  ;;  %v2583_v13 = vld [vmem:[#allocation9 + $0x98] sm:$0xff] }
 0x28e   :  { %3047 = vmatprep.subr.mxu1 %v2626_v61  ;;  %2398 = vmatpush2.msra.mxu0 %v1012_v62  ;;  %v1771_v16 = vadd.f32 %v3469_v31, %v1387_v53  ;;  %v2578_v58 = vld [vmem:[#allocation9 + $0x70] sm:$0xff]  ;;  %v2593_v62 = vld [vmem:[#allocation9 + $0xe8] sm:$0xff]  ;;  %v2576_v31 = vld [vmem:[#allocation9 + $0x60] sm:$0xff] }
 0x28f   :  { %3048 = vmatpush3.msra.mxu1 %v2610_v0  ;;  %2399 = vmatprep.subr.mxu0 %v1005_v1  ;;  %v1985_v26 = vpop.f32.mrf.mxu0  ;;  %v2602_v61 = vld [vmem:[#allocation9 + $0x130] sm:$0xff]  ;;  %v2617_v0 = vld [vmem:[#allocation9 + $0x1a8] sm:$0xff] }
 0x290   :  { %3049 = vmatprep.subr.mxu1 %v2625_v5  ;;  %2400 = vmatpush2.msra.mxu0 %v1004_v6  ;;  %v1986_v37 = vadd.f32 %v1985_v26, %v1915_v20  ;;  %v1842_v1 = vadd.f32 %v3478_v33, %v1771_v16  ;;  %v2616_v5 = vld [vmem:[#allocation9 + $0x1a0] sm:$0xff]  ;;  %v2575_v33 = vld [vmem:[#allocation9 + $0x58] sm:$0xff]  ;;  %v2598_v20 = vld [vmem:[#allocation9 + $0x110] sm:$0xff] }
 0x291   :  { %3050 = vmatpush3.msra.mxu1 %v2609_v7  ;;  %2401 = vmatprep.subr.mxu0 %v997_v9  ;;  %v2600_v6 = vld [vmem:[#allocation9 + $0x120] sm:$0xff]  ;;  %v2591_v7 = vld [vmem:[#allocation9 + $0xd8] sm:$0xff]  ;;  %v2597_v26 = vld [vmem:[#allocation9 + $0x108] sm:$0xff] }
 0x292   :  { %3051 = vmatprep.subr.mxu1 %v2624_v12  ;;  %2402 = vmatpush2.msra.mxu0 %v996_v22  ;;  %v2559_v49 = vmax.f32 %v1986_v37, 0.0  ;;  %v2615_v9 = vld [vmem:[#allocation9 + $0x198] sm:$0xff]  ;;  %v1913_v10 = vadd.f32 %v3480_v59, %v1842_v1  ;;  %v2590_v22 = vld [vmem:[#allocation9 + $0xd0] sm:$0xff]  ;;  %v2573_v59 = vld [vmem:[#allocation9 + $0x48] sm:$0xff] }
 0x293   :  { %3052 = vmatpush3.msra.mxu1 %v2608_v54  ;;  %2403 = vmatprep.subr.mxu0 %v989_v11  ;;  %v2599_v12 = vld [vmem:[#allocation9 + $0x118] sm:$0xff]  ;;  %v2614_v54 = vld [vmem:[#allocation9 + $0x190] sm:$0xff]  ;;  %v2580_v16 = vld [vmem:[#allocation9 + $0x80] sm:$0xff] }
 0x294   :  { %3053 = vmatprep.subr.mxu1 %v2623_v25  ;;  %2404 = vmatpush2.msra.mxu0 %v988_v35  ;;  %v2574_v11 = vld [vmem:[#allocation9 + $0x50] sm:$0xff]  ;;  %v2613_v25 = vld [vmem:[#allocation9 + $0x188] sm:$0xff]  ;;  %v1984_v35 = vadd.f32 %v3486_v8, %v1913_v10  ;;  %v2587_v37 = vld [vmem:[#allocation9 + $0xb8] sm:$0xff] }
 0x295   :  { %3054 = vmatpush3.msra.mxu1 %v2607_v63  ;;  %2405 = vmatprep.subr.mxu0 %v981_v29  ;;  %v2588_v63 = vld [vmem:[#allocation9 + $0xc0] sm:$0xff]  ;;  %v2674_v46 = vld [vmem:[#allocation9 + $0x370] sm:$0xff]  ;;  %v2655_v10 = vld [vmem:[#allocation9 + $0x2d8] sm:$0xff] }
 0x296   :  { %3055 = vmatprep.subr.mxu1 %v2622_v30  ;;  %2406 = vmatpush2.msra.mxu0 %v980_v36  ;;  %v2612_v29 = vld [vmem:[#allocation9 + $0x180] sm:$0xff]  ;;  %v2558_v8 = vmax.f32 %v1984_v35, 0.0  ;;  %v2658_v1 = vld [vmem:[#allocation9 + $0x2f0] sm:$0xff] }
 0x297   :  { %3056 = vmatpush3.msra.mxu1 %v2606_v38  ;;  %2408 = vmatmul.mubr.f32.vlgmr.msra.gmra.mxu0 %v3395_v32  ;;  %v2619_v32 = vld [vmem:[#allocation9 + $0x1b8] sm:$0xff]  ;;  %v2572_v30 = vld [vmem:[#allocation9 + $0x40] sm:$0xff]  ;;  %v1379_v38 = vrot.slane %v3471_v40, %v241_v17  ;;  %v2569_v17 = vld [vmem:[#allocation9 + $0x28] sm:$0xff] }
 0x298   :  { %2513 = vmatprep.subr.mxu0 %v1373_v60  ;;  %3057 = vmatprep.subr.mxu1 %v2621_v42  ;;  %v2596_v36 = vld [vmem:[#allocation9 + $0x100] sm:$0xff]  ;;  %v2586_v60 = vld [vmem:[#allocation9 + $0xb0] sm:$0xff]  ;;  %v2675_v42 = vld [vmem:[#allocation9 + $0x378] sm:$0xff] }
 0x299   :  { %2514 = vmatpush1.msra.mxu0 %v1372_v43  ;;  %3058 = vmatpush3.msra.mxu1 %v2605_v44  ;;  %v2570_v43 = vld [vmem:[#allocation9 + $0x30] sm:$0xff]  ;;  %v2585_v44 = vld [vmem:[#allocation9 + $0xa8] sm:$0xff]  ;;  %v2652_v35 = vld [vmem:[#allocation9 + $0x2c0] sm:$0xff] }
 0x29a   :  { %2515 = vmatprep.subr.mxu0 %v1365_v47  ;;  %3059 = vmatprep.subr.mxu1 %v2620_v48  ;;  %v1487_v47 = vadd.f32 %v3455_v51, %v1379_v38  ;;  %v2584_v48 = vld [vmem:[#allocation9 + $0xa0] sm:$0xff]  ;;  %v2567_v51 = vld [vmem:[#allocation9 + $0x18] sm:$0xff]  ;;  %v2686_v38 = vld [vmem:[#allocation9 + $0x3d0] sm:$0xf] }
 0x29b   :  { %2516 = vmatpush1.msra.mxu0 %v1364_v50  ;;  %2549 = vmatprep.mubr.f32.mxu0 %v3268_v19  ;;  %v2568_v50 = vld [vmem:[#allocation9 + $0x20] sm:$0xff] }
 0x29c   :  { %3060 = vmatpush3.msra.mxu1 %v2604_v52  ;;  %2836 = vmatprep.mubr.f32.mxu1 %v2559_v49  ;;  %v2673_v49 = vld [vmem:[#allocation9 + $0x368] sm:$0xff]  ;;  %v2672_v52 = vld [vmem:[#allocation9 + $0x360] sm:$0xff]  ;;  %v1558_v53 = vadd.f32 %v3461_v18, %v1487_v47  ;;  %v2631_v47 = vld [vmem:[#allocation9 + $0x218] sm:$0xff] }
 0x29d   :  { %3006 = vmatmul.mubr.msk.f32.vlgmr.msra.gmra.mxu0 %vm1416_vm2, %v3430_v23  ;;  %3010 = vmatprep.subr.mxu0 %v2595_v14  ;;  %v2592_v23 = vld [vmem:[#allocation9 + $0xe0] sm:$0xff]  ;;  %v2582_v14 = vld [vmem:[#allocation9 + $0x90] sm:$0xff] }
 0x29e   :  { %3061 = vmatprep.subr.mxu1 %v2619_v32  ;;  %3011 = vmatpush3.msra.mxu0 %v2579_v21  ;;  %v2671_v32 = vld [vmem:[#allocation9 + $0x358] sm:$0xff]  ;;  %v1629_v21 = vadd.f32 %v3459_v2, %v1558_v53  ;;  %v2564_v2 = vld [vmem:[#allocation9] sm:$0xff]  ;;  %v2681_v53 = vld [vmem:[#allocation9 + $0x3a8] sm:$0xff] }
 0x29f   :  { %2766 = vmatprep.mubr.f32.mxu0 %v2557_v57  ;;  %3062 = vmatpush3.msra.mxu1 %v2603_v56  ;;  %v2566_v56 = vld [vmem:[#allocation9 + $0x10] sm:$0xff]  ;;  %v2581_v57 = vld [vmem:[#allocation9 + $0x88] sm:$0xff] }
 0x2a0   :  { %3012 = vmatprep.subr.mxu0 %v2594_v45  ;;  %3063 = vmatprep.subr.mxu1 %v2618_v34  ;;  %v2670_v45 = vld [vmem:[#allocation9 + $0x350] sm:$0xff]  ;;  %v1700_v18 = vadd.f32 %v3467_v28, %v1629_v21  ;;  %v2565_v34 = vld [vmem:[#allocation9 + $0x8] sm:$0xff]  ;;  %v2668_v28 = vld [vmem:[#allocation9 + $0x340] sm:$0xff] }
 0x2a1   :  { %3013 = vmatpush3.msra.mxu0 %v2578_v58  ;;  %3064 = vmatpush3.msra.mxu1 %v2602_v61  ;;  %v2669_v58 = vld [vmem:[#allocation9 + $0x348] sm:$0xff]  ;;  %v2659_v61 = vld [vmem:[#allocation9 + $0x2f8] sm:$0xff] }
 0x2a2   :  { %3014 = vmatprep.subr.mxu0 %v2593_v62  ;;  %3065 = vmatprep.subr.mxu1 %v2617_v0  ;;  %v2556_v62 = vmax.f32 %v1700_v18, 0.0  ;;  %v2643_v0 = vld [vmem:[#allocation9 + $0x278] sm:$0xff] }
 0x2a3   :  { %3015 = vmatpush3.msra.mxu0 %v2577_v3  ;;  %3066 = vmatpush3.msra.mxu1 %v2601_v4  ;;  %v2642_v3 = vld [vmem:[#allocation9 + $0x270] sm:$0xff]  ;;  %v2667_v4 = vld [vmem:[#allocation9 + $0x338] sm:$0xff] }
 0x2a4   :  { %3016 = vmatprep.subr.mxu0 %v2592_v23  ;;  %3067 = vmatprep.subr.mxu1 %v2616_v5  ;;  %v2657_v23 = vld [vmem:[#allocation9 + $0x2e8] sm:$0xff]  ;;  %v2679_v21 = vld [vmem:[#allocation9 + $0x398] sm:$0xff] }
 0x2a5   :  { %3017 = vmatpush3.msra.mxu0 %v2576_v31  ;;  %3068 = vmatpush3.msra.mxu1 %v2600_v6  ;;  %v2641_v5 = vld [vmem:[#allocation9 + $0x268] sm:$0xff]  ;;  %v2666_v31 = vld [vmem:[#allocation9 + $0x330] sm:$0xff]  ;;  %v2656_v6 = vld [vmem:[#allocation9 + $0x2e0] sm:$0xff] }
 0x2a6   :  { %3018 = vmatprep.subr.mxu0 %v2591_v7  ;;  %3069 = vmatprep.subr.mxu1 %v2615_v9  ;;  %v2640_v7 = vld [vmem:[#allocation9 + $0x260] sm:$0xff]  ;;  %v2665_v9 = vld [vmem:[#allocation9 + $0x328] sm:$0xff] }
 0x2a7   :  { %3019 = vmatpush3.msra.mxu0 %v2575_v33  ;;  %3070 = vmatpush3.msra.mxu1 %v2599_v12  ;;  %v2639_v33 = vld [vmem:[#allocation9 + $0x258] sm:$0xff]  ;;  %v2664_v12 = vld [vmem:[#allocation9 + $0x320] sm:$0xff] }
 0x2a8   :  { %3020 = vmatprep.subr.mxu0 %v2590_v22  ;;  %3071 = vmatprep.subr.mxu1 %v2614_v54  ;;  %v2654_v22 = vld [vmem:[#allocation9 + $0x2d0] sm:$0xff] }
 0x2a9   :  { %3021 = vmatpush3.msra.mxu0 %v2574_v11  ;;  %3072 = vmatpush3.msra.mxu1 %v2598_v20  ;;  %v2638_v54 = vld [vmem:[#allocation9 + $0x250] sm:$0xff]  ;;  %v2663_v11 = vld [vmem:[#allocation9 + $0x318] sm:$0xff]  ;;  %v2653_v20 = vld [vmem:[#allocation9 + $0x2c8] sm:$0xff] }
 0x2aa   :  { %3022 = vmatprep.subr.mxu0 %v2589_v24  ;;  %3073 = vmatprep.subr.mxu1 %v2613_v25  ;;  %v2637_v24 = vld [vmem:[#allocation9 + $0x248] sm:$0xff]  ;;  %v2662_v25 = vld [vmem:[#allocation9 + $0x310] sm:$0xff] }
 0x2ab   :  { %3023 = vmatpush3.msra.mxu0 %v2573_v59  ;;  %3074 = vmatpush3.msra.mxu1 %v2597_v26  ;;  %v2636_v59 = vld [vmem:[#allocation9 + $0x240] sm:$0xff]  ;;  %v2661_v26 = vld [vmem:[#allocation9 + $0x308] sm:$0xff] }
 0x2ac   :  { %3024 = vmatprep.subr.mxu0 %v2588_v63  ;;  %3075 = vmatprep.subr.mxu1 %v2612_v29  ;;  %v2651_v63 = vld [vmem:[#allocation9 + $0x2b8] sm:$0xff] }
 0x2ad   :  { %3025 = vmatpush3.msra.mxu0 %v2572_v30  ;;  %3076 = vmatpush3.msra.mxu1 %v2596_v36  ;;  %v2635_v29 = vld [vmem:[#allocation9 + $0x238] sm:$0xff]  ;;  %v2660_v30 = vld [vmem:[#allocation9 + $0x300] sm:$0xff]  ;;  %v2650_v36 = vld [vmem:[#allocation9 + $0x2b0] sm:$0xff] }
 0x2ae   :  { %3026 = vmatprep.subr.mxu0 %v2587_v37  ;;  %2837 = vmatmul.mubr.f32.vlgmr.msra.gmra.mxu1 %v2558_v8  ;;  %v2634_v37 = vld [vmem:[#allocation9 + $0x230] sm:$0xff]  ;;  %v2649_v8 = vld [vmem:[#allocation9 + $0x2a8] sm:$0xff] }
 0x2af   :  { %3027 = vmatpush3.msra.mxu0 %v2571_v39  ;;  %2912 = vmatprep.subr.mxu1 %v3268_v19  ;;  %v2633_v39 = vld [vmem:[#allocation9 + $0x228] sm:$0xff] }
 0x2b0   :  { %3028 = vmatprep.subr.mxu0 %v2586_v60  ;;  %2913 = vmatpush1.msra.mxu1 %v2675_v42  ;;  %v2685_v60 = vld [vmem:[#allocation9 + $0x3c8] sm:$0xff]  ;;  %v2648_v42 = vld [vmem:[#allocation9 + $0x2a0] sm:$0xff] }
 0x2b1   :  { %3029 = vmatpush3.msra.mxu0 %v2570_v43  ;;  %2914 = vmatprep.subr.mxu1 %v3268_v19  ;;  %v2632_v43 = vld [vmem:[#allocation9 + $0x220] sm:$0xff] }
 0x2b2   :  { %3030 = vmatprep.subr.mxu0 %v2585_v44  ;;  %2915 = vmatpush1.msra.mxu1 %v2674_v46  ;;  %v2684_v44 = vld [vmem:[#allocation9 + $0x3c0] sm:$0xff]  ;;  %v2647_v46 = vld [vmem:[#allocation9 + $0x298] sm:$0xff] }
 0x2b3   :  { %3031 = vmatpush3.msra.mxu0 %v2569_v17  ;;  %2916 = vmatprep.subr.mxu1 %v3268_v19  ;;  %v2683_v17 = vld [vmem:[#allocation9 + $0x3b8] sm:$0xff] }
 0x2b4   :  { %3032 = vmatprep.subr.mxu0 %v2584_v48  ;;  %2917 = vmatpush1.msra.mxu1 %v2673_v49  ;;  %v2646_v48 = vld [vmem:[#allocation9 + $0x290] sm:$0xff] }
 0x2b5   :  { %3033 = vmatpush3.msra.mxu0 %v2568_v50  ;;  %2918 = vmatprep.subr.mxu1 %v3268_v19  ;;  %v2630_v49 = vld [vmem:[#allocation9 + $0x210] sm:$0xff] }
 0x2b6   :  { %3034 = vmatprep.subr.mxu0 %v2583_v13  ;;  %2919 = vmatpush1.msra.mxu1 %v2672_v52  ;;  %v2682_v50 = vld [vmem:[#allocation9 + $0x3b0] sm:$0xff]  ;;  %v2645_v13 = vld [vmem:[#allocation9 + $0x288] sm:$0xff] }
 0x2b7   :  { %3035 = vmatpush3.msra.mxu0 %v2567_v51  ;;  %2920 = vmatprep.subr.mxu1 %v3268_v19  ;;  %v2629_v52 = vld [vmem:[#allocation9 + $0x208] sm:$0xff]  ;;  %v2644_v51 = vld [vmem:[#allocation9 + $0x280] sm:$0xff] }
 0x2b8   :  { %3036 = vmatprep.subr.mxu0 %v2582_v14  ;;  %2921 = vmatpush1.msra.mxu1 %v2671_v32  ;;  %v2628_v14 = vld [vmem:[#allocation9 + $0x200] sm:$0xff] }
 0x2b9   :  { %3037 = vmatpush3.msra.mxu0 %v2566_v56  ;;  %2922 = vmatprep.subr.mxu1 %v3268_v19  ;;  %v2680_v32 = vld [vmem:[#allocation9 + $0x3a0] sm:$0xff]  ;;  %v2678_v56 = vld [vmem:[#allocation9 + $0x390] sm:$0xff] }
 0x2ba   :  { %3038 = vmatprep.subr.mxu0 %v2581_v57  ;;  %2923 = vmatpush1.msra.mxu1 %v2670_v45  ;;  %v2677_v57 = vld [vmem:[#allocation9 + $0x388] sm:$0xff]  ;;  %v2676_v45 = vld [vmem:[#allocation9 + $0x380] sm:$0xff] }
 0x2bb   :  { %3039 = vmatpush3.msra.mxu0 %v2565_v34  ;;  %2924 = vmatprep.subr.mxu1 %v3268_v19  ;;  %v1395_v34 = vrot.slane %v3471_v40, %v257_v41 }
 0x2bc   :  { %3040 = vmatprep.subr.mxu0 %v2580_v16  ;;  %2925 = vmatpush1.msra.mxu1 %v2669_v58  ;;  %v1399_v16 = vrot.slane %v3471_v40, %v261_v27  ;;  %v1406_v27 = vsub.s32 7, %v3375_v15 }
 0x2bd   :  { %3041 = vmatpush3.msra.mxu0 %v2564_v2  ;;  %2926 = vmatprep.subr.mxu1 %v3268_v19 }
 0x2be   :  { %2767 = vmatmul.mubr.f32.vlgmr.msra.gmra.mxu0 %v2556_v62  ;;  %3080 = vmatprep.subr.mxu0 %v2659_v61 }
 0x2bf   :  { %3081 = vmatpush3.msra.mxu0 %v2643_v0  ;;  %2927 = vmatpush1.msra.mxu1 %v2668_v28 }
 0x2c0   :  { %3082 = vmatprep.subr.mxu0 %v2658_v1  ;;  %2928 = vmatprep.subr.mxu1 %v3268_v19 }
 0x2c1   :  { %3083 = vmatpush3.msra.mxu0 %v2642_v3  ;;  %2929 = vmatpush1.msra.mxu1 %v2667_v4 }
 0x2c2   :  { %3084 = vmatprep.subr.mxu0 %v2657_v23  ;;  %2930 = vmatprep.subr.mxu1 %v3268_v19 }
 0x2c3   :  { %3085 = vmatpush3.msra.mxu0 %v2641_v5  ;;  %2931 = vmatpush1.msra.mxu1 %v2666_v31 }
 0x2c4   :  { %3086 = vmatprep.subr.mxu0 %v2656_v6  ;;  %2932 = vmatprep.subr.mxu1 %v3268_v19 }
 0x2c5   :  { %3087 = vmatpush3.msra.mxu0 %v2640_v7  ;;  %2933 = vmatpush1.msra.mxu1 %v2665_v9 }
 0x2c6   :  { %3088 = vmatprep.subr.mxu0 %v2655_v10  ;;  %2934 = vmatprep.subr.mxu1 %v3268_v19  ;;  %v2125_v2 = vpop.f32.mrf.mxu1 }
 0x2c7   :  { %3089 = vmatpush3.msra.mxu0 %v2639_v33  ;;  %2935 = vmatpush1.msra.mxu1 %v2664_v12  ;;  %v1403_v33 = vrot.slane %v3471_v40, %v265_v55  ;;  %v1407_v12 = vrot.slane %v3471_v40, %v1406_v27 }
 0x2c8   :  { %3090 = vmatprep.subr.mxu0 %v2654_v22  ;;  %2936 = vmatprep.subr.mxu1 %v3268_v19  ;;  %v2127_v1 = vpop.f32.mrf.mxu1 }
 0x2c9   :  { %3091 = vmatpush3.msra.mxu0 %v2638_v54  ;;  %2937 = vmatpush1.msra.mxu1 %v2663_v11 }
 0x2ca   :  { %3092 = vmatprep.subr.mxu0 %v2653_v20  ;;  %2938 = vmatprep.subr.mxu1 %v3268_v19 }
 0x2cb   :  { %3093 = vmatpush3.msra.mxu0 %v2637_v24  ;;  %2939 = vmatpush1.msra.mxu1 %v2662_v25 }
 0x2cc   :  { %3094 = vmatprep.subr.mxu0 %v2652_v35  ;;  %2940 = vmatprep.subr.mxu1 %v3268_v19 }
 0x2cd   :  { %3095 = vmatpush3.msra.mxu0 %v2636_v59  ;;  %2941 = vmatpush1.msra.mxu1 %v2661_v26 }
 0x2ce   :  { %3096 = vmatprep.subr.mxu0 %v2651_v63  ;;  %2942 = vmatprep.subr.mxu1 %v3268_v19 }
 0x2cf   :  { %3097 = vmatpush3.msra.mxu0 %v2635_v29  ;;  %2943 = vmatpush1.msra.mxu1 %v2660_v30  ;;  %v2054_v18 = vpop.f32.mrf.mxu0 }
 0x2d0   :  { %3098 = vmatprep.subr.mxu0 %v2650_v36  ;;  %2954 = vmatprep.subr.mxu1 %v3268_v19  ;;  %v2055_v61 = vadd.f32 %v2054_v18, %v1395_v34 }
 0x2d1   :  { %3099 = vmatpush3.msra.mxu0 %v2634_v37  ;;  %3008 = vmatpush2.msk.msra.mxu1 %vm2698_vm3, %v2686_v38  ;;  %v2056_v58 = vpop.f32.mrf.mxu0 }
 0x2d2   :  { %3100 = vmatprep.subr.mxu0 %v2649_v8  ;;  %2956 = vmatprep.subr.mxu1 %v3268_v19  ;;  %v2057_v62 = vadd.f32 %v2056_v58, %v1399_v16  ;;  %v2126_v3 = vadd.f32 %v2125_v2, %v2055_v61 }
 0x2d3   :  { %3101 = vmatpush3.msra.mxu0 %v2633_v39  ;;  %2957 = vmatpush2.msra.mxu1 %v2685_v60 }
 0x2d4   :  { %3102 = vmatprep.subr.mxu0 %v2648_v42  ;;  %2958 = vmatprep.subr.mxu1 %v3268_v19  ;;  %v2128_v4 = vadd.f32 %v2127_v1, %v2057_v62 }
 0x2d5   :  { %3103 = vmatpush3.msra.mxu0 %v2632_v43  ;;  %2959 = vmatpush2.msra.mxu1 %v2684_v44  ;;  %v3007_v43 = vld [vmem:[#allocation10] ss:$0 sm:$0xff] }
 0x2d6   :  { %3104 = vmatprep.subr.mxu0 %v2647_v46  ;;  %2960 = vmatprep.subr.mxu1 %v3268_v19 }
 0x2d7   :  { %3105 = vmatpush3.msra.mxu0 %v2631_v47  ;;  %2961 = vmatpush2.msra.mxu1 %v2683_v17 }
 0x2d8   :  { %3106 = vmatprep.subr.mxu0 %v2646_v48  ;;  %2962 = vmatprep.subr.mxu1 %v3268_v19 }
 0x2d9   :  { %3107 = vmatpush3.msra.mxu0 %v2630_v49  ;;  %2963 = vmatpush2.msra.mxu1 %v2682_v50 }
 0x2da   :  { %3108 = vmatprep.subr.mxu0 %v2645_v13  ;;  %2964 = vmatprep.subr.mxu1 %v3268_v19 }
 0x2db   :  { %3109 = vmatpush3.msra.mxu0 %v2629_v52  ;;  %2965 = vmatpush2.msra.mxu1 %v2681_v53 }
 0x2dc   :  { %3110 = vmatprep.subr.mxu0 %v2644_v51  ;;  %2966 = vmatprep.subr.mxu1 %v3268_v19 }
 0x2dd   :  { %3111 = vmatpush3.msra.mxu0 %v2628_v14  ;;  %2967 = vmatpush2.msra.mxu1 %v2680_v32 }
 0x2de   :  { %2968 = vmatprep.subr.mxu1 %v3268_v19 }
 0x2df   :  { %2969 = vmatpush2.msra.mxu1 %v2679_v21 }
 0x2e0   :  { %2970 = vmatprep.subr.mxu1 %v3268_v19 }
 0x2e1   :  { %2971 = vmatpush2.msra.mxu1 %v2678_v56 }
 0x2e2   :  { %2972 = vmatprep.subr.mxu1 %v3268_v19 }
 0x2e3   :  { %2973 = vmatpush2.msra.mxu1 %v2677_v57 }
 0x2e4   :  { %2974 = vmatprep.subr.mxu1 %v3268_v19 }
 0x2e5   :  { %2975 = vmatpush2.msra.mxu1 %v2676_v45 }
 0x308   :  { %v2338_v10 = vpop.f32.mrf.mxu1 }
 0x309   :  { %v2339_v54 = vadd.f32 %v2338_v10, %v1403_v33 }
 0x30a   :  { %v2340_v22 = vpop.f32.mrf.mxu1 }
 0x30b   :  { %v2341_v24 = vadd.f32 %v2340_v22, %v1407_v12 }
 0x311   :  { %v2196_v0 = vpop.f32.mrf.mxu0 }
 0x312   :  { %v2197_v19 = vadd.f32 %v2196_v0, %v2126_v3 }
 0x313   :  { %v2198_v28 = vpop.f32.mrf.mxu0 }
 0x314   :  { %v2199_v5 = vadd.f32 %v2198_v28, %v2128_v4 }
 0x316   :  { %v2267_v23 = vpop.f32.mrf.mxu0 }
 0x317   :  { %v2268_v31 = vadd.f32 %v2267_v23, %v2197_v19 }
 0x318   :  { %v2269_v6 = vpop.f32.mrf.mxu0 }
 0x319   :  { %v2270_v7 = vadd.f32 %v2269_v6, %v2199_v5  ;;  %v2560_v9 = vmax.f32 %v2268_v31, 0.0 }
 0x31b   :  { %v2561_v41 = vmax.f32 %v2270_v7, 0.0 }
 0x31d   :  { %2906 = vmatprep.mubr.f32.mxu0 %v2561_v41 }
 0x31e   :  { %2907 = vmatmul.mubr.f32.vlgmr.msra.gmra.mxu0 %v2560_v9 }
 0x34b   :  { %v2480_v11 = vpop.f32.mrf.mxu1 }
 0x34d   :  { %v2482_v26 = vpop.f32.mrf.mxu1 }
 0x357   :  { %v2409_v20 = vpop.f32.mrf.mxu0 }
 0x358   :  { %v2410_v25 = vadd.f32 %v2409_v20, %v2339_v54 }
 0x359   :  { %v2411_v35 = vpop.f32.mrf.mxu0 }
 0x35a   :  { %v2412_v59 = vadd.f32 %v2411_v35, %v2341_v24  ;;  %v2481_v63 = vadd.f32 %v2480_v11, %v2410_v25 }
 0x35c   :  { %v2483_v29 = vadd.f32 %v2482_v26, %v2412_v59 }
 0x35d   :  { %v2551_v30 = vpop.f32.mrf.mxu0 }
 0x35e   :  { %v2552_v36 = vadd.f32 %v2551_v30, %v2481_v63 }
 0x35f   :  { %v2553_v37 = vpop.f32.mrf.mxu0 }
 0x360   :  { %v2554_v38 = vadd.f32 %v2553_v37, %v2483_v29  ;;  %v2562_v55 = vmax.f32 %v2552_v36, 0.0 }
 0x362   :  { %v2563_v15 = vmax.f32 %v2554_v38, 0.0 }
 0x364   :  { %3009 = vmatprep.mubr.msk.f32.mxu1 %vm2694_vm4, %v2563_v15 }
 0x365   :  { %2977 = vmatmul.mubr.f32.vlgmr.msra.gmra.mxu1 %v2562_v55 }
 0x36e   :  { %v3077_v39 = vpop.f32.mrf.mxu1 }
 0x370   :  { %v3078_v44 = vpop.f32.mrf.mxu1 }
 0x371   :  { %v3079_v17 = vadd.f32 %v3078_v44, %v3077_v39 }
 0x37e   :  { %v3042_v40 = vpop.f32.mrf.mxu0 }
 0x380   :  { %v3043_v8 = vpop.f32.mrf.mxu0 }
 0x381   :  { %v3044_v42 = vadd.f32 %v3043_v8, %v3042_v40 }
 0x383   :  { %v2769_v47 = vadd.f32 %v3044_v42, %v3007_v43 }
 0x385   :  { %v2839_v49 = vadd.f32 %v3079_v17, %v2769_v47 }
 0x3de   :  { %v3112_v60 = vpop.f32.mrf.mxu0 }
 0x3e0   :  { %v3113_v46 = vpop.f32.mrf.mxu0 }
 0x3e1   :  { %v3114_v48 = vadd.f32 %v3113_v46, %v3112_v60 }
 0x3e3   :  { %v2909_v50 = vadd.f32 %v3114_v48, %v2839_v49 }
 0x425   :  { %v2978_v13 = vpop.f32.mrf.mxu1 }
 0x426   :  { %v2979_v52 = vadd.f32 %v2978_v13, %v2909_v50 }
 0x427   :  { %v2980_v53 = vpop.f32.mrf.mxu1 }
 0x428   :  { %v2982_v51 = vmax.f32 %v2979_v52, 0.0 }
 0x42a   :  { %2983 = vst [vmem:[%s3558_s7] sm:$0xff] %v2982_v51 }
 0x42b   :  { %2988 = vsyncpa [#allocation3], 1 }
 0x42c   :  { %2989 = vsyncpa [#allocation5], 1 }
 0x42d   :  { %2990 = vsyncpa [#allocation8], 1 }
 0x42e   :  { %2991 = vsyncpa [#allocation11], 1 }

</bundles_post_ra>
